<compile_context>
chip_gen: v5e
topology: v5e:2x2
jax: 0.10.0
libtpu: 0.0.40
codegen_flags: <defaults>
</compile_context>

<pallas_src>
import numpy as np
import jax
import jax.numpy as jnp
from jax.experimental import pallas as pl
from jax.experimental.pallas import tpu as pltpu


def _pick_nb(N, L, map_bytes_cap=16 * 1024):
    """Batch block: must divide N and be a multiple of 8 or equal to N (so the
    (nb, L) output block obeys the (8,128) tiling rule).  Prefer the largest nb
    whose (nb, L) f32 conv maps stay within ~map_bytes_cap (a few vregs), while
    keeping >=2 grid steps on the batch axis when possible (megacore)."""
    cap = max(1, map_bytes_cap // (L * 4))
    cands = [nb for nb in range(1, N + 1)
             if N % nb == 0 and (nb % 8 == 0 or nb == N)]
    within = [nb for nb in cands if nb <= cap]
    pref = [nb for nb in within if N // nb >= 2]
    if pref:
        return max(pref)
    if within:
        return max(within)
    return min(cands)


def _pick_cblk(C, nb, L, target_bytes=2 * 1024 * 1024):
    """Channel block: multiple of 8 or the full C (input-block tiling rule),
    sized so one (nb, c_blk, L) x-block is roughly <= target_bytes."""
    cap = max(1, target_bytes // (nb * L * 4))
    if C <= cap:
        return C
    cands = [cb for cb in range(8, C, 8) if C % cb == 0 and cb <= cap]
    return max(cands) if cands else C


def spatial_attention_module(x, conv_w, conv_b, *, nb=None, c_blk=None):
    """x: (N, C, H, W), conv_w: (1, 2, 7, 7), conv_b: (1,) -> (N, 1, H, W) f32."""
    x = x.astype(jnp.float32)
    N, C, H, W = x.shape
    L = H * W

    if nb is None:
        nb = _pick_nb(N, L)
    if c_blk is None:
        c_blk = _pick_cblk(C, nb, L)
    assert N % nb == 0 and (nb % 8 == 0 or nb == N)
    assert C % c_blk == 0 and (c_blk % 8 == 0 or c_blk == C)

    # Flattened raster layout (lane-dense): x -> (N, C, H*W); out -> (N, H*W).
    x_flat = x.reshape(N, C, L)
    # Flat weight order: idx = c*49 + kh*7 + kw (c=0: avg map, c=1: max map).
    w_flat = conv_w.reshape(98).astype(jnp.float32)
    b = conv_b.reshape(1).astype(jnp.float32)

    n_c_steps = C // c_blk
    last_c = n_c_steps - 1
    inv_C = 1.0 / C
    pow2_w = (W & (W - 1)) == 0

    def kernel(x_ref, w_ref, b_ref, o_ref, sum_ref, max_ref):
        c_step = pl.program_id(1)

        @pl.when(c_step == 0)
        def _():
            sum_ref[...] = jnp.zeros((nb, L), jnp.float32)
            max_ref[...] = jnp.full((nb, L), -jnp.inf, jnp.float32)

        # ---- streaming channel pooling over this C chunk ----
        xb = x_ref[...]                                      # (nb, c_blk, L)
        sum_ref[...] = sum_ref[...] + jnp.sum(xb, axis=1)
        max_ref[...] = jnp.maximum(max_ref[...], jnp.max(xb, axis=1))

        @pl.when(c_step == last_c)
        def _():
            avg = sum_ref[...] * inv_C                       # (nb, L)
            mx = max_ref[...]                                # (nb, L)

            # Flat raster index and column index for boundary masks (built once).
            ii = jax.lax.broadcasted_iota(jnp.int32, (nb, L), 1)
            col = (ii & (W - 1)) if pow2_w else (ii % W)

            wmasks = {}
            for ow in range(-3, 4):
                if ow < 0:
                    wmasks[ow] = col >= -ow
                elif ow > 0:
                    wmasks[ow] = col < (W - ow)
                else:
                    wmasks[ow] = None

            # ---- 7x7 cross-correlation over the 2 pooled maps via roll + mask ----
            acc = jnp.full((nb, L), b_ref[0], dtype=jnp.float32)
            for oh in range(-3, 4):
                if oh < 0:                                   # need 0 <= h+oh
                    hmask = ii >= (-oh) * W
                elif oh > 0:                                 # need h+oh < H
                    hmask = ii < (H - oh) * W
                else:
                    hmask = None

                row = None
                for ow in range(-3, 4):
                    kh, kw = oh + 3, ow + 3
                    wa = w_ref[kh * 7 + kw]                  # avg-channel tap
                    wm = w_ref[49 + kh * 7 + kw]             # max-channel tap
                    # shifted[i] = map[i + oh*W + ow]  ==  jnp.roll(map, -(oh*W+ow))
                    shift = (-(oh * W + ow)) % L
                    if shift == 0:
                        ra, rm = avg, mx
                    else:
                        ra = pltpu.roll(avg, shift, axis=1)
                        rm = pltpu.roll(mx, shift, axis=1)
                    t = wa * ra + wm * rm
                    if wmasks[ow] is not None:
                        t = jnp.where(wmasks[ow], t, 0.0)
                    row = t if row is None else row + t
                if hmask is not None:
                    row = jnp.where(hmask, row, 0.0)
                acc = acc + row

            # sigmoid(z) = 0.5*(tanh(z/2)+1): single EUP op, no divide.
            o_ref[...] = 0.5 * (jnp.tanh(0.5 * acc) + 1.0)   # lane-dense store

    out = pl.pallas_call(
        kernel,
        out_shape=jax.ShapeDtypeStruct((N, L), jnp.float32),
        grid=(N // nb, n_c_steps),
        in_specs=[
            pl.BlockSpec((nb, c_blk, L), lambda n, c: (n, c, 0)),     # x block
            pl.BlockSpec(memory_space=pltpu.MemorySpace.SMEM),        # weights (98,)
            pl.BlockSpec(memory_space=pltpu.MemorySpace.SMEM),        # bias (1,)
        ],
        out_specs=pl.BlockSpec((nb, L), lambda n, c: (n, 0)),
        scratch_shapes=[
            pltpu.VMEM((nb, L), jnp.float32),                         # running sum
            pltpu.VMEM((nb, L), jnp.float32),                         # running max
        ],
        compiler_params=pltpu.CompilerParams(
            dimension_semantics=("parallel", "arbitrary"),
            vmem_limit_bytes=32 * 1024 * 1024,
        ),
    )(x_flat, w_flat, b)
    return out.reshape(N, 1, H, W)


def reference_np(x, conv_w, conv_b):
    """Pure numpy (float64) reference with PyTorch Conv2d (cross-correlation) semantics."""
    x = np.asarray(x, np.float64)
    w = np.asarray(conv_w, np.float64)
    b = float(np.asarray(conv_b).reshape(-1)[0])
    N, C, H, W = x.shape
    avg = x.mean(axis=1)
    mx = x.max(axis=1)
    pa = np.zeros((N, H + 6, W + 6)); pa[:, 3:3 + H, 3:3 + W] = avg
    pm = np.zeros((N, H + 6, W + 6)); pm[:, 3:3 + H, 3:3 + W] = mx
    acc = np.full((N, H, W), b)
    for dh in range(7):
        for dw in range(7):
            acc += pa[:, dh:dh + H, dw:dw + W] * w[0, 0, dh, dw]
            acc += pm[:, dh:dh + H, dw:dw + W] * w[0, 1, dh, dw]
    sig = 1.0 / (1.0 + np.exp(-acc))
    return sig.reshape(N, 1, H, W)


if __name__ == "__main__":
    key = jax.random.PRNGKey(0)

    # --- Test 1: small shapes, single grid step (nb == N, c_blk == C) ---
    N, C, H, W = 4, 4, 16, 16
    k1, k2, k3, key = jax.random.split(key, 4)
    x = jax.random.normal(k1, (N, C, H, W), jnp.float32)
    conv_w = jax.random.normal(k2, (1, 2, 7, 7), jnp.float32) * 0.2
    conv_b = jax.random.normal(k3, (1,), jnp.float32) * 0.1
    out = jax.block_until_ready(spatial_attention_module(x, conv_w, conv_b))
    assert out.shape == (N, 1, H, W)
    np.testing.assert_allclose(np.asarray(out), reference_np(x, conv_w, conv_b),
                               rtol=1e-4, atol=2e-5)

    # --- Test 2: multi-step grid (2 'parallel' batch steps x 2 'arbitrary' C steps) ---
    N, C, H, W = 16, 16, 16, 16
    k1, k2, k3, key = jax.random.split(key, 4)
    x = jax.random.normal(k1, (N, C, H, W), jnp.float32)
    conv_w = jax.random.normal(k2, (1, 2, 7, 7), jnp.float32) * 0.2
    conv_b = jax.random.normal(k3, (1,), jnp.float32) * 0.1
    out = jax.block_until_ready(
        spatial_attention_module(x, conv_w, conv_b, c_blk=8))
    np.testing.assert_allclose(np.asarray(out), reference_np(x, conv_w, conv_b),
                               rtol=1e-4, atol=2e-5)

    print("KERNEL_OK")
</pallas_src>

<mosaic_0001>
module attributes {stable_mosaic.version = 11 : i64} {
  func.func @kernel(%arg0: i32, %arg1: i32, %arg2: memref<4x4x256xf32, #tpu.memory_space<vmem>>, %arg3: memref<98xf32, #tpu.memory_space<smem>>, %arg4: memref<1xf32, #tpu.memory_space<smem>>, %arg5: memref<4x256xf32, #tpu.memory_space<vmem>>, %arg6: memref<4x256xf32, #tpu.memory_space<vmem>>, %arg7: memref<4x256xf32, #tpu.memory_space<vmem>>) attributes {dimension_semantics = [#tpu.dimension_semantics<parallel>, #tpu.dimension_semantics<arbitrary>], iteration_bounds = array<i64: 1, 1>, scalar_prefetch = 0 : i64, scratch_operands = 2 : i64, tpu.core_type = #tpu.core_type<tc>, window_params = [{transform_indices = @transform_0, window_bounds = array<i64: 4, 4, 256>}, {transform_indices = @transform_1, window_bounds = array<i64: 98>}, {transform_indices = @transform_2, window_bounds = array<i64: 1>}, {transform_indices = @transform_3, window_bounds = array<i64: 4, 256>}]} {
    %c0_i32 = arith.constant 0 : i32
    %0 = arith.cmpi eq, %arg1, %c0_i32 : i32
    %1 = arith.extui %0 : i1 to i32
    %c0_i32_0 = arith.constant 0 : i32
    %2 = arith.cmpi ne, %1, %c0_i32_0 : i32
    scf.if %2 {
      %cst_14 = arith.constant 0.000000e+00 : f32
      %15 = vector.broadcast %cst_14 : f32 to vector<4x256xf32>
      %c0_15 = arith.constant 0 : index
      %c0_16 = arith.constant 0 : index
      %16 = vector.load %arg6[%c0_15, %c0_16] : memref<4x256xf32, #tpu.memory_space<vmem>>, vector<4x256xf32>
      tpu.vector_store %arg6[%c0_15, %c0_16], %15 {strides = array<i32>} : memref<4x256xf32, #tpu.memory_space<vmem>>, vector<4x256xf32>,
      %cst_17 = arith.constant 0xFF800000 : f32
      %17 = vector.broadcast %cst_17 : f32 to vector<4x256xf32>
      %c0_18 = arith.constant 0 : index
      %c0_19 = arith.constant 0 : index
      %18 = vector.load %arg7[%c0_18, %c0_19] : memref<4x256xf32, #tpu.memory_space<vmem>>, vector<4x256xf32>
      tpu.vector_store %arg7[%c0_18, %c0_19], %17 {strides = array<i32>} : memref<4x256xf32, #tpu.memory_space<vmem>>, vector<4x256xf32>,
    } else {
    }
    %c0 = arith.constant 0 : index
    %c0_1 = arith.constant 0 : index
    %c0_2 = arith.constant 0 : index
    %3 = vector.load %arg2[%c0, %c0_1, %c0_2] : memref<4x4x256xf32, #tpu.memory_space<vmem>>, vector<4x4x256xf32>
    %c0_3 = arith.constant 0 : index
    %c0_4 = arith.constant 0 : index
    %4 = vector.load %arg6[%c0_3, %c0_4] : memref<4x256xf32, #tpu.memory_space<vmem>>, vector<4x256xf32>
    %cst = arith.constant dense<0.000000e+00> : vector<4x256xf32>
    %5 = vector.multi_reduction <add>, %3, %cst [1] : vector<4x4x256xf32> to vector<4x256xf32>
    %6 = arith.addf %4, %5 : vector<4x256xf32>
    %c0_5 = arith.constant 0 : index
    %c0_6 = arith.constant 0 : index
    %7 = vector.load %arg6[%c0_5, %c0_6] : memref<4x256xf32, #tpu.memory_space<vmem>>, vector<4x256xf32>
    tpu.vector_store %arg6[%c0_5, %c0_6], %6 {strides = array<i32>} : memref<4x256xf32, #tpu.memory_space<vmem>>, vector<4x256xf32>,
    %c0_7 = arith.constant 0 : index
    %c0_8 = arith.constant 0 : index
    %8 = vector.load %arg7[%c0_7, %c0_8] : memref<4x256xf32, #tpu.memory_space<vmem>>, vector<4x256xf32>
    %cst_9 = arith.constant dense<0xFF800000> : vector<4x256xf32>
    %9 = vector.multi_reduction <maximumf>, %3, %cst_9 [1] : vector<4x4x256xf32> to vector<4x256xf32>
    %10 = arith.maximumf %8, %9 : vector<4x256xf32>
    %c0_10 = arith.constant 0 : index
    %c0_11 = arith.constant 0 : index
    %11 = vector.load %arg7[%c0_10, %c0_11] : memref<4x256xf32, #tpu.memory_space<vmem>>, vector<4x256xf32>
    tpu.vector_store %arg7[%c0_10, %c0_11], %10 {strides = array<i32>} : memref<4x256xf32, #tpu.memory_space<vmem>>, vector<4x256xf32>,
    %c0_i32_12 = arith.constant 0 : i32
    %12 = arith.cmpi eq, %arg1, %c0_i32_12 : i32
    %13 = arith.extui %12 : i1 to i32
    %c0_i32_13 = arith.constant 0 : i32
    %14 = arith.cmpi ne, %13, %c0_i32_13 : i32
    scf.if %14 {
      %c0_14 = arith.constant 0 : index
      %c0_15 = arith.constant 0 : index
      %15 = vector.load %arg6[%c0_14, %c0_15] : memref<4x256xf32, #tpu.memory_space<vmem>>, vector<4x256xf32>
      %cst_16 = arith.constant 2.500000e-01 : f32
      %16 = vector.broadcast %cst_16 : f32 to vector<4x256xf32>
      %17 = arith.mulf %15, %16 : vector<4x256xf32>
      %c0_17 = arith.constant 0 : index
      %c0_18 = arith.constant 0 : index
      %18 = vector.load %arg7[%c0_17, %c0_18] : memref<4x256xf32, #tpu.memory_space<vmem>>, vector<4x256xf32>
      %19 = tpu.iota {dimensions = array<i32: 1>} : vector<4x256xi32>
      %c15_i32 = arith.constant 15 : i32
      %20 = vector.broadcast %c15_i32 : i32 to vector<4x256xi32>
      %21 = arith.andi %19, %20 : vector<4x256xi32>
      %c3_i32 = arith.constant 3 : i32
      %22 = vector.broadcast %c3_i32 : i32 to vector<4x256xi32>
      %23 = arith.cmpi sge, %21, %22 : vector<4x256xi32>
      %c2_i32 = arith.constant 2 : i32
      %24 = vector.broadcast %c2_i32 : i32 to vector<4x256xi32>
      %25 = arith.cmpi sge, %21, %24 : vector<4x256xi32>
      %c1_i32 = arith.constant 1 : i32
      %26 = vector.broadcast %c1_i32 : i32 to vector<4x256xi32>
      %27 = arith.cmpi sge, %21, %26 : vector<4x256xi32>
      %c15_i32_19 = arith.constant 15 : i32
      %28 = vector.broadcast %c15_i32_19 : i32 to vector<4x256xi32>
      %29 = arith.cmpi slt, %21, %28 : vector<4x256xi32>
      %c14_i32 = arith.constant 14 : i32
      %30 = vector.broadcast %c14_i32 : i32 to vector<4x256xi32>
      %31 = arith.cmpi slt, %21, %30 : vector<4x256xi32>
      %c13_i32 = arith.constant 13 : i32
      %32 = vector.broadcast %c13_i32 : i32 to vector<4x256xi32>
      %33 = arith.cmpi slt, %21, %32 : vector<4x256xi32>
      %c0_20 = arith.constant 0 : index
      %34 = memref.load %arg4[%c0_20] : memref<1xf32, #tpu.memory_space<smem>>
      %35 = vector.broadcast %34 : f32 to vector<4x256xf32>
      %c48_i32 = arith.constant 48 : i32
      %36 = vector.broadcast %c48_i32 : i32 to vector<4x256xi32>
      %37 = arith.cmpi sge, %19, %36 : vector<4x256xi32>
      %c0_21 = arith.constant 0 : index
      %38 = memref.load %arg3[%c0_21] : memref<98xf32, #tpu.memory_space<smem>>
      %c49 = arith.constant 49 : index
      %39 = memref.load %arg3[%c49] : memref<98xf32, #tpu.memory_space<smem>>
      %c51_i32 = arith.constant 51 : i32
      %40 = tpu.dynamic_rotate %17 by %c51_i32 dim 1 : vector<4x256xf32>, i32 -> vector<4x256xf32>
      %c51_i32_22 = arith.constant 51 : i32
      %41 = tpu.dynamic_rotate %18 by %c51_i32_22 dim 1 : vector<4x256xf32>, i32 -> vector<4x256xf32>
      %42 = vector.broadcast %38 : f32 to vector<4x256xf32>
      %43 = arith.mulf %42, %40 : vector<4x256xf32>
      %44 = vector.broadcast %39 : f32 to vector<4x256xf32>
      %45 = arith.mulf %44, %41 : vector<4x256xf32>
      %46 = arith.addf %43, %45 : vector<4x256xf32>
      %cst_23 = arith.constant 0.000000e+00 : f32
      %47 = vector.broadcast %cst_23 : f32 to vector<4x256xf32>
      %48 = arith.select %23, %46, %47 : vector<4x256xi1>, vector<4x256xf32>
      %c1 = arith.constant 1 : index
      %49 = memref.load %arg3[%c1] : memref<98xf32, #tpu.memory_space<smem>>
      %c50 = arith.constant 50 : index
      %50 = memref.load %arg3[%c50] : memref<98xf32, #tpu.memory_space<smem>>
      %c50_i32 = arith.constant 50 : i32
      %51 = tpu.dynamic_rotate %17 by %c50_i32 dim 1 : vector<4x256xf32>, i32 -> vector<4x256xf32>
      %c50_i32_24 = arith.constant 50 : i32
      %52 = tpu.dynamic_rotate %18 by %c50_i32_24 dim 1 : vector<4x256xf32>, i32 -> vector<4x256xf32>
      %53 = vector.broadcast %49 : f32 to vector<4x256xf32>
      %54 = arith.mulf %53, %51 : vector<4x256xf32>
      %55 = vector.broadcast %50 : f32 to vector<4x256xf32>
      %56 = arith.mulf %55, %52 : vector<4x256xf32>
      %57 = arith.addf %54, %56 : vector<4x256xf32>
      %cst_25 = arith.constant 0.000000e+00 : f32
      %58 = vector.broadcast %cst_25 : f32 to vector<4x256xf32>
      %59 = arith.select %25, %57, %58 : vector<4x256xi1>, vector<4x256xf32>
      %60 = arith.addf %48, %59 : vector<4x256xf32>
      %c2 = arith.constant 2 : index
      %61 = memref.load %arg3[%c2] : memref<98xf32, #tpu.memory_space<smem>>
      %c51 = arith.constant 51 : index
      %62 = memref.load %arg3[%c51] : memref<98xf32, #tpu.memory_space<smem>>
      %c49_i32 = arith.constant 49 : i32
      %63 = tpu.dynamic_rotate %17 by %c49_i32 dim 1 : vector<4x256xf32>, i32 -> vector<4x256xf32>
      %c49_i32_26 = arith.constant 49 : i32
      %64 = tpu.dynamic_rotate %18 by %c49_i32_26 dim 1 : vector<4x256xf32>, i32 -> vector<4x256xf32>
      %65 = vector.broadcast %61 : f32 to vector<4x256xf32>
      %66 = arith.mulf %65, %63 : vector<4x256xf32>
      %67 = vector.broadcast %62 : f32 to vector<4x256xf32>
      %68 = arith.mulf %67, %64 : vector<4x256xf32>
      %69 = arith.addf %66, %68 : vector<4x256xf32>
      %cst_27 = arith.constant 0.000000e+00 : f32
      %70 = vector.broadcast %cst_27 : f32 to vector<4x256xf32>
      %71 = arith.select %27, %69, %70 : vector<4x256xi1>, vector<4x256xf32>
      %72 = arith.addf %60, %71 : vector<4x256xf32>
      %c3 = arith.constant 3 : index
      %73 = memref.load %arg3[%c3] : memref<98xf32, #tpu.memory_space<smem>>
      %c52 = arith.constant 52 : index
      %74 = memref.load %arg3[%c52] : memref<98xf32, #tpu.memory_space<smem>>
      %c48_i32_28 = arith.constant 48 : i32
      %75 = tpu.dynamic_rotate %17 by %c48_i32_28 dim 1 : vector<4x256xf32>, i32 -> vector<4x256xf32>
      %c48_i32_29 = arith.constant 48 : i32
      %76 = tpu.dynamic_rotate %18 by %c48_i32_29 dim 1 : vector<4x256xf32>, i32 -> vector<4x256xf32>
      %77 = vector.broadcast %73 : f32 to vector<4x256xf32>
      %78 = arith.mulf %77, %75 : vector<4x256xf32>
      %79 = vector.broadcast %74 : f32 to vector<4x256xf32>
      %80 = arith.mulf %79, %76 : vector<4x256xf32>
      %81 = arith.addf %78, %80 : vector<4x256xf32>
      %82 = arith.addf %72, %81 : vector<4x256xf32>
      %c4 = arith.constant 4 : index
      %83 = memref.load %arg3[%c4] : memref<98xf32, #tpu.memory_space<smem>>
      %c53 = arith.constant 53 : index
      %84 = memref.load %arg3[%c53] : memref<98xf32, #tpu.memory_space<smem>>
      %c47_i32 = arith.constant 47 : i32
      %85 = tpu.dynamic_rotate %17 by %c47_i32 dim 1 : vector<4x256xf32>, i32 -> vector<4x256xf32>
      %c47_i32_30 = arith.constant 47 : i32
      %86 = tpu.dynamic_rotate %18 by %c47_i32_30 dim 1 : vector<4x256xf32>, i32 -> vector<4x256xf32>
      %87 = vector.broadcast %83 : f32 to vector<4x256xf32>
      %88 = arith.mulf %87, %85 : vector<4x256xf32>
      %89 = vector.broadcast %84 : f32 to vector<4x256xf32>
      %90 = arith.mulf %89, %86 : vector<4x256xf32>
      %91 = arith.addf %88, %90 : vector<4x256xf32>
      %cst_31 = arith.constant 0.000000e+00 : f32
      %92 = vector.broadcast %cst_31 : f32 to vector<4x256xf32>
      %93 = arith.select %29, %91, %92 : vector<4x256xi1>, vector<4x256xf32>
      %94 = arith.addf %82, %93 : vector<4x256xf32>
      %c5 = arith.constant 5 : index
      %95 = memref.load %arg3[%c5] : memref<98xf32, #tpu.memory_space<smem>>
      %c54 = arith.constant 54 : index
      %96 = memref.load %arg3[%c54] : memref<98xf32, #tpu.memory_space<smem>>
      %c46_i32 = arith.constant 46 : i32
      %97 = tpu.dynamic_rotate %17 by %c46_i32 dim 1 : vector<4x256xf32>, i32 -> vector<4x256xf32>
      %c46_i32_32 = arith.constant 46 : i32
      %98 = tpu.dynamic_rotate %18 by %c46_i32_32 dim 1 : vector<4x256xf32>, i32 -> vector<4x256xf32>
      %99 = vector.broadcast %95 : f32 to vector<4x256xf32>
      %100 = arith.mulf %99, %97 : vector<4x256xf32>
      %101 = vector.broadcast %96 : f32 to vector<4x256xf32>
      %102 = arith.mulf %101, %98 : vector<4x256xf32>
      %103 = arith.addf %100, %102 : vector<4x256xf32>
      %cst_33 = arith.constant 0.000000e+00 : f32
      %104 = vector.broadcast %cst_33 : f32 to vector<4x256xf32>
      %105 = arith.select %31, %103, %104 : vector<4x256xi1>, vector<4x256xf32>
      %106 = arith.addf %94, %105 : vector<4x256xf32>
      %c6 = arith.constant 6 : index
      %107 = memref.load %arg3[%c6] : memref<98xf32, #tpu.memory_space<smem>>
      %c55 = arith.constant 55 : index
      %108 = memref.load %arg3[%c55] : memref<98xf32, #tpu.memory_space<smem>>
      %c45_i32 = arith.constant 45 : i32
      %109 = tpu.dynamic_rotate %17 by %c45_i32 dim 1 : vector<4x256xf32>, i32 -> vector<4x256xf32>
      %c45_i32_34 = arith.constant 45 : i32
      %110 = tpu.dynamic_rotate %18 by %c45_i32_34 dim 1 : vector<4x256xf32>, i32 -> vector<4x256xf32>
      %111 = vector.broadcast %107 : f32 to vector<4x256xf32>
      %112 = arith.mulf %111, %109 : vector<4x256xf32>
      %113 = vector.broadcast %108 : f32 to vector<4x256xf32>
      %114 = arith.mulf %113, %110 : vector<4x256xf32>
      %115 = arith.addf %112, %114 : vector<4x256xf32>
      %cst_35 = arith.constant 0.000000e+00 : f32
      %116 = vector.broadcast %cst_35 : f32 to vector<4x256xf32>
      %117 = arith.select %33, %115, %116 : vector<4x256xi1>, vector<4x256xf32>
      %118 = arith.addf %106, %117 : vector<4x256xf32>
      %cst_36 = arith.constant 0.000000e+00 : f32
      %119 = vector.broadcast %cst_36 : f32 to vector<4x256xf32>
      %120 = arith.select %37, %118, %119 : vector<4x256xi1>, vector<4x256xf32>
      %121 = arith.addf %35, %120 : vector<4x256xf32>
      %c32_i32 = arith.constant 32 : i32
      %122 = vector.broadcast %c32_i32 : i32 to vector<4x256xi32>
      %123 = arith.cmpi sge, %19, %122 : vector<4x256xi32>
      %c7 = arith.constant 7 : index
      %124 = memref.load %arg3[%c7] : memref<98xf32, #tpu.memory_space<smem>>
      %c56 = arith.constant 56 : index
      %125 = memref.load %arg3[%c56] : memref<98xf32, #tpu.memory_space<smem>>
      %c35_i32 = arith.constant 35 : i32
      %126 = tpu.dynamic_rotate %17 by %c35_i32 dim 1 : vector<4x256xf32>, i32 -> vector<4x256xf32>
      %c35_i32_37 = arith.constant 35 : i32
      %127 = tpu.dynamic_rotate %18 by %c35_i32_37 dim 1 : vector<4x256xf32>, i32 -> vector<4x256xf32>
      %128 = vector.broadcast %124 : f32 to vector<4x256xf32>
      %129 = arith.mulf %128, %126 : vector<4x256xf32>
      %130 = vector.broadcast %125 : f32 to vector<4x256xf32>
      %131 = arith.mulf %130, %127 : vector<4x256xf32>
      %132 = arith.addf %129, %131 : vector<4x256xf32>
      %cst_38 = arith.constant 0.000000e+00 : f32
      %133 = vector.broadcast %cst_38 : f32 to vector<4x256xf32>
      %134 = arith.select %23, %132, %133 : vector<4x256xi1>, vector<4x256xf32>
      %c8 = arith.constant 8 : index
      %135 = memref.load %arg3[%c8] : memref<98xf32, #tpu.memory_space<smem>>
      %c57 = arith.constant 57 : index
      %136 = memref.load %arg3[%c57] : memref<98xf32, #tpu.memory_space<smem>>
      %c34_i32 = arith.constant 34 : i32
      %137 = tpu.dynamic_rotate %17 by %c34_i32 dim 1 : vector<4x256xf32>, i32 -> vector<4x256xf32>
      %c34_i32_39 = arith.constant 34 : i32
      %138 = tpu.dynamic_rotate %18 by %c34_i32_39 dim 1 : vector<4x256xf32>, i32 -> vector<4x256xf32>
      %139 = vector.broadcast %135 : f32 to vector<4x256xf32>
      %140 = arith.mulf %139, %137 : vector<4x256xf32>
      %141 = vector.broadcast %136 : f32 to vector<4x256xf32>
      %142 = arith.mulf %141, %138 : vector<4x256xf32>
      %143 = arith.addf %140, %142 : vector<4x256xf32>
      %cst_40 = arith.constant 0.000000e+00 : f32
      %144 = vector.broadcast %cst_40 : f32 to vector<4x256xf32>
      %145 = arith.select %25, %143, %144 : vector<4x256xi1>, vector<4x256xf32>
      %146 = arith.addf %134, %145 : vector<4x256xf32>
      %c9 = arith.constant 9 : index
      %147 = memref.load %arg3[%c9] : memref<98xf32, #tpu.memory_space<smem>>
      %c58 = arith.constant 58 : index
      %148 = memref.load %arg3[%c58] : memref<98xf32, #tpu.memory_space<smem>>
      %c33_i32 = arith.constant 33 : i32
      %149 = tpu.dynamic_rotate %17 by %c33_i32 dim 1 : vector<4x256xf32>, i32 -> vector<4x256xf32>
      %c33_i32_41 = arith.constant 33 : i32
      %150 = tpu.dynamic_rotate %18 by %c33_i32_41 dim 1 : vector<4x256xf32>, i32 -> vector<4x256xf32>
      %151 = vector.broadcast %147 : f32 to vector<4x256xf32>
      %152 = arith.mulf %151, %149 : vector<4x256xf32>
      %153 = vector.broadcast %148 : f32 to vector<4x256xf32>
      %154 = arith.mulf %153, %150 : vector<4x256xf32>
      %155 = arith.addf %152, %154 : vector<4x256xf32>
      %cst_42 = arith.constant 0.000000e+00 : f32
      %156 = vector.broadcast %cst_42 : f32 to vector<4x256xf32>
      %157 = arith.select %27, %155, %156 : vector<4x256xi1>, vector<4x256xf32>
      %158 = arith.addf %146, %157 : vector<4x256xf32>
      %c10 = arith.constant 10 : index
      %159 = memref.load %arg3[%c10] : memref<98xf32, #tpu.memory_space<smem>>
      %c59 = arith.constant 59 : index
      %160 = memref.load %arg3[%c59] : memref<98xf32, #tpu.memory_space<smem>>
      %c32_i32_43 = arith.constant 32 : i32
      %161 = tpu.dynamic_rotate %17 by %c32_i32_43 dim 1 : vector<4x256xf32>, i32 -> vector<4x256xf32>
      %c32_i32_44 = arith.constant 32 : i32
      %162 = tpu.dynamic_rotate %18 by %c32_i32_44 dim 1 : vector<4x256xf32>, i32 -> vector<4x256xf32>
      %163 = vector.broadcast %159 : f32 to vector<4x256xf32>
      %164 = arith.mulf %163, %161 : vector<4x256xf32>
      %165 = vector.broadcast %160 : f32 to vector<4x256xf32>
      %166 = arith.mulf %165, %162 : vector<4x256xf32>
      %167 = arith.addf %164, %166 : vector<4x256xf32>
      %168 = arith.addf %158, %167 : vector<4x256xf32>
      %c11 = arith.constant 11 : index
      %169 = memref.load %arg3[%c11] : memref<98xf32, #tpu.memory_space<smem>>
      %c60 = arith.constant 60 : index
      %170 = memref.load %arg3[%c60] : memref<98xf32, #tpu.memory_space<smem>>
      %c31_i32 = arith.constant 31 : i32
      %171 = tpu.dynamic_rotate %17 by %c31_i32 dim 1 : vector<4x256xf32>, i32 -> vector<4x256xf32>
      %c31_i32_45 = arith.constant 31 : i32
      %172 = tpu.dynamic_rotate %18 by %c31_i32_45 dim 1 : vector<4x256xf32>, i32 -> vector<4x256xf32>
      %173 = vector.broadcast %169 : f32 to vector<4x256xf32>
      %174 = arith.mulf %173, %171 : vector<4x256xf32>
      %175 = vector.broadcast %170 : f32 to vector<4x256xf32>
      %176 = arith.mulf %175, %172 : vector<4x256xf32>
      %177 = arith.addf %174, %176 : vector<4x256xf32>
      %cst_46 = arith.constant 0.000000e+00 : f32
      %178 = vector.broadcast %cst_46 : f32 to vector<4x256xf32>
      %179 = arith.select %29, %177, %178 : vector<4x256xi1>, vector<4x256xf32>
      %180 = arith.addf %168, %179 : vector<4x256xf32>
      %c12 = arith.constant 12 : index
      %181 = memref.load %arg3[%c12] : memref<98xf32, #tpu.memory_space<smem>>
      %c61 = arith.constant 61 : index
      %182 = memref.load %arg3[%c61] : memref<98xf32, #tpu.memory_space<smem>>
      %c30_i32 = arith.constant 30 : i32
      %183 = tpu.dynamic_rotate %17 by %c30_i32 dim 1 : vector<4x256xf32>, i32 -> vector<4x256xf32>
      %c30_i32_47 = arith.constant 30 : i32
      %184 = tpu.dynamic_rotate %18 by %c30_i32_47 dim 1 : vector<4x256xf32>, i32 -> vector<4x256xf32>
      %185 = vector.broadcast %181 : f32 to vector<4x256xf32>
      %186 = arith.mulf %185, %183 : vector<4x256xf32>
      %187 = vector.broadcast %182 : f32 to vector<4x256xf32>
      %188 = arith.mulf %187, %184 : vector<4x256xf32>
      %189 = arith.addf %186, %188 : vector<4x256xf32>
      %cst_48 = arith.constant 0.000000e+00 : f32
      %190 = vector.broadcast %cst_48 : f32 to vector<4x256xf32>
      %191 = arith.select %31, %189, %190 : vector<4x256xi1>, vector<4x256xf32>
      %192 = arith.addf %180, %191 : vector<4x256xf32>
      %c13 = arith.constant 13 : index
      %193 = memref.load %arg3[%c13] : memref<98xf32, #tpu.memory_space<smem>>
      %c62 = arith.constant 62 : index
      %194 = memref.load %arg3[%c62] : memref<98xf32, #tpu.memory_space<smem>>
      %c29_i32 = arith.constant 29 : i32
      %195 = tpu.dynamic_rotate %17 by %c29_i32 dim 1 : vector<4x256xf32>, i32 -> vector<4x256xf32>
      %c29_i32_49 = arith.constant 29 : i32
      %196 = tpu.dynamic_rotate %18 by %c29_i32_49 dim 1 : vector<4x256xf32>, i32 -> vector<4x256xf32>
      %197 = vector.broadcast %193 : f32 to vector<4x256xf32>
      %198 = arith.mulf %197, %195 : vector<4x256xf32>
      %199 = vector.broadcast %194 : f32 to vector<4x256xf32>
      %200 = arith.mulf %199, %196 : vector<4x256xf32>
      %201 = arith.addf %198, %200 : vector<4x256xf32>
      %cst_50 = arith.constant 0.000000e+00 : f32
      %202 = vector.broadcast %cst_50 : f32 to vector<4x256xf32>
      %203 = arith.select %33, %201, %202 : vector<4x256xi1>, vector<4x256xf32>
      %204 = arith.addf %192, %203 : vector<4x256xf32>
      %cst_51 = arith.constant 0.000000e+00 : f32
      %205 = vector.broadcast %cst_51 : f32 to vector<4x256xf32>
      %206 = arith.select %123, %204, %205 : vector<4x256xi1>, vector<4x256xf32>
      %207 = arith.addf %121, %206 : vector<4x256xf32>
      %c16_i32 = arith.constant 16 : i32
      %208 = vector.broadcast %c16_i32 : i32 to vector<4x256xi32>
      %209 = arith.cmpi sge, %19, %208 : vector<4x256xi32>
      %c14 = arith.constant 14 : index
      %210 = memref.load %arg3[%c14] : memref<98xf32, #tpu.memory_space<smem>>
      %c63 = arith.constant 63 : index
      %211 = memref.load %arg3[%c63] : memref<98xf32, #tpu.memory_space<smem>>
      %c19_i32 = arith.constant 19 : i32
      %212 = tpu.dynamic_rotate %17 by %c19_i32 dim 1 : vector<4x256xf32>, i32 -> vector<4x256xf32>
      %c19_i32_52 = arith.constant 19 : i32
      %213 = tpu.dynamic_rotate %18 by %c19_i32_52 dim 1 : vector<4x256xf32>, i32 -> vector<4x256xf32>
      %214 = vector.broadcast %210 : f32 to vector<4x256xf32>
      %215 = arith.mulf %214, %212 : vector<4x256xf32>
      %216 = vector.broadcast %211 : f32 to vector<4x256xf32>
      %217 = arith.mulf %216, %213 : vector<4x256xf32>
      %218 = arith.addf %215, %217 : vector<4x256xf32>
      %cst_53 = arith.constant 0.000000e+00 : f32
      %219 = vector.broadcast %cst_53 : f32 to vector<4x256xf32>
      %220 = arith.select %23, %218, %219 : vector<4x256xi1>, vector<4x256xf32>
      %c15 = arith.constant 15 : index
      %221 = memref.load %arg3[%c15] : memref<98xf32, #tpu.memory_space<smem>>
      %c64 = arith.constant 64 : index
      %222 = memref.load %arg3[%c64] : memref<98xf32, #tpu.memory_space<smem>>
      %c18_i32 = arith.constant 18 : i32
      %223 = tpu.dynamic_rotate %17 by %c18_i32 dim 1 : vector<4x256xf32>, i32 -> vector<4x256xf32>
      %c18_i32_54 = arith.constant 18 : i32
      %224 = tpu.dynamic_rotate %18 by %c18_i32_54 dim 1 : vector<4x256xf32>, i32 -> vector<4x256xf32>
      %225 = vector.broadcast %221 : f32 to vector<4x256xf32>
      %226 = arith.mulf %225, %223 : vector<4x256xf32>
      %227 = vector.broadcast %222 : f32 to vector<4x256xf32>
      %228 = arith.mulf %227, %224 : vector<4x256xf32>
      %229 = arith.addf %226, %228 : vector<4x256xf32>
      %cst_55 = arith.constant 0.000000e+00 : f32
      %230 = vector.broadcast %cst_55 : f32 to vector<4x256xf32>
      %231 = arith.select %25, %229, %230 : vector<4x256xi1>, vector<4x256xf32>
      %232 = arith.addf %220, %231 : vector<4x256xf32>
      %c16 = arith.constant 16 : index
      %233 = memref.load %arg3[%c16] : memref<98xf32, #tpu.memory_space<smem>>
      %c65 = arith.constant 65 : index
      %234 = memref.load %arg3[%c65] : memref<98xf32, #tpu.memory_space<smem>>
      %c17_i32 = arith.constant 17 : i32
      %235 = tpu.dynamic_rotate %17 by %c17_i32 dim 1 : vector<4x256xf32>, i32 -> vector<4x256xf32>
      %c17_i32_56 = arith.constant 17 : i32
      %236 = tpu.dynamic_rotate %18 by %c17_i32_56 dim 1 : vector<4x256xf32>, i32 -> vector<4x256xf32>
      %237 = vector.broadcast %233 : f32 to vector<4x256xf32>
      %238 = arith.mulf %237, %235 : vector<4x256xf32>
      %239 = vector.broadcast %234 : f32 to vector<4x256xf32>
      %240 = arith.mulf %239, %236 : vector<4x256xf32>
      %241 = arith.addf %238, %240 : vector<4x256xf32>
      %cst_57 = arith.constant 0.000000e+00 : f32
      %242 = vector.broadcast %cst_57 : f32 to vector<4x256xf32>
      %243 = arith.select %27, %241, %242 : vector<4x256xi1>, vector<4x256xf32>
      %244 = arith.addf %232, %243 : vector<4x256xf32>
      %c17 = arith.constant 17 : index
      %245 = memref.load %arg3[%c17] : memref<98xf32, #tpu.memory_space<smem>>
      %c66 = arith.constant 66 : index
      %246 = memref.load %arg3[%c66] : memref<98xf32, #tpu.memory_space<smem>>
      %c16_i32_58 = arith.constant 16 : i32
      %247 = tpu.dynamic_rotate %17 by %c16_i32_58 dim 1 : vector<4x256xf32>, i32 -> vector<4x256xf32>
      %c16_i32_59 = arith.constant 16 : i32
      %248 = tpu.dynamic_rotate %18 by %c16_i32_59 dim 1 : vector<4x256xf32>, i32 -> vector<4x256xf32>
      %249 = vector.broadcast %245 : f32 to vector<4x256xf32>
      %250 = arith.mulf %249, %247 : vector<4x256xf32>
      %251 = vector.broadcast %246 : f32 to vector<4x256xf32>
      %252 = arith.mulf %251, %248 : vector<4x256xf32>
      %253 = arith.addf %250, %252 : vector<4x256xf32>
      %254 = arith.addf %244, %253 : vector<4x256xf32>
      %c18 = arith.constant 18 : index
      %255 = memref.load %arg3[%c18] : memref<98xf32, #tpu.memory_space<smem>>
      %c67 = arith.constant 67 : index
      %256 = memref.load %arg3[%c67] : memref<98xf32, #tpu.memory_space<smem>>
      %c15_i32_60 = arith.constant 15 : i32
      %257 = tpu.dynamic_rotate %17 by %c15_i32_60 dim 1 : vector<4x256xf32>, i32 -> vector<4x256xf32>
      %c15_i32_61 = arith.constant 15 : i32
      %258 = tpu.dynamic_rotate %18 by %c15_i32_61 dim 1 : vector<4x256xf32>, i32 -> vector<4x256xf32>
      %259 = vector.broadcast %255 : f32 to vector<4x256xf32>
      %260 = arith.mulf %259, %257 : vector<4x256xf32>
      %261 = vector.broadcast %256 : f32 to vector<4x256xf32>
      %262 = arith.mulf %261, %258 : vector<4x256xf32>
      %263 = arith.addf %260, %262 : vector<4x256xf32>
      %cst_62 = arith.constant 0.000000e+00 : f32
      %264 = vector.broadcast %cst_62 : f32 to vector<4x256xf32>
      %265 = arith.select %29, %263, %264 : vector<4x256xi1>, vector<4x256xf32>
      %266 = arith.addf %254, %265 : vector<4x256xf32>
      %c19 = arith.constant 19 : index
      %267 = memref.load %arg3[%c19] : memref<98xf32, #tpu.memory_space<smem>>
      %c68 = arith.constant 68 : index
      %268 = memref.load %arg3[%c68] : memref<98xf32, #tpu.memory_space<smem>>
      %c14_i32_63 = arith.constant 14 : i32
      %269 = tpu.dynamic_rotate %17 by %c14_i32_63 dim 1 : vector<4x256xf32>, i32 -> vector<4x256xf32>
      %c14_i32_64 = arith.constant 14 : i32
      %270 = tpu.dynamic_rotate %18 by %c14_i32_64 dim 1 : vector<4x256xf32>, i32 -> vector<4x256xf32>
      %271 = vector.broadcast %267 : f32 to vector<4x256xf32>
      %272 = arith.mulf %271, %269 : vector<4x256xf32>
      %273 = vector.broadcast %268 : f32 to vector<4x256xf32>
      %274 = arith.mulf %273, %270 : vector<4x256xf32>
      %275 = arith.addf %272, %274 : vector<4x256xf32>
      %cst_65 = arith.constant 0.000000e+00 : f32
      %276 = vector.broadcast %cst_65 : f32 to vector<4x256xf32>
      %277 = arith.select %31, %275, %276 : vector<4x256xi1>, vector<4x256xf32>
      %278 = arith.addf %266, %277 : vector<4x256xf32>
      %c20 = arith.constant 20 : index
      %279 = memref.load %arg3[%c20] : memref<98xf32, #tpu.memory_space<smem>>
      %c69 = arith.constant 69 : index
      %280 = memref.load %arg3[%c69] : memref<98xf32, #tpu.memory_space<smem>>
      %c13_i32_66 = arith.constant 13 : i32
      %281 = tpu.dynamic_rotate %17 by %c13_i32_66 dim 1 : vector<4x256xf32>, i32 -> vector<4x256xf32>
      %c13_i32_67 = arith.constant 13 : i32
      %282 = tpu.dynamic_rotate %18 by %c13_i32_67 dim 1 : vector<4x256xf32>, i32 -> vector<4x256xf32>
      %283 = vector.broadcast %279 : f32 to vector<4x256xf32>
      %284 = arith.mulf %283, %281 : vector<4x256xf32>
      %285 = vector.broadcast %280 : f32 to vector<4x256xf32>
      %286 = arith.mulf %285, %282 : vector<4x256xf32>
      %287 = arith.addf %284, %286 : vector<4x256xf32>
      %cst_68 = arith.constant 0.000000e+00 : f32
      %288 = vector.broadcast %cst_68 : f32 to vector<4x256xf32>
      %289 = arith.select %33, %287, %288 : vector<4x256xi1>, vector<4x256xf32>
      %290 = arith.addf %278, %289 : vector<4x256xf32>
      %cst_69 = arith.constant 0.000000e+00 : f32
      %291 = vector.broadcast %cst_69 : f32 to vector<4x256xf32>
      %292 = arith.select %209, %290, %291 : vector<4x256xi1>, vector<4x256xf32>
      %293 = arith.addf %207, %292 : vector<4x256xf32>
      %c21 = arith.constant 21 : index
      %294 = memref.load %arg3[%c21] : memref<98xf32, #tpu.memory_space<smem>>
      %c70 = arith.constant 70 : index
      %295 = memref.load %arg3[%c70] : memref<98xf32, #tpu.memory_space<smem>>
      %c3_i32_70 = arith.constant 3 : i32
      %296 = tpu.dynamic_rotate %17 by %c3_i32_70 dim 1 : vector<4x256xf32>, i32 -> vector<4x256xf32>
      %c3_i32_71 = arith.constant 3 : i32
      %297 = tpu.dynamic_rotate %18 by %c3_i32_71 dim 1 : vector<4x256xf32>, i32 -> vector<4x256xf32>
      %298 = vector.broadcast %294 : f32 to vector<4x256xf32>
      %299 = arith.mulf %298, %296 : vector<4x256xf32>
      %300 = vector.broadcast %295 : f32 to vector<4x256xf32>
      %301 = arith.mulf %300, %297 : vector<4x256xf32>
      %302 = arith.addf %299, %301 : vector<4x256xf32>
      %cst_72 = arith.constant 0.000000e+00 : f32
      %303 = vector.broadcast %cst_72 : f32 to vector<4x256xf32>
      %304 = arith.select %23, %302, %303 : vector<4x256xi1>, vector<4x256xf32>
      %c22 = arith.constant 22 : index
      %305 = memref.load %arg3[%c22] : memref<98xf32, #tpu.memory_space<smem>>
      %c71 = arith.constant 71 : index
      %306 = memref.load %arg3[%c71] : memref<98xf32, #tpu.memory_space<smem>>
      %c2_i32_73 = arith.constant 2 : i32
      %307 = tpu.dynamic_rotate %17 by %c2_i32_73 dim 1 : vector<4x256xf32>, i32 -> vector<4x256xf32>
      %c2_i32_74 = arith.constant 2 : i32
      %308 = tpu.dynamic_rotate %18 by %c2_i32_74 dim 1 : vector<4x256xf32>, i32 -> vector<4x256xf32>
      %309 = vector.broadcast %305 : f32 to vector<4x256xf32>
      %310 = arith.mulf %309, %307 : vector<4x256xf32>
      %311 = vector.broadcast %306 : f32 to vector<4x256xf32>
      %312 = arith.mulf %311, %308 : vector<4x256xf32>
      %313 = arith.addf %310, %312 : vector<4x256xf32>
      %cst_75 = arith.constant 0.000000e+00 : f32
      %314 = vector.broadcast %cst_75 : f32 to vector<4x256xf32>
      %315 = arith.select %25, %313, %314 : vector<4x256xi1>, vector<4x256xf32>
      %316 = arith.addf %304, %315 : vector<4x256xf32>
      %c23 = arith.constant 23 : index
      %317 = memref.load %arg3[%c23] : memref<98xf32, #tpu.memory_space<smem>>
      %c72 = arith.constant 72 : index
      %318 = memref.load %arg3[%c72] : memref<98xf32, #tpu.memory_space<smem>>
      %c1_i32_76 = arith.constant 1 : i32
      %319 = tpu.dynamic_rotate %17 by %c1_i32_76 dim 1 : vector<4x256xf32>, i32 -> vector<4x256xf32>
      %c1_i32_77 = arith.constant 1 : i32
      %320 = tpu.dynamic_rotate %18 by %c1_i32_77 dim 1 : vector<4x256xf32>, i32 -> vector<4x256xf32>
      %321 = vector.broadcast %317 : f32 to vector<4x256xf32>
      %322 = arith.mulf %321, %319 : vector<4x256xf32>
      %323 = vector.broadcast %318 : f32 to vector<4x256xf32>
      %324 = arith.mulf %323, %320 : vector<4x256xf32>
      %325 = arith.addf %322, %324 : vector<4x256xf32>
      %cst_78 = arith.constant 0.000000e+00 : f32
      %326 = vector.broadcast %cst_78 : f32 to vector<4x256xf32>
      %327 = arith.select %27, %325, %326 : vector<4x256xi1>, vector<4x256xf32>
      %328 = arith.addf %316, %327 : vector<4x256xf32>
      %c24 = arith.constant 24 : index
      %329 = memref.load %arg3[%c24] : memref<98xf32, #tpu.memory_space<smem>>
      %c73 = arith.constant 73 : index
      %330 = memref.load %arg3[%c73] : memref<98xf32, #tpu.memory_space<smem>>
      %331 = vector.broadcast %329 : f32 to vector<4x256xf32>
      %332 = arith.mulf %331, %17 : vector<4x256xf32>
      %333 = vector.broadcast %330 : f32 to vector<4x256xf32>
      %334 = arith.mulf %333, %18 : vector<4x256xf32>
      %335 = arith.addf %332, %334 : vector<4x256xf32>
      %336 = arith.addf %328, %335 : vector<4x256xf32>
      %c25 = arith.constant 25 : index
      %337 = memref.load %arg3[%c25] : memref<98xf32, #tpu.memory_space<smem>>
      %c74 = arith.constant 74 : index
      %338 = memref.load %arg3[%c74] : memref<98xf32, #tpu.memory_space<smem>>
      %c255_i32 = arith.constant 255 : i32
      %339 = tpu.dynamic_rotate %17 by %c255_i32 dim 1 : vector<4x256xf32>, i32 -> vector<4x256xf32>
      %c255_i32_79 = arith.constant 255 : i32
      %340 = tpu.dynamic_rotate %18 by %c255_i32_79 dim 1 : vector<4x256xf32>, i32 -> vector<4x256xf32>
      %341 = vector.broadcast %337 : f32 to vector<4x256xf32>
      %342 = arith.mulf %341, %339 : vector<4x256xf32>
      %343 = vector.broadcast %338 : f32 to vector<4x256xf32>
      %344 = arith.mulf %343, %340 : vector<4x256xf32>
      %345 = arith.addf %342, %344 : vector<4x256xf32>
      %cst_80 = arith.constant 0.000000e+00 : f32
      %346 = vector.broadcast %cst_80 : f32 to vector<4x256xf32>
      %347 = arith.select %29, %345, %346 : vector<4x256xi1>, vector<4x256xf32>
      %348 = arith.addf %336, %347 : vector<4x256xf32>
      %c26 = arith.constant 26 : index
      %349 = memref.load %arg3[%c26] : memref<98xf32, #tpu.memory_space<smem>>
      %c75 = arith.constant 75 : index
      %350 = memref.load %arg3[%c75] : memref<98xf32, #tpu.memory_space<smem>>
      %c254_i32 = arith.constant 254 : i32
      %351 = tpu.dynamic_rotate %17 by %c254_i32 dim 1 : vector<4x256xf32>, i32 -> vector<4x256xf32>
      %c254_i32_81 = arith.constant 254 : i32
      %352 = tpu.dynamic_rotate %18 by %c254_i32_81 dim 1 : vector<4x256xf32>, i32 -> vector<4x256xf32>
      %353 = vector.broadcast %349 : f32 to vector<4x256xf32>
      %354 = arith.mulf %353, %351 : vector<4x256xf32>
      %355 = vector.broadcast %350 : f32 to vector<4x256xf32>
      %356 = arith.mulf %355, %352 : vector<4x256xf32>
      %357 = arith.addf %354, %356 : vector<4x256xf32>
      %cst_82 = arith.constant 0.000000e+00 : f32
      %358 = vector.broadcast %cst_82 : f32 to vector<4x256xf32>
      %359 = arith.select %31, %357, %358 : vector<4x256xi1>, vector<4x256xf32>
      %360 = arith.addf %348, %359 : vector<4x256xf32>
      %c27 = arith.constant 27 : index
      %361 = memref.load %arg3[%c27] : memref<98xf32, #tpu.memory_space<smem>>
      %c76 = arith.constant 76 : index
      %362 = memref.load %arg3[%c76] : memref<98xf32, #tpu.memory_space<smem>>
      %c253_i32 = arith.constant 253 : i32
      %363 = tpu.dynamic_rotate %17 by %c253_i32 dim 1 : vector<4x256xf32>, i32 -> vector<4x256xf32>
      %c253_i32_83 = arith.constant 253 : i32
      %364 = tpu.dynamic_rotate %18 by %c253_i32_83 dim 1 : vector<4x256xf32>, i32 -> vector<4x256xf32>
      %365 = vector.broadcast %361 : f32 to vector<4x256xf32>
      %366 = arith.mulf %365, %363 : vector<4x256xf32>
      %367 = vector.broadcast %362 : f32 to vector<4x256xf32>
      %368 = arith.mulf %367, %364 : vector<4x256xf32>
      %369 = arith.addf %366, %368 : vector<4x256xf32>
      %cst_84 = arith.constant 0.000000e+00 : f32
      %370 = vector.broadcast %cst_84 : f32 to vector<4x256xf32>
      %371 = arith.select %33, %369, %370 : vector<4x256xi1>, vector<4x256xf32>
      %372 = arith.addf %360, %371 : vector<4x256xf32>
      %373 = arith.addf %293, %372 : vector<4x256xf32>
      %c240_i32 = arith.constant 240 : i32
      %374 = vector.broadcast %c240_i32 : i32 to vector<4x256xi32>
      %375 = arith.cmpi slt, %19, %374 : vector<4x256xi32>
      %c28 = arith.constant 28 : index
      %376 = memref.load %arg3[%c28] : memref<98xf32, #tpu.memory_space<smem>>
      %c77 = arith.constant 77 : index
      %377 = memref.load %arg3[%c77] : memref<98xf32, #tpu.memory_space<smem>>
      %c243_i32 = arith.constant 243 : i32
      %378 = tpu.dynamic_rotate %17 by %c243_i32 dim 1 : vector<4x256xf32>, i32 -> vector<4x256xf32>
      %c243_i32_85 = arith.constant 243 : i32
      %379 = tpu.dynamic_rotate %18 by %c243_i32_85 dim 1 : vector<4x256xf32>, i32 -> vector<4x256xf32>
      %380 = vector.broadcast %376 : f32 to vector<4x256xf32>
      %381 = arith.mulf %380, %378 : vector<4x256xf32>
      %382 = vector.broadcast %377 : f32 to vector<4x256xf32>
      %383 = arith.mulf %382, %379 : vector<4x256xf32>
      %384 = arith.addf %381, %383 : vector<4x256xf32>
      %cst_86 = arith.constant 0.000000e+00 : f32
      %385 = vector.broadcast %cst_86 : f32 to vector<4x256xf32>
      %386 = arith.select %23, %384, %385 : vector<4x256xi1>, vector<4x256xf32>
      %c29 = arith.constant 29 : index
      %387 = memref.load %arg3[%c29] : memref<98xf32, #tpu.memory_space<smem>>
      %c78 = arith.constant 78 : index
      %388 = memref.load %arg3[%c78] : memref<98xf32, #tpu.memory_space<smem>>
      %c242_i32 = arith.constant 242 : i32
      %389 = tpu.dynamic_rotate %17 by %c242_i32 dim 1 : vector<4x256xf32>, i32 -> vector<4x256xf32>
      %c242_i32_87 = arith.constant 242 : i32
      %390 = tpu.dynamic_rotate %18 by %c242_i32_87 dim 1 : vector<4x256xf32>, i32 -> vector<4x256xf32>
      %391 = vector.broadcast %387 : f32 to vector<4x256xf32>
      %392 = arith.mulf %391, %389 : vector<4x256xf32>
      %393 = vector.broadcast %388 : f32 to vector<4x256xf32>
      %394 = arith.mulf %393, %390 : vector<4x256xf32>
      %395 = arith.addf %392, %394 : vector<4x256xf32>
      %cst_88 = arith.constant 0.000000e+00 : f32
      %396 = vector.broadcast %cst_88 : f32 to vector<4x256xf32>
      %397 = arith.select %25, %395, %396 : vector<4x256xi1>, vector<4x256xf32>
      %398 = arith.addf %386, %397 : vector<4x256xf32>
      %c30 = arith.constant 30 : index
      %399 = memref.load %arg3[%c30] : memref<98xf32, #tpu.memory_space<smem>>
      %c79 = arith.constant 79 : index
      %400 = memref.load %arg3[%c79] : memref<98xf32, #tpu.memory_space<smem>>
      %c241_i32 = arith.constant 241 : i32
      %401 = tpu.dynamic_rotate %17 by %c241_i32 dim 1 : vector<4x256xf32>, i32 -> vector<4x256xf32>
      %c241_i32_89 = arith.constant 241 : i32
      %402 = tpu.dynamic_rotate %18 by %c241_i32_89 dim 1 : vector<4x256xf32>, i32 -> vector<4x256xf32>
      %403 = vector.broadcast %399 : f32 to vector<4x256xf32>
      %404 = arith.mulf %403, %401 : vector<4x256xf32>
      %405 = vector.broadcast %400 : f32 to vector<4x256xf32>
      %406 = arith.mulf %405, %402 : vector<4x256xf32>
      %407 = arith.addf %404, %406 : vector<4x256xf32>
      %cst_90 = arith.constant 0.000000e+00 : f32
      %408 = vector.broadcast %cst_90 : f32 to vector<4x256xf32>
      %409 = arith.select %27, %407, %408 : vector<4x256xi1>, vector<4x256xf32>
      %410 = arith.addf %398, %409 : vector<4x256xf32>
      %c31 = arith.constant 31 : index
      %411 = memref.load %arg3[%c31] : memref<98xf32, #tpu.memory_space<smem>>
      %c80 = arith.constant 80 : index
      %412 = memref.load %arg3[%c80] : memref<98xf32, #tpu.memory_space<smem>>
      %c240_i32_91 = arith.constant 240 : i32
      %413 = tpu.dynamic_rotate %17 by %c240_i32_91 dim 1 : vector<4x256xf32>, i32 -> vector<4x256xf32>
      %c240_i32_92 = arith.constant 240 : i32
      %414 = tpu.dynamic_rotate %18 by %c240_i32_92 dim 1 : vector<4x256xf32>, i32 -> vector<4x256xf32>
      %415 = vector.broadcast %411 : f32 to vector<4x256xf32>
      %416 = arith.mulf %415, %413 : vector<4x256xf32>
      %417 = vector.broadcast %412 : f32 to vector<4x256xf32>
      %418 = arith.mulf %417, %414 : vector<4x256xf32>
      %419 = arith.addf %416, %418 : vector<4x256xf32>
      %420 = arith.addf %410, %419 : vector<4x256xf32>
      %c32 = arith.constant 32 : index
      %421 = memref.load %arg3[%c32] : memref<98xf32, #tpu.memory_space<smem>>
      %c81 = arith.constant 81 : index
      %422 = memref.load %arg3[%c81] : memref<98xf32, #tpu.memory_space<smem>>
      %c239_i32 = arith.constant 239 : i32
      %423 = tpu.dynamic_rotate %17 by %c239_i32 dim 1 : vector<4x256xf32>, i32 -> vector<4x256xf32>
      %c239_i32_93 = arith.constant 239 : i32
      %424 = tpu.dynamic_rotate %18 by %c239_i32_93 dim 1 : vector<4x256xf32>, i32 -> vector<4x256xf32>
      %425 = vector.broadcast %421 : f32 to vector<4x256xf32>
      %426 = arith.mulf %425, %423 : vector<4x256xf32>
      %427 = vector.broadcast %422 : f32 to vector<4x256xf32>
      %428 = arith.mulf %427, %424 : vector<4x256xf32>
      %429 = arith.addf %426, %428 : vector<4x256xf32>
      %cst_94 = arith.constant 0.000000e+00 : f32
      %430 = vector.broadcast %cst_94 : f32 to vector<4x256xf32>
      %431 = arith.select %29, %429, %430 : vector<4x256xi1>, vector<4x256xf32>
      %432 = arith.addf %420, %431 : vector<4x256xf32>
      %c33 = arith.constant 33 : index
      %433 = memref.load %arg3[%c33] : memref<98xf32, #tpu.memory_space<smem>>
      %c82 = arith.constant 82 : index
      %434 = memref.load %arg3[%c82] : memref<98xf32, #tpu.memory_space<smem>>
      %c238_i32 = arith.constant 238 : i32
      %435 = tpu.dynamic_rotate %17 by %c238_i32 dim 1 : vector<4x256xf32>, i32 -> vector<4x256xf32>
      %c238_i32_95 = arith.constant 238 : i32
      %436 = tpu.dynamic_rotate %18 by %c238_i32_95 dim 1 : vector<4x256xf32>, i32 -> vector<4x256xf32>
      %437 = vector.broadcast %433 : f32 to vector<4x256xf32>
      %438 = arith.mulf %437, %435 : vector<4x256xf32>
      %439 = vector.broadcast %434 : f32 to vector<4x256xf32>
      %440 = arith.mulf %439, %436 : vector<4x256xf32>
      %441 = arith.addf %438, %440 : vector<4x256xf32>
      %cst_96 = arith.constant 0.000000e+00 : f32
      %442 = vector.broadcast %cst_96 : f32 to vector<4x256xf32>
      %443 = arith.select %31, %441, %442 : vector<4x256xi1>, vector<4x256xf32>
      %444 = arith.addf %432, %443 : vector<4x256xf32>
      %c34 = arith.constant 34 : index
      %445 = memref.load %arg3[%c34] : memref<98xf32, #tpu.memory_space<smem>>
      %c83 = arith.constant 83 : index
      %446 = memref.load %arg3[%c83] : memref<98xf32, #tpu.memory_space<smem>>
      %c237_i32 = arith.constant 237 : i32
      %447 = tpu.dynamic_rotate %17 by %c237_i32 dim 1 : vector<4x256xf32>, i32 -> vector<4x256xf32>
      %c237_i32_97 = arith.constant 237 : i32
      %448 = tpu.dynamic_rotate %18 by %c237_i32_97 dim 1 : vector<4x256xf32>, i32 -> vector<4x256xf32>
      %449 = vector.broadcast %445 : f32 to vector<4x256xf32>
      %450 = arith.mulf %449, %447 : vector<4x256xf32>
      %451 = vector.broadcast %446 : f32 to vector<4x256xf32>
      %452 = arith.mulf %451, %448 : vector<4x256xf32>
      %453 = arith.addf %450, %452 : vector<4x256xf32>
      %cst_98 = arith.constant 0.000000e+00 : f32
      %454 = vector.broadcast %cst_98 : f32 to vector<4x256xf32>
      %455 = arith.select %33, %453, %454 : vector<4x256xi1>, vector<4x256xf32>
      %456 = arith.addf %444, %455 : vector<4x256xf32>
      %cst_99 = arith.constant 0.000000e+00 : f32
      %457 = vector.broadcast %cst_99 : f32 to vector<4x256xf32>
      %458 = arith.select %375, %456, %457 : vector<4x256xi1>, vector<4x256xf32>
      %459 = arith.addf %373, %458 : vector<4x256xf32>
      %c224_i32 = arith.constant 224 : i32
      %460 = vector.broadcast %c224_i32 : i32 to vector<4x256xi32>
      %461 = arith.cmpi slt, %19, %460 : vector<4x256xi32>
      %c35 = arith.constant 35 : index
      %462 = memref.load %arg3[%c35] : memref<98xf32, #tpu.memory_space<smem>>
      %c84 = arith.constant 84 : index
      %463 = memref.load %arg3[%c84] : memref<98xf32, #tpu.memory_space<smem>>
      %c227_i32 = arith.constant 227 : i32
      %464 = tpu.dynamic_rotate %17 by %c227_i32 dim 1 : vector<4x256xf32>, i32 -> vector<4x256xf32>
      %c227_i32_100 = arith.constant 227 : i32
      %465 = tpu.dynamic_rotate %18 by %c227_i32_100 dim 1 : vector<4x256xf32>, i32 -> vector<4x256xf32>
      %466 = vector.broadcast %462 : f32 to vector<4x256xf32>
      %467 = arith.mulf %466, %464 : vector<4x256xf32>
      %468 = vector.broadcast %463 : f32 to vector<4x256xf32>
      %469 = arith.mulf %468, %465 : vector<4x256xf32>
      %470 = arith.addf %467, %469 : vector<4x256xf32>
      %cst_101 = arith.constant 0.000000e+00 : f32
      %471 = vector.broadcast %cst_101 : f32 to vector<4x256xf32>
      %472 = arith.select %23, %470, %471 : vector<4x256xi1>, vector<4x256xf32>
      %c36 = arith.constant 36 : index
      %473 = memref.load %arg3[%c36] : memref<98xf32, #tpu.memory_space<smem>>
      %c85 = arith.constant 85 : index
      %474 = memref.load %arg3[%c85] : memref<98xf32, #tpu.memory_space<smem>>
      %c226_i32 = arith.constant 226 : i32
      %475 = tpu.dynamic_rotate %17 by %c226_i32 dim 1 : vector<4x256xf32>, i32 -> vector<4x256xf32>
      %c226_i32_102 = arith.constant 226 : i32
      %476 = tpu.dynamic_rotate %18 by %c226_i32_102 dim 1 : vector<4x256xf32>, i32 -> vector<4x256xf32>
      %477 = vector.broadcast %473 : f32 to vector<4x256xf32>
      %478 = arith.mulf %477, %475 : vector<4x256xf32>
      %479 = vector.broadcast %474 : f32 to vector<4x256xf32>
      %480 = arith.mulf %479, %476 : vector<4x256xf32>
      %481 = arith.addf %478, %480 : vector<4x256xf32>
      %cst_103 = arith.constant 0.000000e+00 : f32
      %482 = vector.broadcast %cst_103 : f32 to vector<4x256xf32>
      %483 = arith.select %25, %481, %482 : vector<4x256xi1>, vector<4x256xf32>
      %484 = arith.addf %472, %483 : vector<4x256xf32>
      %c37 = arith.constant 37 : index
      %485 = memref.load %arg3[%c37] : memref<98xf32, #tpu.memory_space<smem>>
      %c86 = arith.constant 86 : index
      %486 = memref.load %arg3[%c86] : memref<98xf32, #tpu.memory_space<smem>>
      %c225_i32 = arith.constant 225 : i32
      %487 = tpu.dynamic_rotate %17 by %c225_i32 dim 1 : vector<4x256xf32>, i32 -> vector<4x256xf32>
      %c225_i32_104 = arith.constant 225 : i32
      %488 = tpu.dynamic_rotate %18 by %c225_i32_104 dim 1 : vector<4x256xf32>, i32 -> vector<4x256xf32>
      %489 = vector.broadcast %485 : f32 to vector<4x256xf32>
      %490 = arith.mulf %489, %487 : vector<4x256xf32>
      %491 = vector.broadcast %486 : f32 to vector<4x256xf32>
      %492 = arith.mulf %491, %488 : vector<4x256xf32>
      %493 = arith.addf %490, %492 : vector<4x256xf32>
      %cst_105 = arith.constant 0.000000e+00 : f32
      %494 = vector.broadcast %cst_105 : f32 to vector<4x256xf32>
      %495 = arith.select %27, %493, %494 : vector<4x256xi1>, vector<4x256xf32>
      %496 = arith.addf %484, %495 : vector<4x256xf32>
      %c38 = arith.constant 38 : index
      %497 = memref.load %arg3[%c38] : memref<98xf32, #tpu.memory_space<smem>>
      %c87 = arith.constant 87 : index
      %498 = memref.load %arg3[%c87] : memref<98xf32, #tpu.memory_space<smem>>
      %c224_i32_106 = arith.constant 224 : i32
      %499 = tpu.dynamic_rotate %17 by %c224_i32_106 dim 1 : vector<4x256xf32>, i32 -> vector<4x256xf32>
      %c224_i32_107 = arith.constant 224 : i32
      %500 = tpu.dynamic_rotate %18 by %c224_i32_107 dim 1 : vector<4x256xf32>, i32 -> vector<4x256xf32>
      %501 = vector.broadcast %497 : f32 to vector<4x256xf32>
      %502 = arith.mulf %501, %499 : vector<4x256xf32>
      %503 = vector.broadcast %498 : f32 to vector<4x256xf32>
      %504 = arith.mulf %503, %500 : vector<4x256xf32>
      %505 = arith.addf %502, %504 : vector<4x256xf32>
      %506 = arith.addf %496, %505 : vector<4x256xf32>
      %c39 = arith.constant 39 : index
      %507 = memref.load %arg3[%c39] : memref<98xf32, #tpu.memory_space<smem>>
      %c88 = arith.constant 88 : index
      %508 = memref.load %arg3[%c88] : memref<98xf32, #tpu.memory_space<smem>>
      %c223_i32 = arith.constant 223 : i32
      %509 = tpu.dynamic_rotate %17 by %c223_i32 dim 1 : vector<4x256xf32>, i32 -> vector<4x256xf32>
      %c223_i32_108 = arith.constant 223 : i32
      %510 = tpu.dynamic_rotate %18 by %c223_i32_108 dim 1 : vector<4x256xf32>, i32 -> vector<4x256xf32>
      %511 = vector.broadcast %507 : f32 to vector<4x256xf32>
      %512 = arith.mulf %511, %509 : vector<4x256xf32>
      %513 = vector.broadcast %508 : f32 to vector<4x256xf32>
      %514 = arith.mulf %513, %510 : vector<4x256xf32>
      %515 = arith.addf %512, %514 : vector<4x256xf32>
      %cst_109 = arith.constant 0.000000e+00 : f32
      %516 = vector.broadcast %cst_109 : f32 to vector<4x256xf32>
      %517 = arith.select %29, %515, %516 : vector<4x256xi1>, vector<4x256xf32>
      %518 = arith.addf %506, %517 : vector<4x256xf32>
      %c40 = arith.constant 40 : index
      %519 = memref.load %arg3[%c40] : memref<98xf32, #tpu.memory_space<smem>>
      %c89 = arith.constant 89 : index
      %520 = memref.load %arg3[%c89] : memref<98xf32, #tpu.memory_space<smem>>
      %c222_i32 = arith.constant 222 : i32
      %521 = tpu.dynamic_rotate %17 by %c222_i32 dim 1 : vector<4x256xf32>, i32 -> vector<4x256xf32>
      %c222_i32_110 = arith.constant 222 : i32
      %522 = tpu.dynamic_rotate %18 by %c222_i32_110 dim 1 : vector<4x256xf32>, i32 -> vector<4x256xf32>
      %523 = vector.broadcast %519 : f32 to vector<4x256xf32>
      %524 = arith.mulf %523, %521 : vector<4x256xf32>
      %525 = vector.broadcast %520 : f32 to vector<4x256xf32>
      %526 = arith.mulf %525, %522 : vector<4x256xf32>
      %527 = arith.addf %524, %526 : vector<4x256xf32>
      %cst_111 = arith.constant 0.000000e+00 : f32
      %528 = vector.broadcast %cst_111 : f32 to vector<4x256xf32>
      %529 = arith.select %31, %527, %528 : vector<4x256xi1>, vector<4x256xf32>
      %530 = arith.addf %518, %529 : vector<4x256xf32>
      %c41 = arith.constant 41 : index
      %531 = memref.load %arg3[%c41] : memref<98xf32, #tpu.memory_space<smem>>
      %c90 = arith.constant 90 : index
      %532 = memref.load %arg3[%c90] : memref<98xf32, #tpu.memory_space<smem>>
      %c221_i32 = arith.constant 221 : i32
      %533 = tpu.dynamic_rotate %17 by %c221_i32 dim 1 : vector<4x256xf32>, i32 -> vector<4x256xf32>
      %c221_i32_112 = arith.constant 221 : i32
      %534 = tpu.dynamic_rotate %18 by %c221_i32_112 dim 1 : vector<4x256xf32>, i32 -> vector<4x256xf32>
      %535 = vector.broadcast %531 : f32 to vector<4x256xf32>
      %536 = arith.mulf %535, %533 : vector<4x256xf32>
      %537 = vector.broadcast %532 : f32 to vector<4x256xf32>
      %538 = arith.mulf %537, %534 : vector<4x256xf32>
      %539 = arith.addf %536, %538 : vector<4x256xf32>
      %cst_113 = arith.constant 0.000000e+00 : f32
      %540 = vector.broadcast %cst_113 : f32 to vector<4x256xf32>
      %541 = arith.select %33, %539, %540 : vector<4x256xi1>, vector<4x256xf32>
      %542 = arith.addf %530, %541 : vector<4x256xf32>
      %cst_114 = arith.constant 0.000000e+00 : f32
      %543 = vector.broadcast %cst_114 : f32 to vector<4x256xf32>
      %544 = arith.select %461, %542, %543 : vector<4x256xi1>, vector<4x256xf32>
      %545 = arith.addf %459, %544 : vector<4x256xf32>
      %c208_i32 = arith.constant 208 : i32
      %546 = vector.broadcast %c208_i32 : i32 to vector<4x256xi32>
      %547 = arith.cmpi slt, %19, %546 : vector<4x256xi32>
      %c42 = arith.constant 42 : index
      %548 = memref.load %arg3[%c42] : memref<98xf32, #tpu.memory_space<smem>>
      %c91 = arith.constant 91 : index
      %549 = memref.load %arg3[%c91] : memref<98xf32, #tpu.memory_space<smem>>
      %c211_i32 = arith.constant 211 : i32
      %550 = tpu.dynamic_rotate %17 by %c211_i32 dim 1 : vector<4x256xf32>, i32 -> vector<4x256xf32>
      %c211_i32_115 = arith.constant 211 : i32
      %551 = tpu.dynamic_rotate %18 by %c211_i32_115 dim 1 : vector<4x256xf32>, i32 -> vector<4x256xf32>
      %552 = vector.broadcast %548 : f32 to vector<4x256xf32>
      %553 = arith.mulf %552, %550 : vector<4x256xf32>
      %554 = vector.broadcast %549 : f32 to vector<4x256xf32>
      %555 = arith.mulf %554, %551 : vector<4x256xf32>
      %556 = arith.addf %553, %555 : vector<4x256xf32>
      %cst_116 = arith.constant 0.000000e+00 : f32
      %557 = vector.broadcast %cst_116 : f32 to vector<4x256xf32>
      %558 = arith.select %23, %556, %557 : vector<4x256xi1>, vector<4x256xf32>
      %c43 = arith.constant 43 : index
      %559 = memref.load %arg3[%c43] : memref<98xf32, #tpu.memory_space<smem>>
      %c92 = arith.constant 92 : index
      %560 = memref.load %arg3[%c92] : memref<98xf32, #tpu.memory_space<smem>>
      %c210_i32 = arith.constant 210 : i32
      %561 = tpu.dynamic_rotate %17 by %c210_i32 dim 1 : vector<4x256xf32>, i32 -> vector<4x256xf32>
      %c210_i32_117 = arith.constant 210 : i32
      %562 = tpu.dynamic_rotate %18 by %c210_i32_117 dim 1 : vector<4x256xf32>, i32 -> vector<4x256xf32>
      %563 = vector.broadcast %559 : f32 to vector<4x256xf32>
      %564 = arith.mulf %563, %561 : vector<4x256xf32>
      %565 = vector.broadcast %560 : f32 to vector<4x256xf32>
      %566 = arith.mulf %565, %562 : vector<4x256xf32>
      %567 = arith.addf %564, %566 : vector<4x256xf32>
      %cst_118 = arith.constant 0.000000e+00 : f32
      %568 = vector.broadcast %cst_118 : f32 to vector<4x256xf32>
      %569 = arith.select %25, %567, %568 : vector<4x256xi1>, vector<4x256xf32>
      %570 = arith.addf %558, %569 : vector<4x256xf32>
      %c44 = arith.constant 44 : index
      %571 = memref.load %arg3[%c44] : memref<98xf32, #tpu.memory_space<smem>>
      %c93 = arith.constant 93 : index
      %572 = memref.load %arg3[%c93] : memref<98xf32, #tpu.memory_space<smem>>
      %c209_i32 = arith.constant 209 : i32
      %573 = tpu.dynamic_rotate %17 by %c209_i32 dim 1 : vector<4x256xf32>, i32 -> vector<4x256xf32>
      %c209_i32_119 = arith.constant 209 : i32
      %574 = tpu.dynamic_rotate %18 by %c209_i32_119 dim 1 : vector<4x256xf32>, i32 -> vector<4x256xf32>
      %575 = vector.broadcast %571 : f32 to vector<4x256xf32>
      %576 = arith.mulf %575, %573 : vector<4x256xf32>
      %577 = vector.broadcast %572 : f32 to vector<4x256xf32>
      %578 = arith.mulf %577, %574 : vector<4x256xf32>
      %579 = arith.addf %576, %578 : vector<4x256xf32>
      %cst_120 = arith.constant 0.000000e+00 : f32
      %580 = vector.broadcast %cst_120 : f32 to vector<4x256xf32>
      %581 = arith.select %27, %579, %580 : vector<4x256xi1>, vector<4x256xf32>
      %582 = arith.addf %570, %581 : vector<4x256xf32>
      %c45 = arith.constant 45 : index
      %583 = memref.load %arg3[%c45] : memref<98xf32, #tpu.memory_space<smem>>
      %c94 = arith.constant 94 : index
      %584 = memref.load %arg3[%c94] : memref<98xf32, #tpu.memory_space<smem>>
      %c208_i32_121 = arith.constant 208 : i32
      %585 = tpu.dynamic_rotate %17 by %c208_i32_121 dim 1 : vector<4x256xf32>, i32 -> vector<4x256xf32>
      %c208_i32_122 = arith.constant 208 : i32
      %586 = tpu.dynamic_rotate %18 by %c208_i32_122 dim 1 : vector<4x256xf32>, i32 -> vector<4x256xf32>
      %587 = vector.broadcast %583 : f32 to vector<4x256xf32>
      %588 = arith.mulf %587, %585 : vector<4x256xf32>
      %589 = vector.broadcast %584 : f32 to vector<4x256xf32>
      %590 = arith.mulf %589, %586 : vector<4x256xf32>
      %591 = arith.addf %588, %590 : vector<4x256xf32>
      %592 = arith.addf %582, %591 : vector<4x256xf32>
      %c46 = arith.constant 46 : index
      %593 = memref.load %arg3[%c46] : memref<98xf32, #tpu.memory_space<smem>>
      %c95 = arith.constant 95 : index
      %594 = memref.load %arg3[%c95] : memref<98xf32, #tpu.memory_space<smem>>
      %c207_i32 = arith.constant 207 : i32
      %595 = tpu.dynamic_rotate %17 by %c207_i32 dim 1 : vector<4x256xf32>, i32 -> vector<4x256xf32>
      %c207_i32_123 = arith.constant 207 : i32
      %596 = tpu.dynamic_rotate %18 by %c207_i32_123 dim 1 : vector<4x256xf32>, i32 -> vector<4x256xf32>
      %597 = vector.broadcast %593 : f32 to vector<4x256xf32>
      %598 = arith.mulf %597, %595 : vector<4x256xf32>
      %599 = vector.broadcast %594 : f32 to vector<4x256xf32>
      %600 = arith.mulf %599, %596 : vector<4x256xf32>
      %601 = arith.addf %598, %600 : vector<4x256xf32>
      %cst_124 = arith.constant 0.000000e+00 : f32
      %602 = vector.broadcast %cst_124 : f32 to vector<4x256xf32>
      %603 = arith.select %29, %601, %602 : vector<4x256xi1>, vector<4x256xf32>
      %604 = arith.addf %592, %603 : vector<4x256xf32>
      %c47 = arith.constant 47 : index
      %605 = memref.load %arg3[%c47] : memref<98xf32, #tpu.memory_space<smem>>
      %c96 = arith.constant 96 : index
      %606 = memref.load %arg3[%c96] : memref<98xf32, #tpu.memory_space<smem>>
      %c206_i32 = arith.constant 206 : i32
      %607 = tpu.dynamic_rotate %17 by %c206_i32 dim 1 : vector<4x256xf32>, i32 -> vector<4x256xf32>
      %c206_i32_125 = arith.constant 206 : i32
      %608 = tpu.dynamic_rotate %18 by %c206_i32_125 dim 1 : vector<4x256xf32>, i32 -> vector<4x256xf32>
      %609 = vector.broadcast %605 : f32 to vector<4x256xf32>
      %610 = arith.mulf %609, %607 : vector<4x256xf32>
      %611 = vector.broadcast %606 : f32 to vector<4x256xf32>
      %612 = arith.mulf %611, %608 : vector<4x256xf32>
      %613 = arith.addf %610, %612 : vector<4x256xf32>
      %cst_126 = arith.constant 0.000000e+00 : f32
      %614 = vector.broadcast %cst_126 : f32 to vector<4x256xf32>
      %615 = arith.select %31, %613, %614 : vector<4x256xi1>, vector<4x256xf32>
      %616 = arith.addf %604, %615 : vector<4x256xf32>
      %c48 = arith.constant 48 : index
      %617 = memref.load %arg3[%c48] : memref<98xf32, #tpu.memory_space<smem>>
      %c97 = arith.constant 97 : index
      %618 = memref.load %arg3[%c97] : memref<98xf32, #tpu.memory_space<smem>>
      %c205_i32 = arith.constant 205 : i32
      %619 = tpu.dynamic_rotate %17 by %c205_i32 dim 1 : vector<4x256xf32>, i32 -> vector<4x256xf32>
      %c205_i32_127 = arith.constant 205 : i32
      %620 = tpu.dynamic_rotate %18 by %c205_i32_127 dim 1 : vector<4x256xf32>, i32 -> vector<4x256xf32>
      %621 = vector.broadcast %617 : f32 to vector<4x256xf32>
      %622 = arith.mulf %621, %619 : vector<4x256xf32>
      %623 = vector.broadcast %618 : f32 to vector<4x256xf32>
      %624 = arith.mulf %623, %620 : vector<4x256xf32>
      %625 = arith.addf %622, %624 : vector<4x256xf32>
      %cst_128 = arith.constant 0.000000e+00 : f32
      %626 = vector.broadcast %cst_128 : f32 to vector<4x256xf32>
      %627 = arith.select %33, %625, %626 : vector<4x256xi1>, vector<4x256xf32>
      %628 = arith.addf %616, %627 : vector<4x256xf32>
      %cst_129 = arith.constant 0.000000e+00 : f32
      %629 = vector.broadcast %cst_129 : f32 to vector<4x256xf32>
      %630 = arith.select %547, %628, %629 : vector<4x256xi1>, vector<4x256xf32>
      %631 = arith.addf %545, %630 : vector<4x256xf32>
      %cst_130 = arith.constant 5.000000e-01 : f32
      %632 = vector.broadcast %cst_130 : f32 to vector<4x256xf32>
      %633 = arith.mulf %632, %631 : vector<4x256xf32>
      %634 = math.tanh %633 : vector<4x256xf32>
      %cst_131 = arith.constant 1.000000e+00 : f32
      %635 = vector.broadcast %cst_131 : f32 to vector<4x256xf32>
      %636 = arith.addf %634, %635 : vector<4x256xf32>
      %cst_132 = arith.constant 5.000000e-01 : f32
      %637 = vector.broadcast %cst_132 : f32 to vector<4x256xf32>
      %638 = arith.mulf %637, %636 : vector<4x256xf32>
      %c0_133 = arith.constant 0 : index
      %c0_134 = arith.constant 0 : index
      %639 = vector.load %arg5[%c0_133, %c0_134] : memref<4x256xf32, #tpu.memory_space<vmem>>, vector<4x256xf32>
      tpu.vector_store %arg5[%c0_133, %c0_134], %638 {strides = array<i32>} : memref<4x256xf32, #tpu.memory_space<vmem>>, vector<4x256xf32>,
    } else {
    }
    return
  }
  func.func @transform_0(%arg0: i32, %arg1: i32) -> (i32, i32, i32) {
    %c0_i32 = arith.constant 0 : i32
    %c0_i32_0 = arith.constant 0 : i32
    return %arg0, %arg1, %c0_i32 : i32, i32, i32
  }
  func.func @transform_1(%arg0: i32, %arg1: i32) -> i32 {
    %c0_i32 = arith.constant 0 : i32
    %c0_i32_0 = arith.constant 0 : i32
    return %c0_i32 : i32
  }
  func.func @transform_2(%arg0: i32, %arg1: i32) -> i32 {
    %c0_i32 = arith.constant 0 : i32
    %c0_i32_0 = arith.constant 0 : i32
    return %c0_i32 : i32
  }
  func.func @transform_3(%arg0: i32, %arg1: i32) -> (i32, i32) {
    %c0_i32 = arith.constant 0 : i32
    %c0_i32_0 = arith.constant 0 : i32
    return %arg0, %c0_i32 : i32, i32
  }
}

</mosaic_0001>

<bundles_post_ra>
// kernel: tpu_custom_call.1
= control target key start
LH: loop header
LB: loop body
LE: loop exit
PB: predicated region body
PF: predicated region fallthrough
CT: control target
= control target key end

     0   :  { %9 = vsyncpa [#allocation6], 0  ;;  %s3588_s0 = inlined_call_operand.hbm [shape: f32[4,4,256], index: 0, kind: input, shape index: {}]   ;;  %s3589_s1 = inlined_call_operand.vmem [shape: f32[98], index: 1, kind: input, shape index: {}]   ;;  %s3590_s2 = inlined_call_operand.<no memory space> [shape: f32[1], index: 2, kind: input, shape index: {}]   ;;  %s3591_s3 = inlined_call_operand.hbm [shape: f32[4,256], index: 3, kind: output, shape index: {}]  }
   0x1   :  { %10 = vsyncpa [#allocation8], 0 }
   0x2   :  { %11 = vsyncpa [#allocation7], 0  ;;  %s16_s14 = sshll.u32 %s3588_s0, 4  ;;  %s2364_s15 = smov [#allocation5]   ;;  %s17_s14 = int_to_ptr.hbm [resolvable:$true] %s16_s14 }
   0x3   :  { %s18_s16 = sshll.u32 %s2364_s15, 4  ;;  %s30_s19 = sshll.u32 %s3589_s1, 4  ;;  %s19_s16 = int_to_ptr.vmem [resolvable:$true] %s18_s16  ;;  %s31_s19 = int_to_ptr.vmem [resolvable:$true] %s30_s19 }
   0x4   :  { %s2365_s20 = smov 128   ;;  %s2366_s21 = smov 8  }
   0x5   :  { %24 = dma.hbm_to_vmem [thread:$0]  %s17_s14, 512, %s19_s16, [#allocation6], %s2365_s20, %s2365_s20, %s2366_s21  }
   0x6   :  { %s2367_s22 = smov [#allocation9]  }
   0x7   :  { %33 = dma.vmem_to_smem %s31_s19, 16, %s2367_s22, [#allocation8]  }
   0x8   :  { %2358 = dma.done.wait [#allocation6], 512  }
   0x9   :  { %2359 = vsyncadd [#allocation6], 4294966784 }
   0xa   :  { %2360 = dma.done.wait [#allocation8], 16  }
   0xb   :  { %2361 = vsyncadd [#allocation8], 4294967280 }
   0xc   :  { %44 = sfence }
   0xd   :  { %v51_v0 = vld [vmem:[#allocation5] sm:$0xff]  ;;  %v52_v1 = vld [vmem:[#allocation5 + $0x8] sm:$0xff]  ;;  %v53_v2 = vld [vmem:[#allocation5 + $0x10] sm:$0xff]  ;;  %vm3592_vm0 = vcmask 1043456   ;;  %vm157_vm1 = vcmask 1041409   ;;  %vm159_vm2 = vcmask 1045509  }
   0xe   :  { %v54_v3 = vld [vmem:[#allocation5 + $0x18] sm:$0xff]  ;;  %60 = vst [vmem:[#allocation1] ss:$2 sm:$0xff] %v51_v0  ;;  %vm162_vm3 = vcmask 1042434   ;;  %vm164_vm4 = vcmask 1046534   ;;  %vm167_vm5 = vcmask 1043459  }
   0xf   :  { %64 = vst [vmem:[#allocation1 + $0x10] ss:$2 sm:$0xff] %v52_v1  ;;  %vm169_vm6 = vcmask 1047559   ;;  %s2368_s0 = smov 51   ;;  %s2369_s1 = smov 50  }
  0x10   :  { %68 = vst [vmem:[#allocation1 + $0x20] ss:$2 sm:$0xff] %v53_v2  ;;  %s2370_s23 = smov 49   ;;  %s2371_s24 = smov 48  }
  0x11   :  { %72 = vst [vmem:[#allocation1 + $0x30] ss:$2 sm:$0xff] %v54_v3  ;;  %s2372_s25 = smov 47   ;;  %s2373_s26 = smov 46  }
  0x12   :  { %s2374_s27 = smov 45   ;;  %s2375_s28 = smov 35  }
  0x13   :  { %s2376_s29 = smov 34   ;;  %s2377_s30 = smov 33  }
  0x14   :  { %s2378_s4 = smov 32   ;;  %s2379_s5 = smov 31  }
  0x15   :  { %v61_v4 = vld.sshfl [vmem:[#allocation1] sm:$0xff pattern:$0x75316420]  ;;  %v62_v5 = vld.sshfl [vmem:[#allocation1 + $0x8] sm:$0xff pattern:$0x75316420] }
  0x16   :  { %v65_v6 = vld.sshfl [vmem:[#allocation1 + $0x10] sm:$0xff pattern:$0x75316420]  ;;  %v66_v7 = vld.sshfl [vmem:[#allocation1 + $0x18] sm:$0xff pattern:$0x75316420] }
  0x17   :  { %v69_v8 = vld.sshfl [vmem:[#allocation1 + $0x20] sm:$0xff pattern:$0x75316420]  ;;  %v70_v9 = vld.sshfl [vmem:[#allocation1 + $0x28] sm:$0xff pattern:$0x75316420] }
  0x18   :  { %v73_v10 = vld.sshfl [vmem:[#allocation1 + $0x30] sm:$0xff pattern:$0x75316420]  ;;  %v74_v11 = vld.sshfl [vmem:[#allocation1 + $0x38] sm:$0xff pattern:$0x75316420] }
  0x19   :  { %v84_v12 = vsel %vm3592_vm0, %v61_v4, 0.0  ;;  %v91_v13 = vsel %vm3592_vm0, %v62_v5, 0.0  ;;  %v98_v14 = vsel %vm3592_vm0, %v65_v6, 0.0  ;;  %v105_v15 = vsel %vm3592_vm0, %v66_v7, 0.0  ;;  %175 = vst [vmem:[#allocation1] ss:$2 sm:$0xff] %v51_v0 }
  0x1a   :  { %v85_v16 = vrot.slane %v84_v12, 4  ;;  %v92_v17 = vrot.slane %v91_v13, 4  ;;  %v99_v18 = vrot.slane %v98_v14, 4  ;;  %v106_v19 = vrot.slane %v105_v15, 4  ;;  %179 = vst [vmem:[#allocation1 + $0x10] ss:$2 sm:$0xff] %v52_v1 }
  0x1b   :  { %v112_v20 = vsel %vm3592_vm0, %v69_v8, 0.0  ;;  %v119_v21 = vsel %vm3592_vm0, %v70_v9, 0.0  ;;  %v126_v22 = vsel %vm3592_vm0, %v73_v10, 0.0  ;;  %v133_v23 = vsel %vm3592_vm0, %v74_v11, 0.0  ;;  %183 = vst [vmem:[#allocation1 + $0x20] ss:$2 sm:$0xff] %v53_v2 }
  0x1c   :  { %v86_v24 = vadd.f32 %v85_v16, %v84_v12  ;;  %v93_v25 = vadd.f32 %v92_v17, %v91_v13  ;;  %v100_v26 = vadd.f32 %v99_v18, %v98_v14  ;;  %v107_v27 = vadd.f32 %v106_v19, %v105_v15  ;;  %187 = vst [vmem:[#allocation1 + $0x30] ss:$2 sm:$0xff] %v54_v3  ;;  %s2380_s6 = smov 30   ;;  %s2381_s7 = smov 29  }
  0x1d   :  { %v113_v28 = vrot.slane %v112_v20, 4  ;;  %v120_v29 = vrot.slane %v119_v21, 4  ;;  %v127_v30 = vrot.slane %v126_v22, 4  ;;  %v134_v31 = vrot.slane %v133_v23, 4  ;;  %s2382_s8 = smov 19   ;;  %s2383_s9 = smov 18  }
  0x1e   :  { %v87_v32 = vrot.slane %v86_v24, 2  ;;  %v94_v33 = vrot.slane %v93_v25, 2  ;;  %v101_v34 = vrot.slane %v100_v26, 2  ;;  %v108_v35 = vrot.slane %v107_v27, 2  ;;  %s2384_s10 = smov 17   ;;  %s2385_s11 = smov 16  }
  0x1f   :  { %v114_v36 = vadd.f32 %v113_v28, %v112_v20  ;;  %v121_v37 = vadd.f32 %v120_v29, %v119_v21  ;;  %v128_v38 = vadd.f32 %v127_v30, %v126_v22  ;;  %v135_v39 = vadd.f32 %v134_v31, %v133_v23  ;;  %s2576_s12 = sld [smem:[#allocation9 + $0x7]]  ;;  %s2386_s13 = smov 15  }
  0x20   :  { %v88_v40 = vadd.f32 %v87_v32, %v86_v24  ;;  %v95_v41 = vadd.f32 %v94_v33, %v93_v25  ;;  %v102_v42 = vadd.f32 %v101_v34, %v100_v26  ;;  %v109_v43 = vadd.f32 %v108_v35, %v107_v27  ;;  %v176_v56 = vld.sshfl [vmem:[#allocation1] sm:$0xff pattern:$0x75316420]  ;;  %v177_v61 = vld.sshfl [vmem:[#allocation1 + $0x8] sm:$0xff pattern:$0x75316420] }
  0x21   :  { %v115_v44 = vrot.slane %v114_v36, 2  ;;  %v122_v45 = vrot.slane %v121_v37, 2  ;;  %v129_v46 = vrot.slane %v128_v38, 2  ;;  %v136_v47 = vrot.slane %v135_v39, 2  ;;  %s2585_s14 = sld [smem:[#allocation9 + $0x38]]  ;;  %s2387_s21 = smov 14  }
  0x22   :  { %v89_v48 = vrot.slane %v88_v40, 1  ;;  %v96_v49 = vrot.slane %v95_v41, 1  ;;  %v103_v50 = vrot.slane %v102_v42, 1  ;;  %v110_v51 = vrot.slane %v109_v43, 1  ;;  %s2587_s15 = sld [smem:[#allocation9 + $0x8]] }
  0x23   :  { %v116_v52 = vadd.f32 %v115_v44, %v114_v36  ;;  %v123_v53 = vadd.f32 %v122_v45, %v121_v37  ;;  %v130_v54 = vadd.f32 %v129_v46, %v128_v38  ;;  %v137_v55 = vadd.f32 %v136_v47, %v135_v39  ;;  %v180_v4 = vld.sshfl [vmem:[#allocation1 + $0x10] sm:$0xff pattern:$0x75316420]  ;;  %v181_v10 = vld.sshfl [vmem:[#allocation1 + $0x18] sm:$0xff pattern:$0x75316420] }
  0x24   :  { %v90_v57 = vadd.f32 %v89_v48, %v88_v40  ;;  %v97_v58 = vadd.f32 %v96_v49, %v95_v41  ;;  %v104_v59 = vadd.f32 %v103_v50, %v102_v42  ;;  %v111_v60 = vadd.f32 %v110_v51, %v109_v43  ;;  %v184_v11 = vld.sshfl [vmem:[#allocation1 + $0x20] sm:$0xff pattern:$0x75316420]  ;;  %v185_v27 = vld.sshfl [vmem:[#allocation1 + $0x28] sm:$0xff pattern:$0x75316420] }
  0x25   :  { %v117_v62 = vrot.slane %v116_v52, 1  ;;  %v124_v63 = vrot.slane %v123_v53, 1  ;;  %v131_v0 = vrot.slane %v130_v54, 1  ;;  %v138_v1 = vrot.slane %v137_v55, 1  ;;  %s2589_s16 = sld [smem:[#allocation9 + $0x39]] }
  0x26   :  { %v148_v2 = vrot.slane %v97_v58, 4  ;;  %v149_v3 = vrot.slane %v111_v60, 4  ;;  %v198_v5 = vsel %vm3592_vm0, %v176_v56, -inf  ;;  %v205_v15 = vsel %vm3592_vm0, %v177_v61, -inf  ;;  %s2623_s17 = sld [smem:[#allocation9 + $0x9]] }
  0x27   :  { %v118_v6 = vadd.f32 %v117_v62, %v116_v52  ;;  %v125_v7 = vadd.f32 %v124_v63, %v123_v53  ;;  %v132_v8 = vadd.f32 %v131_v0, %v130_v54  ;;  %v139_v9 = vadd.f32 %v138_v1, %v137_v55  ;;  %v188_v32 = vld.sshfl [vmem:[#allocation1 + $0x30] sm:$0xff pattern:$0x75316420]  ;;  %v189_v50 = vld.sshfl [vmem:[#allocation1 + $0x38] sm:$0xff pattern:$0x75316420] }
  0x28   :  { %v152_v12 = vsel %vm3592_vm0, %v90_v57, %v148_v2  ;;  %v153_v13 = vsel %vm3592_vm0, %v104_v59, %v149_v3  ;;  %v199_v14 = vrot.slane %v198_v5, 4  ;;  %v206_v19 = vrot.slane %v205_v15, 4  ;;  %s2631_s18 = sld [smem:[#allocation9 + $0x3a]] }
  0x29   :  { %v150_v16 = vrot.slane %v125_v7, 4  ;;  %v151_v17 = vrot.slane %v139_v9, 4  ;;  %v156_v18 = vrot.slane %v153_v13, 7  ;;  %v212_v21 = vsel %vm3592_vm0, %v180_v4, -inf  ;;  %s2633_s19 = sld [smem:[#allocation9 + $0xa]] }
  0x2a   :  { %v200_v20 = vmax.f32 %v198_v5, %v199_v14  ;;  %v219_v22 = vsel %vm3592_vm0, %v181_v10, -inf  ;;  %v226_v23 = vsel %vm3592_vm0, %v184_v11, -inf  ;;  %v207_v28 = vmax.f32 %v205_v15, %v206_v19  ;;  %s2635_s20 = sld [smem:[#allocation9 + $0xb]] }
  0x2b   :  { %v154_v24 = vsel %vm3592_vm0, %v118_v6, %v150_v16  ;;  %v155_v25 = vsel %vm3592_vm0, %v132_v8, %v151_v17  ;;  %v158_v26 = vsel %vm157_vm1, %v156_v18, %v152_v12  ;;  %v213_v35 = vrot.slane %v212_v21, 4  ;;  %s2640_s22 = sld [smem:[#allocation9 + $0x3c]] }
  0x2c   :  { %v160_v29 = vsel %vm159_vm2, %v156_v18, %v158_v26  ;;  %v161_v30 = vrot.slane %v154_v24, 6  ;;  %v166_v31 = vrot.slane %v155_v25, 5  ;;  %v201_v33 = vrot.slane %v200_v20, 2 }
  0x2d   :  { %v208_v34 = vrot.slane %v207_v28, 2  ;;  %v220_v36 = vrot.slane %v219_v22, 4  ;;  %v227_v37 = vrot.slane %v226_v23, 4  ;;  %v233_v40 = vsel %vm3592_vm0, %v185_v27, -inf }
  0x2e   :  { %v163_v38 = vsel %vm162_vm3, %v161_v30, %v160_v29  ;;  %v202_v39 = vmax.f32 %v200_v20, %v201_v33  ;;  %v214_v43 = vmax.f32 %v212_v21, %v213_v35  ;;  %v234_v47 = vrot.slane %v233_v40, 4 }
  0x2f   :  { %v165_v41 = vsel %vm164_vm4, %v161_v30, %v163_v38  ;;  %v209_v42 = vmax.f32 %v207_v28, %v208_v34  ;;  %v221_v44 = vmax.f32 %v219_v22, %v220_v36  ;;  %v228_v46 = vmax.f32 %v226_v23, %v227_v37 }
  0x30   :  { %v168_v45 = vsel %vm167_vm5, %v166_v31, %v165_v41  ;;  %v240_v48 = vsel %vm3592_vm0, %v188_v32, -inf  ;;  %v215_v52 = vrot.slane %v214_v43, 2  ;;  %v203_v55 = vrot.slane %v202_v39, 1 }
  0x31   :  { %v170_v49 = vsel %vm169_vm6, %v166_v31, %v168_v45  ;;  %v210_v51 = vrot.slane %v209_v42, 1  ;;  %v222_v53 = vrot.slane %v221_v44, 2  ;;  %v229_v56 = vrot.slane %v228_v46, 2 }
  0x32   :  { %v2468_v54 = vmul.f32 0.25, %v170_v49  ;;  %v235_v57 = vmax.f32 %v233_v40, %v234_v47  ;;  %v216_v59 = vmax.f32 %v214_v43, %v215_v52  ;;  %v241_v61 = vrot.slane %v240_v48, 4 }
  0x33   :  { %v211_v58 = vmax.f32 %v209_v42, %v210_v51  ;;  %v223_v60 = vmax.f32 %v221_v44, %v222_v53  ;;  %v230_v62 = vmax.f32 %v228_v46, %v229_v56  ;;  %v247_v0 = vsel %vm3592_vm0, %v189_v50, -inf }
  0x34   :  { %312 = vst [vmem:[#allocation1] ss:$2 sm:$0xff] %v2468_v54  ;;  %v236_v63 = vrot.slane %v235_v57, 2  ;;  %v217_v1 = vrot.slane %v216_v59, 1  ;;  %v242_v3 = vmax.f32 %v240_v48, %v241_v61  ;;  %v248_v4 = vrot.slane %v247_v0, 4 }
  0x35   :  { %v224_v2 = vrot.slane %v223_v60, 1  ;;  %v204_v5 = vmax.f32 %v202_v39, %v203_v55  ;;  %v231_v6 = vrot.slane %v230_v62, 1  ;;  %v262_v8 = vrot.slane %v211_v58, 4 }
  0x36   :  { %v237_v7 = vmax.f32 %v235_v57, %v236_v63  ;;  %v218_v9 = vmax.f32 %v216_v59, %v217_v1  ;;  %v243_v11 = vrot.slane %v242_v3, 2  ;;  %v249_v12 = vmax.f32 %v247_v0, %v248_v4 }
  0x37   :  { %v225_v10 = vmax.f32 %v223_v60, %v224_v2  ;;  %v232_v17 = vmax.f32 %v230_v62, %v231_v6  ;;  %v266_v21 = vsel %vm3592_vm0, %v204_v5, %v262_v8 }
  0x38   :  { %v238_v13 = vrot.slane %v237_v7, 1  ;;  %v244_v14 = vmax.f32 %v242_v3, %v243_v11  ;;  %v250_v15 = vrot.slane %v249_v12, 2 }
  0x39   :  { %v263_v16 = vrot.slane %v225_v10, 4 }
  0x3a   :  { %v239_v18 = vmax.f32 %v237_v7, %v238_v13  ;;  %v251_v20 = vmax.f32 %v249_v12, %v250_v15  ;;  %v245_v23 = vrot.slane %v244_v14, 1 }
  0x3b   :  { %v313_v19 = vld.sshfl [vmem:[#allocation1] sm:$0xff pattern:$0x75316420]  ;;  %v267_v22 = vsel %vm3592_vm0, %v218_v9, %v263_v16  ;;  %v314_v35 = vld.sshfl [vmem:[#allocation1 + $0x8] sm:$0xff pattern:$0x75316420] }
  0x3c   :  { %317 = vrot.lane.b32.xlu0 %v313_v19, %s2368_s0  ;;  %v264_v24 = vrot.slane %v239_v18, 4  ;;  %v270_v25 = vrot.slane %v267_v22, 7  ;;  %v252_v26 = vrot.slane %v251_v20, 1  ;;  %v246_v29 = vmax.f32 %v244_v14, %v245_v23 }
  0x3e   :  { %v268_v27 = vsel %vm3592_vm0, %v232_v17, %v264_v24  ;;  %v271_v28 = vsel %vm157_vm1, %v270_v25, %v266_v21  ;;  %v253_v30 = vmax.f32 %v251_v20, %v252_v26 }
  0x3f   :  { %v272_v31 = vsel %vm159_vm2, %v270_v25, %v271_v28  ;;  %v273_v32 = vrot.slane %v268_v27, 6 }
  0x40   :  { %v265_v33 = vrot.slane %v253_v30, 4 }
  0x41   :  { %v274_v34 = vsel %vm162_vm3, %v273_v32, %v272_v31 }
  0x42   :  { %v269_v36 = vsel %vm3592_vm0, %v246_v29, %v265_v33  ;;  %v275_v37 = vsel %vm164_vm4, %v273_v32, %v274_v34 }
  0x43   :  { %v276_v38 = vrot.slane %v269_v36, 5 }
  0x44   :  { %319 = vrot.lane.b32.xlu0 %v314_v35, %s2368_s0 }
  0x45   :  { %v277_v39 = vsel %vm167_vm5, %v276_v38, %v275_v37 }
  0x46   :  { %v2482_v40 = vsel %vm169_vm6, %v276_v38, %v277_v39 }
  0x47   :  { %325 = vst [vmem:[#allocation1] ss:$2 sm:$0xff] %v2482_v40 }
  0x4e   :  { %v326_v41 = vld.sshfl [vmem:[#allocation1] sm:$0xff pattern:$0x75316420]  ;;  %v327_v42 = vld.sshfl [vmem:[#allocation1 + $0x8] sm:$0xff pattern:$0x75316420] }
  0x4f   :  { %330 = vrot.lane.b32.xlu1 %v326_v41, %s2368_s0  ;;  %348 = vst [vmem:[#allocation1] ss:$2 sm:$0xff] %v2468_v54 }
  0x56   :  { %v349_v43 = vld.sshfl [vmem:[#allocation1] sm:$0xff pattern:$0x75316420]  ;;  %v350_v44 = vld.sshfl [vmem:[#allocation1 + $0x8] sm:$0xff pattern:$0x75316420] }
  0x57   :  { %332 = vrot.lane.b32.xlu1 %v327_v42, %s2368_s0  ;;  %360 = vst [vmem:[#allocation1] ss:$2 sm:$0xff] %v2482_v40  ;;  %353 = vrot.lane.b32.xlu2 %v349_v43, %s2369_s1  ;;  %s2643_s0 = sld [smem:[#allocation9 + $0x3b]] }
  0x5e   :  { %v362_v45 = vld.sshfl [vmem:[#allocation1 + $0x8] sm:$0xff pattern:$0x75316420]  ;;  %v361_v46 = vld.sshfl [vmem:[#allocation1] sm:$0xff pattern:$0x75316420] }
  0x5f   :  { %367 = vrot.lane.b32.xlu1 %v362_v45, %s2369_s1  ;;  %365 = vrot.lane.b32.xlu0 %v361_v46, %s2369_s1  ;;  %385 = vst [vmem:[#allocation1] ss:$2 sm:$0xff] %v2468_v54 }
  0x60   :  { %355 = vrot.lane.b32.xlu2 %v350_v44, %s2369_s1  ;;  %s2703_s1 = sld [smem:[#allocation9 + $0xc]] }
  0x66   :  { %v387_v47 = vld.sshfl [vmem:[#allocation1 + $0x8] sm:$0xff pattern:$0x75316420]  ;;  %v386_v48 = vld.sshfl [vmem:[#allocation1] sm:$0xff pattern:$0x75316420] }
  0x67   :  { %392 = vrot.lane.b32.xlu0 %v387_v47, %s2370_s23  ;;  %397 = vst [vmem:[#allocation1] ss:$2 sm:$0xff] %v2482_v40 }
  0x68   :  { %390 = vrot.lane.b32.xlu2 %v386_v48, %s2370_s23 }
  0x6e   :  { %v398_v49 = vld.sshfl [vmem:[#allocation1] sm:$0xff pattern:$0x75316420]  ;;  %v399_v50 = vld.sshfl [vmem:[#allocation1 + $0x8] sm:$0xff pattern:$0x75316420] }
  0x6f   :  { %402 = vrot.lane.b32.xlu1 %v398_v49, %s2370_s23  ;;  %422 = vst [vmem:[#allocation1] ss:$2 sm:$0xff] %v2468_v54 }
  0x70   :  { %404 = vrot.lane.b32.xlu2 %v399_v50, %s2370_s23  ;;  %s2707_s23 = sld [smem:[#allocation9 + $0x3d]] }
  0x76   :  { %v424_v51 = vld.sshfl [vmem:[#allocation1 + $0x8] sm:$0xff pattern:$0x75316420]  ;;  %v423_v52 = vld.sshfl [vmem:[#allocation1] sm:$0xff pattern:$0x75316420] }
  0x77   :  { %429 = vrot.lane.b32.xlu1 %v424_v51, %s2371_s24  ;;  %427 = vrot.lane.b32.xlu0 %v423_v52, %s2371_s24  ;;  %434 = vst [vmem:[#allocation1] ss:$2 sm:$0xff] %v2482_v40 }
  0x7e   :  { %v436_v53 = vld.sshfl [vmem:[#allocation1 + $0x8] sm:$0xff pattern:$0x75316420]  ;;  %v435_v55 = vld.sshfl [vmem:[#allocation1] sm:$0xff pattern:$0x75316420] }
  0x7f   :  { %441 = vrot.lane.b32.xlu0 %v436_v53, %s2371_s24  ;;  %457 = vst [vmem:[#allocation1] ss:$2 sm:$0xff] %v2468_v54  ;;  %439 = vrot.lane.b32.xlu2 %v435_v55, %s2371_s24  ;;  %s2388_s24 = smov 13  }
  0x86   :  { %v458_v56 = vld.sshfl [vmem:[#allocation1] sm:$0xff pattern:$0x75316420]  ;;  %v459_v57 = vld.sshfl [vmem:[#allocation1 + $0x8] sm:$0xff pattern:$0x75316420] }
  0x87   :  { %462 = vrot.lane.b32.xlu1 %v458_v56, %s2372_s25  ;;  %469 = vst [vmem:[#allocation1] ss:$2 sm:$0xff] %v2482_v40  ;;  %464 = vrot.lane.b32.xlu2 %v459_v57, %s2372_s25 }
  0x8e   :  { %v471_v58 = vld.sshfl [vmem:[#allocation1 + $0x8] sm:$0xff pattern:$0x75316420]  ;;  %v470_v59 = vld.sshfl [vmem:[#allocation1] sm:$0xff pattern:$0x75316420] }
  0x8f   :  { %476 = vrot.lane.b32.xlu1 %v471_v58, %s2372_s25  ;;  %474 = vrot.lane.b32.xlu0 %v470_v59, %s2372_s25  ;;  %494 = vst [vmem:[#allocation1] ss:$2 sm:$0xff] %v2468_v54  ;;  %s2721_s25 = sld [smem:[#allocation9 + $0xd]] }
  0x96   :  { %v496_v60 = vld.sshfl [vmem:[#allocation1 + $0x8] sm:$0xff pattern:$0x75316420]  ;;  %v495_v61 = vld.sshfl [vmem:[#allocation1] sm:$0xff pattern:$0x75316420] }
  0x97   :  { %501 = vrot.lane.b32.xlu0 %v496_v60, %s2373_s26  ;;  %506 = vst [vmem:[#allocation1] ss:$2 sm:$0xff] %v2482_v40  ;;  %499 = vrot.lane.b32.xlu2 %v495_v61, %s2373_s26 }
  0x9e   :  { %v507_v62 = vld.sshfl [vmem:[#allocation1] sm:$0xff pattern:$0x75316420]  ;;  %v508_v63 = vld.sshfl [vmem:[#allocation1 + $0x8] sm:$0xff pattern:$0x75316420] }
  0x9f   :  { %511 = vrot.lane.b32.xlu1 %v507_v62, %s2373_s26  ;;  %531 = vst [vmem:[#allocation1] ss:$2 sm:$0xff] %v2468_v54  ;;  %513 = vrot.lane.b32.xlu2 %v508_v63, %s2373_s26  ;;  %s2730_s26 = sld [smem:[#allocation9 + $0x3e]] }
  0xa6   :  { %v533_v0 = vld.sshfl [vmem:[#allocation1 + $0x8] sm:$0xff pattern:$0x75316420]  ;;  %v532_v1 = vld.sshfl [vmem:[#allocation1] sm:$0xff pattern:$0x75316420] }
  0xa7   :  { %538 = vrot.lane.b32.xlu1 %v533_v0, %s2374_s27  ;;  %536 = vrot.lane.b32.xlu0 %v532_v1, %s2374_s27  ;;  %543 = vst [vmem:[#allocation1] ss:$2 sm:$0xff] %v2482_v40 }
  0xae   :  { %v545_v2 = vld.sshfl [vmem:[#allocation1 + $0x8] sm:$0xff pattern:$0x75316420]  ;;  %v544_v3 = vld.sshfl [vmem:[#allocation1] sm:$0xff pattern:$0x75316420]  ;;  %v2505_v18 = vpop.permute.xlu0 %317 }
  0xaf   :  { %550 = vrot.lane.b32.xlu0 %v545_v2, %s2374_s27  ;;  %574 = vst [vmem:[#allocation1] ss:$2 sm:$0xff] %v2468_v54  ;;  %548 = vrot.lane.b32.xlu2 %v544_v3, %s2374_s27  ;;  %s2747_s27 = sld [smem:[#allocation9 + $0xe]] }
  0xb1   :  { %v2507_v19 = vpop.permute.xlu2 %353 }
  0xb6   :  { %v575_v4 = vld.sshfl [vmem:[#allocation1] sm:$0xff pattern:$0x75316420]  ;;  %v576_v5 = vld.sshfl [vmem:[#allocation1 + $0x8] sm:$0xff pattern:$0x75316420]  ;;  %v2513_v25 = vpop.permute.xlu0 %319 }
  0xb7   :  { %579 = vrot.lane.b32.xlu1 %v575_v4, %s2375_s28  ;;  %586 = vst [vmem:[#allocation1] ss:$2 sm:$0xff] %v2482_v40  ;;  %581 = vrot.lane.b32.xlu2 %v576_v5, %s2375_s28 }
  0xba   :  { %v2515_v26 = vpop.permute.xlu2 %355 }
  0xbe   :  { %v588_v6 = vld.sshfl [vmem:[#allocation1 + $0x8] sm:$0xff pattern:$0x75316420]  ;;  %v587_v7 = vld.sshfl [vmem:[#allocation1] sm:$0xff pattern:$0x75316420] }
  0xbf   :  { %593 = vrot.lane.b32.xlu1 %v588_v6, %s2375_s28  ;;  %591 = vrot.lane.b32.xlu0 %v587_v7, %s2375_s28  ;;  %609 = vst [vmem:[#allocation1] ss:$2 sm:$0xff] %v2468_v54  ;;  %s2389_s28 = smov 3  }
  0xc1   :  { %v2509_v22 = vpop.permute.xlu1 %330 }
  0xc2   :  { %v2522_v31 = vpop.permute.xlu2 %390 }
  0xc6   :  { %v611_v8 = vld.sshfl [vmem:[#allocation1 + $0x8] sm:$0xff pattern:$0x75316420]  ;;  %v610_v9 = vld.sshfl [vmem:[#allocation1] sm:$0xff pattern:$0x75316420] }
  0xc7   :  { %616 = vrot.lane.b32.xlu0 %v611_v8, %s2376_s29  ;;  %621 = vst [vmem:[#allocation1] ss:$2 sm:$0xff] %v2482_v40  ;;  %614 = vrot.lane.b32.xlu2 %v610_v9, %s2376_s29 }
  0xc9   :  { %v2517_v27 = vpop.permute.xlu1 %332 }
  0xca   :  { %v2529_v36 = vpop.permute.xlu2 %404 }
  0xce   :  { %v622_v10 = vld.sshfl [vmem:[#allocation1] sm:$0xff pattern:$0x75316420]  ;;  %v623_v11 = vld.sshfl [vmem:[#allocation1 + $0x8] sm:$0xff pattern:$0x75316420] }
  0xcf   :  { %626 = vrot.lane.b32.xlu1 %v622_v10, %s2376_s29  ;;  %646 = vst [vmem:[#allocation1] ss:$2 sm:$0xff] %v2468_v54  ;;  %628 = vrot.lane.b32.xlu2 %v623_v11, %s2376_s29  ;;  %s2751_s29 = sld [smem:[#allocation9 + $0x3f]] }
  0xd1   :  { %v2520_v30 = vpop.permute.xlu0 %365  ;;  %v2524_v32 = vpop.permute.xlu1 %367 }
  0xd6   :  { %v648_v12 = vld.sshfl [vmem:[#allocation1 + $0x8] sm:$0xff pattern:$0x75316420]  ;;  %v647_v13 = vld.sshfl [vmem:[#allocation1] sm:$0xff pattern:$0x75316420] }
  0xd7   :  { %653 = vrot.lane.b32.xlu1 %v648_v12, %s2377_s30  ;;  %651 = vrot.lane.b32.xlu0 %v647_v13, %s2377_s30  ;;  %658 = vst [vmem:[#allocation1] ss:$2 sm:$0xff] %v2482_v40 }
  0xd9   :  { %v2527_v35 = vpop.permute.xlu0 %392  ;;  %v2536_v42 = vpop.permute.xlu2 %439 }
  0xde   :  { %v660_v14 = vld.sshfl [vmem:[#allocation1 + $0x8] sm:$0xff pattern:$0x75316420]  ;;  %v659_v15 = vld.sshfl [vmem:[#allocation1] sm:$0xff pattern:$0x75316420] }
  0xdf   :  { %665 = vrot.lane.b32.xlu0 %v660_v14, %s2377_s30  ;;  %683 = vst [vmem:[#allocation1] ss:$2 sm:$0xff] %v2468_v54  ;;  %663 = vrot.lane.b32.xlu2 %v659_v15, %s2377_s30  ;;  %s2173_s30 = sld [smem:[#allocation9 + $0xf]] }
  0xe1   :  { %v2531_v37 = vpop.permute.xlu1 %402  ;;  %v2544_v49 = vpop.permute.xlu2 %464 }
  0xe6   :  { %v684_v16 = vld.sshfl [vmem:[#allocation1] sm:$0xff pattern:$0x75316420]  ;;  %v685_v17 = vld.sshfl [vmem:[#allocation1 + $0x8] sm:$0xff pattern:$0x75316420] }
  0xe7   :  { %688 = vrot.lane.b32.xlu1 %v684_v16, %s2378_s4  ;;  %695 = vst [vmem:[#allocation1] ss:$2 sm:$0xff] %v2482_v40  ;;  %690 = vrot.lane.b32.xlu2 %v685_v17, %s2378_s4 }
  0xe9   :  { %v2534_v41 = vpop.permute.xlu0 %427  ;;  %v2538_v45 = vpop.permute.xlu1 %429 }
  0xee   :  { %v697_v20 = vld.sshfl [vmem:[#allocation1 + $0x8] sm:$0xff pattern:$0x75316420]  ;;  %v696_v21 = vld.sshfl [vmem:[#allocation1] sm:$0xff pattern:$0x75316420] }
  0xef   :  { %702 = vrot.lane.b32.xlu1 %v697_v20, %s2378_s4  ;;  %700 = vrot.lane.b32.xlu0 %v696_v21, %s2378_s4  ;;  %718 = vst [vmem:[#allocation1] ss:$2 sm:$0xff] %v2468_v54  ;;  %s2390_s4 = smov 2  }
  0xf1   :  { %v2542_v48 = vpop.permute.xlu0 %441  ;;  %v2551_v55 = vpop.permute.xlu2 %499 }
  0xf6   :  { %v720_v23 = vld.sshfl [vmem:[#allocation1 + $0x8] sm:$0xff pattern:$0x75316420]  ;;  %v719_v24 = vld.sshfl [vmem:[#allocation1] sm:$0xff pattern:$0x75316420] }
  0xf7   :  { %725 = vrot.lane.b32.xlu0 %v720_v23, %s2379_s5  ;;  %730 = vst [vmem:[#allocation1] ss:$2 sm:$0xff] %v2482_v40  ;;  %723 = vrot.lane.b32.xlu2 %v719_v24, %s2379_s5 }
  0xf9   :  { %v2546_v50 = vpop.permute.xlu1 %462  ;;  %v2558_v60 = vpop.permute.xlu2 %513 }
  0xfe   :  { %v731_v28 = vld.sshfl [vmem:[#allocation1] sm:$0xff pattern:$0x75316420]  ;;  %v732_v29 = vld.sshfl [vmem:[#allocation1 + $0x8] sm:$0xff pattern:$0x75316420] }
  0xff   :  { %735 = vrot.lane.b32.xlu1 %v731_v28, %s2379_s5  ;;  %755 = vst [vmem:[#allocation1] ss:$2 sm:$0xff] %v2468_v54  ;;  %737 = vrot.lane.b32.xlu2 %v732_v29, %s2379_s5  ;;  %s2174_s5 = sld [smem:[#allocation9 + $0x40]] }
 0x101   :  { %v2549_v53 = vpop.permute.xlu0 %474  ;;  %v2553_v56 = vpop.permute.xlu1 %476 }
 0x106   :  { %v757_v33 = vld.sshfl [vmem:[#allocation1 + $0x8] sm:$0xff pattern:$0x75316420]  ;;  %v756_v34 = vld.sshfl [vmem:[#allocation1] sm:$0xff pattern:$0x75316420] }
 0x107   :  { %762 = vrot.lane.b32.xlu1 %v757_v33, %s2380_s6  ;;  %760 = vrot.lane.b32.xlu0 %v756_v34, %s2380_s6  ;;  %767 = vst [vmem:[#allocation1] ss:$2 sm:$0xff] %v2482_v40 }
 0x109   :  { %v2556_v59 = vpop.permute.xlu0 %501  ;;  %v2565_v1 = vpop.permute.xlu2 %548 }
 0x10e   :  { %v769_v38 = vld.sshfl [vmem:[#allocation1 + $0x8] sm:$0xff pattern:$0x75316420]  ;;  %v768_v39 = vld.sshfl [vmem:[#allocation1] sm:$0xff pattern:$0x75316420] }
 0x10f   :  { %774 = vrot.lane.b32.xlu0 %v769_v38, %s2380_s6  ;;  %792 = vst [vmem:[#allocation1] ss:$2 sm:$0xff] %v2468_v54  ;;  %772 = vrot.lane.b32.xlu2 %v768_v39, %s2380_s6  ;;  %v288_v39 = vlaneseq  ;;  %s2785_s6 = sld [smem:[#allocation9 + $0x18]] }
 0x111   :  { %v2560_v61 = vpop.permute.xlu1 %511  ;;  %v582_v8 = vpop.permute.xlu2 %581 }
 0x116   :  { %v793_v43 = vld.sshfl [vmem:[#allocation1] sm:$0xff pattern:$0x75316420]  ;;  %v794_v44 = vld.sshfl [vmem:[#allocation1 + $0x8] sm:$0xff pattern:$0x75316420] }
 0x117   :  { %797 = vrot.lane.b32.xlu1 %v793_v43, %s2381_s7  ;;  %804 = vst [vmem:[#allocation1] ss:$2 sm:$0xff] %v2482_v40  ;;  %799 = vrot.lane.b32.xlu2 %v794_v44, %s2381_s7  ;;  %v2591_v43 = vand.u32 127, %v288_v39 }
 0x119   :  { %v2563_v0 = vpop.permute.xlu0 %536  ;;  %v2567_v4 = vpop.permute.xlu1 %538  ;;  %vm583_vm7 = vcmp.lt.s32.totalorder %v2591_v43, 35  ;;  %vm618_vm8 = vcmp.lt.s32.totalorder %v2591_v43, 34  ;;  %vm655_vm9 = vcmp.lt.s32.totalorder %v2591_v43, 33  ;;  %vm727_vm14 = vcmp.lt.s32.totalorder %v2591_v43, 31 }
 0x11a   :  { %vm692_vm15 = vcmp.lt.s32.totalorder %v2591_v43, 32  ;;  %vm764_vm3 = vcmp.lt.s32.totalorder %v2591_v43, 30  ;;  %vm801_vm6 = vcmp.lt.s32.totalorder %v2591_v43, 29  ;;  %vm394_vm0 = vcmp.lt.s32.totalorder %v2591_v43, 49 }
 0x11e   :  { %v806_v46 = vld.sshfl [vmem:[#allocation1 + $0x8] sm:$0xff pattern:$0x75316420]  ;;  %v805_v47 = vld.sshfl [vmem:[#allocation1] sm:$0xff pattern:$0x75316420] }
 0x11f   :  { %811 = vrot.lane.b32.xlu1 %v806_v46, %s2381_s7  ;;  %809 = vrot.lane.b32.xlu0 %v805_v47, %s2381_s7  ;;  %835 = vst [vmem:[#allocation1] ss:$2 sm:$0xff] %v2468_v54  ;;  %v2595_v47 = vadd.s32 128, %v2591_v43  ;;  %s2787_s7 = sld [smem:[#allocation9 + $0x49]] }
 0x121   :  { %v2571_v7 = vpop.permute.xlu0 %550  ;;  %v615_v13 = vpop.permute.xlu2 %614  ;;  %3595 = vst [vmem:[#allocation14_spill] sm:$0xff] %v2595_v47 }
 0x126   :  { %v837_v51 = vld.sshfl [vmem:[#allocation1 + $0x8] sm:$0xff pattern:$0x75316420]  ;;  %v836_v52 = vld.sshfl [vmem:[#allocation1] sm:$0xff pattern:$0x75316420] }
 0x127   :  { %842 = vrot.lane.b32.xlu0 %v837_v51, %s2382_s8  ;;  %847 = vst [vmem:[#allocation1] ss:$2 sm:$0xff] %v2482_v40  ;;  %840 = vrot.lane.b32.xlu2 %v836_v52, %s2382_s8 }
 0x129   :  { %v580_v9 = vpop.permute.xlu1 %579  ;;  %v629_v20 = vpop.permute.xlu2 %628 }
 0x12e   :  { %v848_v57 = vld.sshfl [vmem:[#allocation1] sm:$0xff pattern:$0x75316420]  ;;  %v849_v58 = vld.sshfl [vmem:[#allocation1 + $0x8] sm:$0xff pattern:$0x75316420] }
 0x12f   :  { %852 = vrot.lane.b32.xlu1 %v848_v57, %s2382_s8  ;;  %870 = vst [vmem:[#allocation1] ss:$2 sm:$0xff] %v2468_v54  ;;  %854 = vrot.lane.b32.xlu2 %v849_v58, %s2382_s8  ;;  %v597_v57 = vstv %s2576_s12  ;;  %v584_v58 = vsel %vm583_vm7, %v580_v9, %v582_v8  ;;  %s2175_s8 = sld [smem:[#allocation9 + $0x10]] }
 0x130   :  { %s2817_s12 = sld [smem:[#allocation9 + $0x31]] }
 0x131   :  { %v592_v12 = vpop.permute.xlu0 %591  ;;  %v594_v14 = vpop.permute.xlu1 %593 }
 0x136   :  { %v872_v62 = vld.sshfl [vmem:[#allocation1 + $0x8] sm:$0xff pattern:$0x75316420]  ;;  %v871_v63 = vld.sshfl [vmem:[#allocation1] sm:$0xff pattern:$0x75316420] }
 0x137   :  { %877 = vrot.lane.b32.xlu1 %v872_v62, %s2383_s9  ;;  %875 = vrot.lane.b32.xlu0 %v871_v63, %s2383_s9  ;;  %882 = vst [vmem:[#allocation1] ss:$2 sm:$0xff] %v2482_v40  ;;  %v585_v62 = vsel %vm583_vm7, %v582_v8, %v580_v9  ;;  %v600_v63 = vstv %s2585_s14  ;;  %s2825_s14 = sld [smem:[#allocation9 + $0x32]] }
 0x139   :  { %v617_v17 = vpop.permute.xlu0 %616  ;;  %v2580_v29 = vpop.permute.xlu2 %663 }
 0x13e   :  { %v884_v2 = vld.sshfl [vmem:[#allocation1 + $0x8] sm:$0xff pattern:$0x75316420]  ;;  %v883_v3 = vld.sshfl [vmem:[#allocation1] sm:$0xff pattern:$0x75316420] }
 0x13f   :  { %889 = vrot.lane.b32.xlu0 %v884_v2, %s2383_s9  ;;  %907 = vst [vmem:[#allocation1] ss:$2 sm:$0xff] %v2468_v54  ;;  %887 = vrot.lane.b32.xlu2 %v883_v3, %s2383_s9  ;;  %v595_v3 = vsel %vm583_vm7, %v592_v12, %v594_v14  ;;  %s2805_s9 = sld [smem:[#allocation9 + $0x41]] }
 0x141   :  { %v627_v21 = vpop.permute.xlu1 %626  ;;  %v2599_v52 = vpop.permute.xlu2 %690 }
 0x142   :  { %v630_v8 = vsel %vm618_vm8, %v627_v21, %v629_v20  ;;  %v631_v9 = vsel %vm618_vm8, %v629_v20, %v627_v21 }
 0x146   :  { %v908_v5 = vld.sshfl [vmem:[#allocation1] sm:$0xff pattern:$0x75316420]  ;;  %v909_v6 = vld.sshfl [vmem:[#allocation1 + $0x8] sm:$0xff pattern:$0x75316420] }
 0x147   :  { %912 = vrot.lane.b32.xlu1 %v908_v5, %s2384_s10  ;;  %919 = vst [vmem:[#allocation1] ss:$2 sm:$0xff] %v2482_v40  ;;  %914 = vrot.lane.b32.xlu2 %v909_v6, %s2384_s10  ;;  %v596_v5 = vsel %vm583_vm7, %v594_v14, %v592_v12  ;;  %v632_v6 = vstv %s2587_s15  ;;  %v2629_v12 = vand.u32 15, %v2595_v47  ;;  %v598_v14 = vmul.f32 %v597_v57, %v585_v62  ;;  %s2827_s15 = sld [smem:[#allocation9 + $0x2]] }
 0x149   :  { %v2578_v28 = vpop.permute.xlu0 %651  ;;  %v2582_v38 = vpop.permute.xlu1 %653  ;;  %vm294_vm11 = vcmp.ge.s32.totalorder %v2629_v12, 3  ;;  %vm296_vm13 = vcmp.ge.s32.totalorder %v2629_v12, 2  ;;  %vm298_vm2 = vcmp.ge.s32.totalorder %v2629_v12, 1  ;;  %vm300_vm5 = vcmp.lt.s32.totalorder %v2629_v12, 15 }
 0x14e   :  { %v921_v10 = vld.sshfl [vmem:[#allocation1 + $0x8] sm:$0xff pattern:$0x75316420]  ;;  %v920_v11 = vld.sshfl [vmem:[#allocation1] sm:$0xff pattern:$0x75316420] }
 0x14f   :  { %926 = vrot.lane.b32.xlu1 %v921_v10, %s2384_s10  ;;  %924 = vrot.lane.b32.xlu0 %v920_v11, %s2384_s10  ;;  %944 = vst [vmem:[#allocation1] ss:$2 sm:$0xff] %v2468_v54  ;;  %v635_v10 = vstv %s2589_s16  ;;  %v619_v11 = vsel %vm618_vm8, %v615_v13, %v617_v17  ;;  %s2391_s10 = smov 1   ;;  %s2829_s16 = sld [smem:[#allocation9 + $0x11]] }
 0x150   :  { %v637_v20 = vmul.f32 %v635_v10, %v630_v8 }
 0x151   :  { %v666_v51 = vpop.permute.xlu0 %665 }
 0x152   :  { %v667_v8 = vsel %vm655_vm9, %v2580_v29, %v666_v51 }
 0x156   :  { %v946_v15 = vld.sshfl [vmem:[#allocation1 + $0x8] sm:$0xff pattern:$0x75316420]  ;;  %v945_v16 = vld.sshfl [vmem:[#allocation1] sm:$0xff pattern:$0x75316420] }
 0x157   :  { %951 = vrot.lane.b32.xlu0 %v946_v15, %s2385_s11  ;;  %956 = vst [vmem:[#allocation1] ss:$2 sm:$0xff] %v2482_v40  ;;  %949 = vrot.lane.b32.xlu2 %v945_v16, %s2385_s11  ;;  %v620_v15 = vsel %vm618_vm8, %v617_v17, %v615_v13  ;;  %v2626_v16 = vand.u32 15, %v2591_v43  ;;  %v602_v13 = vmul.f32 %v600_v63, %v595_v3  ;;  %vm302_vm8 = vcmp.lt.s32.totalorder %v2629_v12, 14 }
 0x158   :  { %v633_v17 = vmul.f32 %v632_v6, %v620_v15  ;;  %v672_v15 = vstv %s2631_s18  ;;  %s2845_s18 = sld [smem:[#allocation9 + $0x33]] }
 0x159   :  { %v2607_v2 = vpop.permute.xlu1 %688  ;;  %vm293_vm10 = vcmp.ge.s32.totalorder %v2626_v16, 3  ;;  %vm295_vm12 = vcmp.ge.s32.totalorder %v2626_v16, 2  ;;  %vm297_vm1 = vcmp.ge.s32.totalorder %v2626_v16, 1  ;;  %vm299_vm4 = vcmp.lt.s32.totalorder %v2626_v16, 15 }
 0x15a   :  { %vm301_vm7 = vcmp.lt.s32.totalorder %v2626_v16, 14 }
 0x15e   :  { %v957_v23 = vld.sshfl [vmem:[#allocation1] sm:$0xff pattern:$0x75316420]  ;;  %v958_v24 = vld.sshfl [vmem:[#allocation1 + $0x8] sm:$0xff pattern:$0x75316420] }
 0x15f   :  { %961 = vrot.lane.b32.xlu1 %v957_v23, %s2385_s11  ;;  %979 = vst [vmem:[#allocation1] ss:$2 sm:$0xff] %v2468_v54  ;;  %963 = vrot.lane.b32.xlu2 %v958_v24, %s2385_s11  ;;  %v599_v23 = vmul.f32 %v597_v57, %v584_v58  ;;  %v601_v24 = vmul.f32 %v600_v63, %v596_v5  ;;  %v669_v5 = vstv %s2623_s17  ;;  %s2815_s11 = sld [smem:[#allocation9]] }
 0x160   :  { %s2836_s17 = sld [smem:[#allocation9 + $0x42]] }
 0x161   :  { %v603_v57 = vadd.f32 %v601_v24, %v598_v14  ;;  %v703_v58 = vpop.permute.xlu1 %702  ;;  %v604_v62 = vadd.f32 %v602_v13, %v599_v23 }
 0x163   :  { %v606_v14 = vsel %vm294_vm11, %v604_v62, 0.0 }
 0x166   :  { %v981_v33 = vld.sshfl [vmem:[#allocation1 + $0x8] sm:$0xff pattern:$0x75316420]  ;;  %v980_v34 = vld.sshfl [vmem:[#allocation1] sm:$0xff pattern:$0x75316420] }
 0x167   :  { %986 = vrot.lane.b32.xlu1 %v981_v33, %s2386_s13  ;;  %984 = vrot.lane.b32.xlu0 %v980_v34, %s2386_s13  ;;  %991 = vst [vmem:[#allocation1] ss:$2 sm:$0xff] %v2482_v40  ;;  %v634_v33 = vmul.f32 %v632_v6, %v619_v11  ;;  %v636_v34 = vmul.f32 %v635_v10, %v631_v9  ;;  %v605_v11 = vsel %vm293_vm10, %v603_v57, 0.0  ;;  %v709_v57 = vstv %s2643_s0  ;;  %s2918_s0 = sld [smem:[#allocation9 + $0x43]] }
 0x168   :  { %v656_v6 = vsel %vm655_vm9, %v2578_v28, %v2582_v38  ;;  %v657_v10 = vsel %vm655_vm9, %v2582_v38, %v2578_v28  ;;  %v668_v9 = vsel %vm655_vm9, %v666_v51, %v2580_v29  ;;  %v674_v51 = vmul.f32 %v672_v15, %v667_v8 }
 0x169   :  { %v638_v63 = vadd.f32 %v636_v34, %v633_v17  ;;  %v639_v3 = vadd.f32 %v637_v20, %v634_v33  ;;  %v670_v13 = vmul.f32 %v669_v5, %v657_v10  ;;  %v671_v17 = vmul.f32 %v669_v5, %v656_v6 }
 0x16a   :  { %v741_v33 = vstv %s2635_s20  ;;  %v673_v29 = vmul.f32 %v672_v15, %v668_v9  ;;  %v693_v8 = vsel %vm692_vm15, %v2607_v2, %v2599_v52  ;;  %v694_v9 = vsel %vm692_vm15, %v2599_v52, %v2607_v2  ;;  %s2907_s20 = sld [smem:[#allocation9 + $0x3]] }
 0x16b   :  { %v640_v23 = vsel %vm295_vm12, %v638_v63, 0.0  ;;  %v641_v28 = vsel %vm296_vm13, %v639_v3, 0.0  ;;  %vm303_vm9 = vcmp.lt.s32.totalorder %v2626_v16, 13 }
 0x16c   :  { %v643_v52 = vadd.f32 %v641_v28, %v606_v14 }
 0x16e   :  { %v993_v44 = vld.sshfl [vmem:[#allocation1 + $0x8] sm:$0xff pattern:$0x75316420]  ;;  %v992_v46 = vld.sshfl [vmem:[#allocation1] sm:$0xff pattern:$0x75316420] }
 0x16f   :  { %998 = vrot.lane.b32.xlu0 %v993_v44, %s2386_s13  ;;  %1016 = vst [vmem:[#allocation1] ss:$2 sm:$0xff] %v2468_v54  ;;  %996 = vrot.lane.b32.xlu2 %v992_v46, %s2386_s13  ;;  %v701_v44 = vpop.permute.xlu0 %700  ;;  %v724_v46 = vpop.permute.xlu2 %723  ;;  %s2823_s13 = sld [smem:[#allocation9 + $0x1]] }
 0x171   :  { %v736_v3 = vpop.permute.xlu1 %735 }
 0x176   :  { %v1017_v21 = vld.sshfl [vmem:[#allocation1] sm:$0xff pattern:$0x75316420]  ;;  %v1018_v39 = vld.sshfl [vmem:[#allocation1 + $0x8] sm:$0xff pattern:$0x75316420] }
 0x177   :  { %1021 = vrot.lane.b32.xlu1 %v1017_v21, %s2387_s21  ;;  %1028 = vst [vmem:[#allocation1] ss:$2 sm:$0xff] %v2482_v40  ;;  %1023 = vrot.lane.b32.xlu2 %v1018_v39, %s2387_s21  ;;  %v726_v34 = vpop.permute.xlu0 %725  ;;  %v738_v20 = vpop.permute.xlu2 %737  ;;  %v744_v21 = vstv %s2640_s22  ;;  %v706_v39 = vstv %s2633_s19  ;;  %s2392_s19 = smov 127   ;;  %s2911_s22 = sld [smem:[#allocation9 + $0x12]] }
 0x178   :  { %v728_v62 = vsel %vm727_vm14, %v724_v46, %v726_v34  ;;  %v729_v63 = vsel %vm727_vm14, %v726_v34, %v724_v46  ;;  %v739_v10 = vsel %vm727_vm14, %v736_v3, %v738_v20  ;;  %v740_v15 = vsel %vm727_vm14, %v738_v20, %v736_v3 }
 0x179   :  { %v742_v5 = vmul.f32 %v741_v33, %v729_v63  ;;  %v743_v6 = vmul.f32 %v741_v33, %v728_v62  ;;  %v745_v46 = vmul.f32 %v744_v21, %v740_v15  ;;  %v676_v33 = vadd.f32 %v674_v51, %v671_v17  ;;  %v763_v28 = vpop.permute.xlu1 %762 }
 0x17a   :  { %v704_v34 = vsel %vm692_vm15, %v701_v44, %v703_v58  ;;  %v705_v20 = vsel %vm692_vm15, %v703_v58, %v701_v44  ;;  %v642_v3 = vadd.f32 %v640_v23, %v605_v11  ;;  %v707_v17 = vmul.f32 %v706_v39, %v694_v9 }
 0x17b   :  { %v747_v62 = vadd.f32 %v745_v46, %v742_v5  ;;  %v710_v51 = vmul.f32 %v709_v57, %v705_v20  ;;  %v711_v44 = vmul.f32 %v709_v57, %v704_v34  ;;  %v678_v11 = vsel %vm298_vm2, %v676_v33, 0.0 }
 0x17c   :  { %v680_v5 = vadd.f32 %v678_v11, %v643_v52  ;;  %v778_v15 = vstv %s2703_s1  ;;  %vm304_vm14 = vcmp.lt.s32.totalorder %v2629_v12, 13  ;;  %vm844_vm15 = vcmp.lt.s32.totalorder %v2591_v43, 19  ;;  %s2935_s1 = sld [smem:[#allocation9 + $0x4]] }
 0x17d   :  { %v749_v33 = vsel %vm299_vm4, %v747_v62, 0.0 }
 0x17e   :  { %v1030_v38 = vld.sshfl [vmem:[#allocation1 + $0x8] sm:$0xff pattern:$0x75316420]  ;;  %v1029_v24 = vld.sshfl [vmem:[#allocation1] sm:$0xff pattern:$0x75316420] }
 0x17f   :  { %1035 = vrot.lane.b32.xlu1 %v1030_v38, %s2387_s21  ;;  %1033 = vrot.lane.b32.xlu0 %v1029_v24, %s2387_s21  ;;  %1053 = vst [vmem:[#allocation1] ss:$2 sm:$0xff] %v2468_v54  ;;  %v746_v38 = vmul.f32 %v744_v21, %v739_v10  ;;  %v675_v24 = vadd.f32 %v673_v29, %v670_v13  ;;  %v761_v14 = vpop.permute.xlu0 %760  ;;  %v773_v23 = vpop.permute.xlu2 %772  ;;  %s2909_s21 = sld [smem:[#allocation9 + $0x34]] }
 0x180   :  { %v708_v29 = vmul.f32 %v706_v39, %v693_v8  ;;  %v765_v21 = vsel %vm764_vm3, %v761_v14, %v763_v28  ;;  %v766_v39 = vsel %vm764_vm3, %v763_v28, %v761_v14 }
 0x181   :  { %v748_v63 = vadd.f32 %v746_v38, %v743_v6  ;;  %v677_v58 = vsel %vm297_vm1, %v675_v24, 0.0  ;;  %v712_v6 = vadd.f32 %v710_v51, %v707_v17  ;;  %v781_v24 = vstv %s2707_s23  ;;  %s2945_s23 = sld [smem:[#allocation9 + $0x35]] }
 0x182   :  { %v679_v57 = vadd.f32 %v677_v58, %v642_v3  ;;  %v713_v10 = vadd.f32 %v711_v44, %v708_v29  ;;  %v779_v20 = vmul.f32 %v778_v15, %v766_v39  ;;  %v780_v3 = vmul.f32 %v778_v15, %v765_v21 }
 0x183   :  { %v750_v34 = vsel %vm300_vm5, %v748_v63, 0.0  ;;  %v815_v39 = vstv %s2721_s25  ;;  %v818_v15 = vstv %s2730_s26  ;;  %s2393_s25 = smov 126   ;;  %s2977_s26 = sld [smem:[#allocation9 + $0x36]] }
 0x184   :  { %v714_v9 = vadd.f32 %v712_v6, %v679_v57  ;;  %v715_v46 = vadd.f32 %v713_v10, %v680_v5 }
 0x186   :  { %v1055_v2 = vld.sshfl [vmem:[#allocation1 + $0x8] sm:$0xff pattern:$0x75316420]  ;;  %v1054_v13 = vld.sshfl [vmem:[#allocation1] sm:$0xff pattern:$0x75316420]  ;;  %v751_v58 = vadd.f32 %v749_v33, %v714_v9  ;;  %v752_v11 = vadd.f32 %v750_v34, %v715_v46 }
 0x187   :  { %1060 = vrot.lane.b32.xlu0 %v1055_v2, %s2388_s24  ;;  %1065 = vst [vmem:[#allocation1] ss:$2 sm:$0xff] %v2482_v40  ;;  %1058 = vrot.lane.b32.xlu2 %v1054_v13, %s2388_s24  ;;  %v775_v52 = vpop.permute.xlu0 %774  ;;  %v800_v2 = vpop.permute.xlu2 %799 }
 0x188   :  { %v776_v13 = vsel %vm764_vm3, %v773_v23, %v775_v52  ;;  %v777_v17 = vsel %vm764_vm3, %v775_v52, %v773_v23  ;;  %vm879_vm3 = vcmp.lt.s32.totalorder %v2591_v43, 18 }
 0x189   :  { %v798_v62 = vpop.permute.xlu1 %797  ;;  %v782_v29 = vmul.f32 %v781_v24, %v777_v17  ;;  %v783_v51 = vmul.f32 %v781_v24, %v776_v13 }
 0x18a   :  { %v802_v63 = vsel %vm801_vm6, %v798_v62, %v800_v2  ;;  %v803_v44 = vsel %vm801_vm6, %v800_v2, %v798_v62  ;;  %v858_v62 = vstv %s2747_s27  ;;  %s2996_s27 = sld [smem:[#allocation9 + $0x6]] }
 0x18b   :  { %v784_v14 = vadd.f32 %v782_v29, %v779_v20  ;;  %v785_v28 = vadd.f32 %v783_v51, %v780_v3  ;;  %v816_v46 = vmul.f32 %v815_v39, %v803_v44 }
 0x18d   :  { %v786_v23 = vsel %vm301_vm7, %v784_v14, 0.0  ;;  %v787_v21 = vsel %vm302_vm8, %v785_v28, 0.0  ;;  %v861_v28 = vstv %s2751_s29  ;;  %s3009_s29 = sld [smem:[#allocation9 + $0x13]] }
 0x18e   :  { %v1066_v8 = vld.sshfl [vmem:[#allocation1] sm:$0xff pattern:$0x75316420]  ;;  %v1067_v38 = vld.sshfl [vmem:[#allocation1 + $0x8] sm:$0xff pattern:$0x75316420]  ;;  %v788_v57 = vadd.f32 %v786_v23, %v751_v58  ;;  %v789_v5 = vadd.f32 %v787_v21, %v752_v11 }
 0x18f   :  { %1070 = vrot.lane.b32.xlu1 %v1066_v8, %s2388_s24  ;;  %1072 = vrot.lane.b32.xlu2 %v1067_v38, %s2388_s24  ;;  %1094 = vst [vmem:[#allocation1] ss:$2 sm:$0xff] %v2468_v54  ;;  %v841_v9 = vpop.permute.xlu2 %840  ;;  %v817_v38 = vmul.f32 %v815_v39, %v802_v63  ;;  %s2967_s24 = sld [smem:[#allocation9 + $0x5]] }
 0x191   :  { %v810_v8 = vpop.permute.xlu0 %809  ;;  %v812_v24 = vpop.permute.xlu1 %811 }
 0x192   :  { %v813_v33 = vsel %vm801_vm6, %v810_v8, %v812_v24  ;;  %v814_v34 = vsel %vm801_vm6, %v812_v24, %v810_v8  ;;  %vm916_vm6 = vcmp.lt.s32.totalorder %v2591_v43, 17 }
 0x193   :  { %v819_v20 = vmul.f32 %v818_v15, %v814_v34  ;;  %v820_v3 = vmul.f32 %v818_v15, %v813_v33 }
 0x195   :  { %v821_v52 = vadd.f32 %v819_v20, %v816_v46  ;;  %v822_v2 = vadd.f32 %v820_v3, %v817_v38  ;;  %v893_v3 = vstv %s2173_s30  ;;  %s3016_s30 = sld [smem:[#allocation9 + $0x44]] }
 0x196   :  { %v1096_v6 = vld.sshfl [vmem:[#allocation1 + $0x8] sm:$0xff pattern:$0x75316420]  ;;  %v1095_v10 = vld.sshfl [vmem:[#allocation1] sm:$0xff pattern:$0x75316420] }
 0x197   :  { %1101 = vrot.lane.b32.xlu1 %v1096_v6, %s2389_s28  ;;  %1099 = vrot.lane.b32.xlu0 %v1095_v10, %s2389_s28  ;;  %1106 = vst [vmem:[#allocation1] ss:$2 sm:$0xff] %v2482_v40  ;;  %v823_v13 = vsel %vm303_vm9, %v821_v52, 0.0  ;;  %v824_v17 = vsel %vm304_vm14, %v822_v2, 0.0  ;;  %v855_v39 = vpop.permute.xlu2 %854 }
 0x198   :  { %v2765_v51 = vadd.f32 %v823_v13, %v788_v57  ;;  %v2767_v63 = vadd.f32 %v824_v17, %v789_v5  ;;  %v896_v17 = vstv %s2174_s5  ;;  %s3087_s5 = sld [smem:[#allocation9 + $0x14]] }
 0x199   :  { %v843_v44 = vpop.permute.xlu0 %842 }
 0x19a   :  { %3596 = vst [vmem:[#allocation15_spill] sm:$0xff] %v2767_v63  ;;  %v845_v11 = vsel %vm844_vm15, %v841_v9, %v843_v44  ;;  %v846_v14 = vsel %vm844_vm15, %v843_v44, %v841_v9 }
 0x19b   :  { %v859_v23 = vmul.f32 %v858_v62, %v846_v14  ;;  %v860_v21 = vmul.f32 %v858_v62, %v845_v11 }
 0x19e   :  { %v1108_v29 = vld.sshfl [vmem:[#allocation1 + $0x8] sm:$0xff pattern:$0x75316420]  ;;  %v1107_v58 = vld.sshfl [vmem:[#allocation1] sm:$0xff pattern:$0x75316420] }
 0x19f   :  { %1113 = vrot.lane.b32.xlu0 %v1108_v29, %s2389_s28  ;;  %1129 = vst [vmem:[#allocation1] ss:$2 sm:$0xff] %v2468_v54  ;;  %1111 = vrot.lane.b32.xlu2 %v1107_v58, %s2389_s28  ;;  %v888_v52 = vpop.permute.xlu2 %887  ;;  %s3002_s28 = sld [smem:[#allocation9 + $0x37]] }
 0x1a1   :  { %v853_v57 = vpop.permute.xlu1 %852 }
 0x1a2   :  { %v856_v5 = vsel %vm844_vm15, %v853_v57, %v855_v39  ;;  %v857_v6 = vsel %vm844_vm15, %v855_v39, %v853_v57  ;;  %vm953_vm15 = vcmp.lt.s32.totalorder %v2591_v43, 16 }
 0x1a3   :  { %v862_v10 = vmul.f32 %v861_v28, %v857_v6  ;;  %v863_v15 = vmul.f32 %v861_v28, %v856_v5  ;;  %v1203_v5 = vstv %s2785_s6  ;;  %v1205_v6 = vstv %s2787_s7  ;;  %s3094_s6 = sld [smem:[#allocation9 + $0x45]] }
 0x1a4   :  { %s2205_s7 = sld [smem:[#allocation9 + $0x1f]] }
 0x1a5   :  { %v864_v8 = vadd.f32 %v862_v10, %v859_v23  ;;  %v865_v46 = vadd.f32 %v863_v15, %v860_v21 }
 0x1a6   :  { %v1130_v9 = vld.sshfl [vmem:[#allocation1] sm:$0xff pattern:$0x75316420]  ;;  %v1131_v38 = vld.sshfl [vmem:[#allocation1 + $0x8] sm:$0xff pattern:$0x75316420] }
 0x1a7   :  { %1134 = vrot.lane.b32.xlu1 %v1130_v9, %s2390_s4  ;;  %1141 = vst [vmem:[#allocation1] ss:$2 sm:$0xff] %v2482_v40  ;;  %1136 = vrot.lane.b32.xlu2 %v1131_v38, %s2390_s4  ;;  %v866_v23 = vsel %vm293_vm10, %v864_v8, 0.0  ;;  %v867_v21 = vsel %vm294_vm11, %v865_v46, 0.0 }
 0x1a9   :  { %v878_v24 = vpop.permute.xlu1 %877  ;;  %v876_v33 = vpop.permute.xlu0 %875 }
 0x1aa   :  { %v880_v34 = vsel %vm879_vm3, %v876_v33, %v878_v24  ;;  %v881_v20 = vsel %vm879_vm3, %v878_v24, %v876_v33  ;;  %v915_v24 = vpop.permute.xlu2 %914 }
 0x1ab   :  { %v894_v62 = vmul.f32 %v893_v3, %v881_v20  ;;  %v895_v29 = vmul.f32 %v893_v3, %v880_v34  ;;  %v1204_v34 = vmul.f32 %v1203_v5, %v2468_v54  ;;  %v1206_v20 = vmul.f32 %v1205_v6, %v2482_v40 }
 0x1ae   :  { %v1143_v2 = vld.sshfl [vmem:[#allocation1 + $0x8] sm:$0xff pattern:$0x75316420]  ;;  %v1142_v13 = vld.sshfl [vmem:[#allocation1] sm:$0xff pattern:$0x75316420] }
 0x1af   :  { %1148 = vrot.lane.b32.xlu1 %v1143_v2, %s2390_s4  ;;  %1146 = vrot.lane.b32.xlu0 %v1142_v13, %s2390_s4  ;;  %1166 = vst [vmem:[#allocation1] ss:$2 sm:$0xff] %v2468_v54  ;;  %v1207_v2 = vadd.f32 %v1206_v20, %v1204_v34  ;;  %v930_v13 = vstv %s2175_s8  ;;  %s2394_s4 = smov 125   ;;  %s2405_s8 = smov 96  }
 0x1b1   :  { %v890_v44 = vpop.permute.xlu0 %889 }
 0x1b2   :  { %v891_v58 = vsel %vm879_vm3, %v888_v52, %v890_v44  ;;  %v892_v11 = vsel %vm879_vm3, %v890_v44, %v888_v52  ;;  %vm321_vm3 = vcmp.lt.s32.totalorder %v2591_v43, 51 }
 0x1b3   :  { %v897_v14 = vmul.f32 %v896_v17, %v892_v11  ;;  %v898_v28 = vmul.f32 %v896_v17, %v891_v58 }
 0x1b5   :  { %v899_v39 = vadd.f32 %v897_v14, %v894_v62  ;;  %v900_v57 = vadd.f32 %v898_v28, %v895_v29  ;;  %v933_v29 = vstv %s2805_s9  ;;  %s2395_s9 = smov 115  }
 0x1b6   :  { %v1168_v38 = vld.sshfl [vmem:[#allocation1 + $0x8] sm:$0xff pattern:$0x75316420]  ;;  %v1167_v46 = vld.sshfl [vmem:[#allocation1] sm:$0xff pattern:$0x75316420] }
 0x1b7   :  { %v901_v10 = vsel %vm295_vm12, %v899_v39, 0.0  ;;  %v902_v15 = vsel %vm296_vm13, %v900_v57, 0.0  ;;  %1173 = vrot.lane.b32.xlu0 %v1168_v38, %s2391_s10  ;;  %1178 = vst [vmem:[#allocation1] ss:$2 sm:$0xff] %v2482_v40  ;;  %1171 = vrot.lane.b32.xlu2 %v1167_v46, %s2391_s10 }
 0x1b8   :  { %v903_v9 = vadd.f32 %v901_v10, %v866_v23  ;;  %v904_v8 = vadd.f32 %v902_v15, %v867_v21  ;;  %v950_v15 = vpop.permute.xlu2 %949 }
 0x1b9   :  { %v913_v33 = vpop.permute.xlu1 %912 }
 0x1ba   :  { %v917_v3 = vsel %vm916_vm6, %v913_v33, %v915_v24  ;;  %v918_v52 = vsel %vm916_vm6, %v915_v24, %v913_v33 }
 0x1bb   :  { %v931_v44 = vmul.f32 %v930_v13, %v918_v52  ;;  %v932_v58 = vmul.f32 %v930_v13, %v917_v3  ;;  %v336_v52 = vstv %s2815_s11  ;;  %v371_v13 = vstv %s2823_s13  ;;  %s2396_s11 = smov 114   ;;  %s2188_s13 = sld [smem:[#allocation9 + $0x47]] }
 0x1be   :  { %v1179_v17 = vld.sshfl [vmem:[#allocation1] sm:$0xff pattern:$0x75316420]  ;;  %v1180_v62 = vld.sshfl [vmem:[#allocation1 + $0x8] sm:$0xff pattern:$0x75316420] }
 0x1bf   :  { %1183 = vrot.lane.b32.xlu1 %v1179_v17, %s2391_s10  ;;  %1209 = vst [vmem:[#allocation1] ss:$2 sm:$0xff] %v1207_v2  ;;  %1185 = vrot.lane.b32.xlu2 %v1180_v62, %s2391_s10  ;;  %v339_v2 = vstv %s2817_s12  ;;  %v374_v62 = vstv %s2825_s14  ;;  %s3134_s10 = sld [smem:[#allocation9 + $0x46]]  ;;  %s2397_s14 = smov 113  }
 0x1c0   :  { %s2187_s12 = sld [smem:[#allocation9 + $0x16]] }
 0x1c1   :  { %v927_v11 = vpop.permute.xlu1 %926  ;;  %v925_v14 = vpop.permute.xlu0 %924 }
 0x1c2   :  { %v928_v28 = vsel %vm916_vm6, %v925_v14, %v927_v11  ;;  %v929_v23 = vsel %vm916_vm6, %v927_v11, %v925_v14  ;;  %vm357_vm6 = vcmp.lt.s32.totalorder %v2591_v43, 50  ;;  %v967_v11 = vstv %s2829_s16  ;;  %s2190_s16 = sld [smem:[#allocation9 + $0x48]] }
 0x1c3   :  { %v934_v21 = vmul.f32 %v933_v29, %v929_v23  ;;  %v935_v39 = vmul.f32 %v933_v29, %v928_v28  ;;  %v359_v17 = vsel %vm357_vm6, %v2515_v26, %v2507_v19  ;;  %v370_v29 = vsel %vm357_vm6, %v2524_v32, %v2520_v30 }
 0x1c4   :  { %v358_v23 = vsel %vm357_vm6, %v2507_v19, %v2515_v26 }
 0x1c5   :  { %v936_v57 = vadd.f32 %v934_v21, %v931_v44  ;;  %v937_v5 = vadd.f32 %v935_v39, %v932_v58  ;;  %v322_v44 = vsel %vm321_vm3, %v2505_v18, %v2513_v25  ;;  %v334_v58 = vsel %vm321_vm3, %v2509_v22, %v2517_v27 }
 0x1c6   :  { %v2838_v38 = vld.sshfl [vmem:[#allocation1] sm:$0xff pattern:$0x75316420]  ;;  %v2840_v46 = vld.sshfl [vmem:[#allocation1 + $0x8] sm:$0xff pattern:$0x75316420]  ;;  %v372_v21 = vmul.f32 %v371_v13, %v359_v17  ;;  %v408_v39 = vstv %s2827_s15 }
 0x1c7   :  { %v938_v6 = vsel %vm297_vm1, %v936_v57, 0.0  ;;  %v939_v10 = vsel %vm298_vm2, %v937_v5, 0.0  ;;  %3597 = vst [vmem:[#allocation16_spill] sm:$0xff] %v2838_v38  ;;  %v970_v57 = vstv %s2836_s17  ;;  %v396_v5 = vsel %vm394_vm0, %v2527_v35, %v2522_v31  ;;  %s2189_s15 = sld [smem:[#allocation9 + $0x17]]  ;;  %s2398_s17 = smov 112  }
 0x1c8   :  { %3598 = vst [vmem:[#allocation17_spill] sm:$0xff] %v2840_v46  ;;  %v940_v24 = vadd.f32 %v938_v6, %v903_v9  ;;  %v941_v33 = vadd.f32 %v939_v10, %v904_v8  ;;  %v323_v9 = vsel %vm321_vm3, %v2513_v25, %v2505_v18  ;;  %v335_v8 = vsel %vm321_vm3, %v2517_v27, %v2509_v22 }
 0x1c9   :  { %1218 = vst [vmem:[#allocation1] ss:$2 sm:$0xff] %v2468_v54  ;;  %v952_v34 = vpop.permute.xlu0 %951  ;;  %v337_v14 = vmul.f32 %v336_v52, %v323_v9  ;;  %v340_v28 = vmul.f32 %v339_v2, %v335_v8  ;;  %v369_v18 = vsel %vm357_vm6, %v2520_v30, %v2524_v32  ;;  %v375_v25 = vmul.f32 %v374_v62, %v370_v29  ;;  %v964_v30 = vpop.permute.xlu2 %963 }
 0x1ca   :  { %v954_v20 = vsel %vm953_vm15, %v950_v15, %v952_v34  ;;  %v955_v3 = vsel %vm953_vm15, %v952_v34, %v950_v15  ;;  %v411_v6 = vstv %s2845_s18  ;;  %v407_v10 = vsel %vm394_vm0, %v2529_v36, %v2531_v37  ;;  %s2193_s18 = sld [smem:[#allocation9 + $0x19]] }
 0x1cb   :  { %v968_v19 = vmul.f32 %v967_v11, %v955_v3  ;;  %v969_v26 = vmul.f32 %v967_v11, %v954_v20  ;;  %v338_v9 = vmul.f32 %v336_v52, %v322_v44  ;;  %v341_v8 = vmul.f32 %v339_v2, %v334_v58 }
 0x1cc   :  { %v342_v3 = vadd.f32 %v340_v28, %v337_v14  ;;  %v373_v20 = vmul.f32 %v371_v13, %v358_v23  ;;  %v376_v11 = vmul.f32 %v374_v62, %v369_v18  ;;  %v412_v47 = vmul.f32 %v411_v6, %v407_v10 }
 0x1cd   :  { %v343_v2 = vadd.f32 %v341_v8, %v338_v9  ;;  %v395_v62 = vsel %vm394_vm0, %v2522_v31, %v2527_v35  ;;  %v406_v44 = vsel %vm394_vm0, %v2531_v37, %v2529_v36  ;;  %vm431_vm0 = vcmp.lt.s32.totalorder %v2591_v43, 48 }
 0x1ce   :  { %v378_v13 = vadd.f32 %v376_v11, %v373_v20  ;;  %v410_v14 = vmul.f32 %v408_v39, %v395_v62  ;;  %vm466_vm3 = vcmp.lt.s32.totalorder %v2591_v43, 47  ;;  %v483_v62 = vstv %s2945_s23  ;;  %s2401_s23 = smov 109  }
 0x1cf   :  { %v345_v28 = vsel %vm294_vm11, %v343_v2, 0.0  ;;  %vm503_vm6 = vcmp.lt.s32.totalorder %v2591_v43, 46 }
 0x1d0   :  { %v1220_v22 = vld.sshfl [vmem:[#allocation1 + $0x8] sm:$0xff pattern:$0x75316420]  ;;  %v1219_v27 = vld.sshfl [vmem:[#allocation1] sm:$0xff pattern:$0x75316420] }
 0x1d1   :  { %1225 = vrot.lane.b32.xlu1 %v1220_v22, %s2392_s19  ;;  %1223 = vrot.lane.b32.xlu0 %v1219_v27, %s2392_s19  ;;  %1230 = vst [vmem:[#allocation1] ss:$2 sm:$0xff] %v2482_v40  ;;  %v962_v32 = vpop.permute.xlu1 %961  ;;  %v377_v22 = vadd.f32 %v375_v25, %v372_v21  ;;  %v409_v27 = vmul.f32 %v408_v39, %v396_v5  ;;  %v380_v23 = vsel %vm296_vm13, %v378_v13, 0.0  ;;  %v1002_v25 = vstv %s2911_s22  ;;  %s2400_s22 = smov 110  }
 0x1d2   :  { %v965_v15 = vsel %vm953_vm15, %v962_v32, %v964_v30  ;;  %v966_v34 = vsel %vm953_vm15, %v964_v30, %v962_v32  ;;  %vm988_vm15 = vcmp.lt.s32.totalorder %v2591_v43, 15  ;;  %v445_v5 = vstv %s2907_s20  ;;  %s2194_s20 = sld [smem:[#allocation9 + $0x4a]] }
 0x1d3   :  { %v971_v17 = vmul.f32 %v970_v57, %v966_v34  ;;  %v972_v29 = vmul.f32 %v970_v57, %v965_v15  ;;  %v414_v58 = vadd.f32 %v412_v47, %v409_v27  ;;  %v413_v47 = vmul.f32 %v411_v6, %v406_v44 }
 0x1d4   :  { %v2951_v57 = vadd.f32 %v380_v23, %v345_v28  ;;  %v433_v30 = vsel %vm431_vm0, %v2538_v45, %v2534_v41  ;;  %v448_v32 = vstv %s2909_s21  ;;  %v1005_v15 = vstv %s2918_s0  ;;  %s2195_s21 = sld [smem:[#allocation9 + $0x1a]] }
 0x1d5   :  { %v973_v38 = vadd.f32 %v971_v17, %v968_v19  ;;  %v974_v46 = vadd.f32 %v972_v29, %v969_v26  ;;  %v416_v18 = vsel %vm297_vm1, %v414_v58, 0.0  ;;  %v415_v39 = vadd.f32 %v413_v47, %v410_v14  ;;  %v997_v19 = vpop.permute.xlu2 %996  ;;  %s2196_s0 = sld [smem:[#allocation9 + $0x4b]] }
 0x1d6   :  { %v444_v34 = vsel %vm431_vm0, %v2542_v48, %v2536_v42  ;;  %v432_v29 = vsel %vm431_vm0, %v2534_v41, %v2538_v45  ;;  %v468_v27 = vsel %vm466_vm3, %v2544_v49, %v2546_v50  ;;  %v446_v2 = vmul.f32 %v445_v5, %v433_v30 }
 0x1d7   :  { %v2913_v63 = vadd.f32 %v973_v38, %v940_v24  ;;  %v2915_v52 = vadd.f32 %v974_v46, %v941_v33  ;;  %v344_v46 = vsel %vm293_vm10, %v342_v3, 0.0  ;;  %v379_v33 = vsel %vm295_vm12, %v377_v22, 0.0 }
 0x1d8   :  { %v1232_v38 = vld.sshfl [vmem:[#allocation1 + $0x8] sm:$0xff pattern:$0x75316420]  ;;  %v1231_v24 = vld.sshfl [vmem:[#allocation1] sm:$0xff pattern:$0x75316420]  ;;  %v381_v21 = vadd.f32 %v379_v33, %v344_v46  ;;  %v480_v3 = vstv %s2935_s1  ;;  %v443_v22 = vsel %vm431_vm0, %v2536_v42, %v2542_v48  ;;  %v449_v13 = vmul.f32 %v448_v32, %v444_v34 }
 0x1d9   :  { %1237 = vrot.lane.b32.xlu0 %v1232_v38, %s2392_s19  ;;  %1255 = vst [vmem:[#allocation1] ss:$2 sm:$0xff] %v2468_v54  ;;  %v987_v31 = vpop.permute.xlu1 %986  ;;  %v985_v35 = vpop.permute.xlu0 %984  ;;  %1235 = vrot.lane.b32.xlu2 %v1231_v24, %s2392_s19  ;;  %v479_v44 = vsel %vm466_vm3, %v2553_v56, %v2549_v53  ;;  %v447_v38 = vmul.f32 %v445_v5, %v432_v29  ;;  %v417_v47 = vsel %vm298_vm2, %v415_v39, 0.0  ;;  %v517_v23 = vstv %s2967_s24  ;;  %s2399_s19 = smov 111   ;;  %s2197_s1 = sld [smem:[#allocation9 + $0x1b]] }
 0x1da   :  { %v989_v36 = vsel %vm988_vm15, %v985_v35, %v987_v31  ;;  %v990_v37 = vsel %vm988_vm15, %v987_v31, %v985_v35  ;;  %v2955_v26 = vadd.f32 %v416_v18, %v381_v21  ;;  %v467_v42 = vsel %vm466_vm3, %v2546_v50, %v2544_v49  ;;  %s2198_s24 = sld [smem:[#allocation9 + $0x4c]] }
 0x1db   :  { %v1003_v9 = vmul.f32 %v1002_v25, %v990_v37  ;;  %v1004_v8 = vmul.f32 %v1002_v25, %v989_v36  ;;  %v450_v46 = vmul.f32 %v448_v32, %v443_v22  ;;  %v481_v33 = vmul.f32 %v480_v3, %v468_v27 }
 0x1dc   :  { %v478_v58 = vsel %vm466_vm3, %v2549_v53, %v2553_v56  ;;  %v484_v31 = vmul.f32 %v483_v62, %v479_v44  ;;  %v451_v35 = vadd.f32 %v449_v13, %v446_v2  ;;  %v482_v36 = vmul.f32 %v480_v3, %v467_v42 }
 0x1dd   :  { %v485_v28 = vmul.f32 %v483_v62, %v478_v58  ;;  %v505_v21 = vsel %vm503_vm6, %v2556_v59, %v2551_v55  ;;  %v520_v18 = vstv %s2977_s26  ;;  %v516_v25 = vsel %vm503_vm6, %v2558_v60, %v2560_v61  ;;  %s2402_s26 = smov 99  }
 0x1de   :  { %v504_v30 = vsel %vm503_vm6, %v2551_v55, %v2556_v59  ;;  %v515_v32 = vsel %vm503_vm6, %v2560_v61, %v2558_v60  ;;  %vm540_vm0 = vcmp.lt.s32.totalorder %v2591_v43, 45  ;;  %v452_v34 = vadd.f32 %v450_v46, %v447_v38 }
 0x1df   :  { %v519_v59 = vmul.f32 %v517_v23, %v504_v30  ;;  %v522_v29 = vmul.f32 %v520_v18, %v515_v32  ;;  %v554_v3 = vstv %s2996_s27  ;;  %v542_v60 = vsel %vm540_vm0, %v2567_v4, %v2563_v0  ;;  %s2200_s27 = sld [smem:[#allocation9 + $0x4d]] }
 0x1e0   :  { %v1256_v6 = vld.sshfl [vmem:[#allocation1] sm:$0xff pattern:$0x75316420]  ;;  %v1257_v10 = vld.sshfl [vmem:[#allocation1 + $0x8] sm:$0xff pattern:$0x75316420]  ;;  %v557_v61 = vstv %s3002_s28  ;;  %v541_v13 = vsel %vm540_vm0, %v2563_v0, %v2567_v4  ;;  %v552_v62 = vsel %vm540_vm0, %v2565_v1, %v2571_v7  ;;  %v555_v42 = vmul.f32 %v554_v3, %v542_v60 }
 0x1e1   :  { %1260 = vrot.lane.b32.xlu1 %v1256_v6, %s2393_s25  ;;  %1267 = vst [vmem:[#allocation1] ss:$2 sm:$0xff] %v2482_v40  ;;  %v999_v17 = vpop.permute.xlu0 %998  ;;  %1262 = vrot.lane.b32.xlu2 %v1257_v10, %s2393_s25  ;;  %v419_v6 = vadd.f32 %v417_v47, %v2951_v57  ;;  %v518_v10 = vmul.f32 %v517_v23, %v505_v21  ;;  %vm1062_vm3 = vcmp.lt.s32.totalorder %v2591_v43, 13  ;;  %vm307_vm6 = vcmp.ge.s32.totalorder %v2591_v43, 48  ;;  %s2201_s28 = sld [smem:[#allocation9 + $0x1d]] }
 0x1e2   :  { %v1000_v20 = vsel %vm988_vm15, %v997_v19, %v999_v17  ;;  %v1001_v11 = vsel %vm988_vm15, %v999_v17, %v997_v19  ;;  %vm1025_vm15 = vcmp.lt.s32.totalorder %v2591_v43, 14  ;;  %v486_v19 = vadd.f32 %v484_v31, %v481_v33 }
 0x1e3   :  { %v1006_v41 = vmul.f32 %v1005_v15, %v1001_v11  ;;  %v1007_v45 = vmul.f32 %v1005_v15, %v1000_v20  ;;  %v521_v15 = vmul.f32 %v520_v18, %v516_v25  ;;  %v1039_v17 = vstv %s3009_s29  ;;  %s2403_s29 = smov 98  }
 0x1e4   :  { %v488_v55 = vsel %vm299_vm4, %v486_v19, 0.0  ;;  %v553_v57 = vsel %vm540_vm0, %v2571_v7, %v2565_v1  ;;  %v1042_v11 = vstv %s3016_s30  ;;  %v454_v33 = vadd.f32 %v452_v34, %v419_v6  ;;  %s2202_s30 = sld [smem:[#allocation9 + $0x4e]] }
 0x1e5   :  { %v1008_v48 = vadd.f32 %v1006_v41, %v1003_v9  ;;  %v1009_v24 = vadd.f32 %v1007_v45, %v1004_v8  ;;  %v453_v9 = vadd.f32 %v451_v35, %v2955_v26  ;;  %v487_v8 = vadd.f32 %v485_v28, %v482_v36 }
 0x1e6   :  { %v523_v22 = vadd.f32 %v521_v15, %v518_v10  ;;  %v524_v0 = vadd.f32 %v522_v29, %v519_v59  ;;  %v556_v4 = vmul.f32 %v554_v3, %v541_v13  ;;  %v559_v31 = vmul.f32 %v557_v61, %v552_v62  ;;  %v3599_v13 = vld [vmem:[#allocation15_spill] sm:$0xff] }
 0x1e7   :  { %v1010_v49 = vsel %vm299_vm4, %v1008_v48, 0.0  ;;  %v1011_v50 = vsel %vm300_vm5, %v1009_v24, 0.0  ;;  %v558_v48 = vmul.f32 %v557_v61, %v553_v57  ;;  %v489_v58 = vsel %vm300_vm5, %v487_v8, 0.0 }
 0x1e8   :  { %v1269_v53 = vld.sshfl [vmem:[#allocation1 + $0x8] sm:$0xff pattern:$0x75316420]  ;;  %v1268_v56 = vld.sshfl [vmem:[#allocation1] sm:$0xff pattern:$0x75316420]  ;;  %v3019_v37 = vadd.f32 %v1010_v49, %v2913_v63  ;;  %v3022_v14 = vadd.f32 %v1011_v50, %v2915_v52  ;;  %v1024_v63 = vpop.permute.xlu2 %1023  ;;  %v490_v7 = vadd.f32 %v488_v55, %v453_v9  ;;  %v491_v47 = vadd.f32 %v489_v58, %v454_v33 }
 0x1e9   :  { %1274 = vrot.lane.b32.xlu1 %v1269_v53, %s2393_s25  ;;  %1272 = vrot.lane.b32.xlu0 %v1268_v56, %s2393_s25  ;;  %1292 = vst [vmem:[#allocation1] ss:$2 sm:$0xff] %v2468_v54  ;;  %v1022_v52 = vpop.permute.xlu1 %1021  ;;  %v525_v35 = vsel %vm301_vm7, %v523_v22, 0.0  ;;  %v560_v36 = vadd.f32 %v558_v48, %v555_v42  ;;  %v561_v18 = vadd.f32 %v559_v31, %v556_v4  ;;  %v1076_v6 = vstv %s3087_s5  ;;  %s2199_s25 = sld [smem:[#allocation9 + $0x1c]]  ;;  %s2404_s5 = smov 97  }
 0x1ea   :  { %v1026_v39 = vsel %vm1025_vm15, %v1022_v52, %v1024_v63  ;;  %v1027_v5 = vsel %vm1025_vm15, %v1024_v63, %v1022_v52  ;;  %v526_v52 = vsel %vm302_vm8, %v524_v0, 0.0  ;;  %v1079_v34 = vstv %s3094_s6  ;;  %s2204_s6 = sld [smem:[#allocation9 + $0x4f]] }
 0x1eb   :  { %v1040_v27 = vmul.f32 %v1039_v17, %v1027_v5  ;;  %v1041_v41 = vmul.f32 %v1039_v17, %v1026_v39  ;;  %v527_v39 = vadd.f32 %v525_v35, %v490_v7  ;;  %v562_v5 = vsel %vm303_vm9, %v560_v36, 0.0 }
 0x1ec   :  { %v528_v19 = vadd.f32 %v526_v52, %v491_v47  ;;  %v563_v30 = vsel %vm304_vm14, %v561_v18, 0.0  ;;  %v306_v17 = vstv %s3590_s2  ;;  %s3126_s2 = sld [smem:[#allocation9 + $0x15]]  ;;  %vm831_vm0 = vcmp.ge.s32.totalorder %v2591_v43, 16 }
 0x1ed   :  { %v564_v32 = vadd.f32 %v562_v5, %v527_v39  ;;  %v1120_v35 = vstv %s3134_s10  ;;  %s2406_s10 = smov 95  }
 0x1ee   :  { %v565_v15 = vadd.f32 %v563_v30, %v528_v19 }
 0x1ef   :  { %v566_v3 = vsel %vm307_vm6, %v564_v32, 0.0  ;;  %vm1138_vm6 = vcmp.lt.s32.totalorder %v2591_v43, 2  ;;  %v1152_v32 = vstv %s2187_s12  ;;  %s2209_s12 = sld [smem:[#allocation9 + $0x21]] }
 0x1f0   :  { %v1294_v26 = vld.sshfl [vmem:[#allocation1 + $0x8] sm:$0xff pattern:$0x75316420]  ;;  %v1293_v20 = vld.sshfl [vmem:[#allocation1] sm:$0xff pattern:$0x75316420]  ;;  %v1059_v1 = vpop.permute.xlu2 %1058 }
 0x1f1   :  { %1299 = vrot.lane.b32.xlu0 %v1294_v26, %s2394_s4  ;;  %1304 = vst [vmem:[#allocation1] ss:$2 sm:$0xff] %v2482_v40  ;;  %v1036_v45 = vpop.permute.xlu1 %1035  ;;  %v1034_v2 = vpop.permute.xlu0 %1033  ;;  %1297 = vrot.lane.b32.xlu2 %v1293_v20, %s2394_s4  ;;  %v569_v20 = vadd.f32 %v565_v15, %v306_v17 }
 0x1f2   :  { %v1037_v44 = vsel %vm1025_vm15, %v1034_v2, %v1036_v45  ;;  %v1038_v38 = vsel %vm1025_vm15, %v1036_v45, %v1034_v2  ;;  %vm570_vm15 = vcmp.ge.s32.totalorder %v2591_v43, 32 }
 0x1f3   :  { %v1043_v24 = vmul.f32 %v1042_v11, %v1038_v38  ;;  %v1044_v46 = vmul.f32 %v1042_v11, %v1037_v44  ;;  %v568_v11 = vadd.f32 %v566_v3, %v306_v17  ;;  %v830_v62 = vadd.f32 %v3599_v13, %v569_v20 }
 0x1f5   :  { %v1045_v49 = vadd.f32 %v1043_v24, %v1040_v27  ;;  %v1046_v50 = vadd.f32 %v1044_v46, %v1041_v41  ;;  %v827_v41 = vsel %vm570_vm15, %v2765_v51, 0.0  ;;  %vm1175_vm15 = vcmp.lt.s32.totalorder %v2591_v43, 1 }
 0x1f6   :  { %v829_v48 = vadd.f32 %v827_v41, %v568_v11 }
 0x1f7   :  { %v1047_v53 = vsel %vm301_vm7, %v1045_v49, 0.0  ;;  %v1048_v56 = vsel %vm302_vm8, %v1046_v50, 0.0  ;;  %v1117_v49 = vstv %s3126_s2  ;;  %s2207_s2 = sld [smem:[#allocation9 + $0x20]] }
 0x1f8   :  { %v1305_v28 = vld.sshfl [vmem:[#allocation1] sm:$0xff pattern:$0x75316420]  ;;  %v1049_v23 = vadd.f32 %v1047_v53, %v3019_v37  ;;  %v1050_v21 = vadd.f32 %v1048_v56, %v3022_v14  ;;  %v1306_v63 = vld.sshfl [vmem:[#allocation1 + $0x8] sm:$0xff pattern:$0x75316420]  ;;  %v1073_v10 = vpop.permute.xlu2 %1072 }
 0x1f9   :  { %1309 = vrot.lane.b32.xlu1 %v1305_v28, %s2394_s4  ;;  %v1061_v25 = vpop.permute.xlu0 %1060  ;;  %1311 = vrot.lane.b32.xlu2 %v1306_v63, %s2394_s4  ;;  %1333 = vst [vmem:[#allocation1] ss:$2 sm:$0xff] %v2468_v54  ;;  %s2203_s4 = sld [smem:[#allocation9 + $0x1e]] }
 0x1fa   :  { %v1063_v37 = vsel %vm1062_vm3, %v1059_v1, %v1061_v25  ;;  %v1064_v14 = vsel %vm1062_vm3, %v1061_v25, %v1059_v1 }
 0x1fb   :  { %v1077_v55 = vmul.f32 %v1076_v6, %v1064_v14  ;;  %v1078_v59 = vmul.f32 %v1076_v6, %v1063_v37  ;;  %v1155_v6 = vstv %s2188_s13  ;;  %s2407_s13 = smov 94  }
 0x200   :  { %v1334_v9 = vld.sshfl [vmem:[#allocation1] sm:$0xff pattern:$0x75316420]  ;;  %v1335_v8 = vld.sshfl [vmem:[#allocation1 + $0x8] sm:$0xff pattern:$0x75316420]  ;;  %v1112_v7 = vpop.permute.xlu2 %1111 }
 0x201   :  { %v1071_v29 = vpop.permute.xlu1 %1070  ;;  %1338 = vrot.lane.b32.xlu0 %v1334_v9, %s2395_s9  ;;  %1340 = vrot.lane.b32.xlu1 %v1335_v8, %s2395_s9  ;;  %1345 = vst [vmem:[#allocation1] ss:$2 sm:$0xff] %v2482_v40 }
 0x202   :  { %v1074_v60 = vsel %vm1062_vm3, %v1071_v29, %v1073_v10  ;;  %v1075_v61 = vsel %vm1062_vm3, %v1073_v10, %v1071_v29  ;;  %vm1103_vm3 = vcmp.lt.s32.totalorder %v2591_v43, 3 }
 0x203   :  { %v1080_v57 = vmul.f32 %v1079_v34, %v1075_v61  ;;  %v1081_v26 = vmul.f32 %v1079_v34, %v1074_v60 }
 0x205   :  { %v1082_v22 = vadd.f32 %v1080_v57, %v1077_v55  ;;  %v1083_v27 = vadd.f32 %v1081_v26, %v1078_v59 }
 0x207   :  { %v1084_v45 = vsel %vm303_vm9, %v1082_v22, 0.0  ;;  %v1085_v2 = vsel %vm304_vm14, %v1083_v27, 0.0 }
 0x208   :  { %v1086_v44 = vadd.f32 %v1084_v45, %v1049_v23  ;;  %v1087_v38 = vadd.f32 %v1085_v2, %v1050_v21  ;;  %v1347_v51 = vld.sshfl [vmem:[#allocation1 + $0x8] sm:$0xff pattern:$0x75316420]  ;;  %v1346_v42 = vld.sshfl [vmem:[#allocation1] sm:$0xff pattern:$0x75316420]  ;;  %v1137_v39 = vpop.permute.xlu2 %1136 }
 0x209   :  { %1352 = vrot.lane.b32.xlu0 %v1347_v51, %s2395_s9  ;;  %1368 = vst [vmem:[#allocation1] ss:$2 sm:$0xff] %v2468_v54  ;;  %v1102_v24 = vpop.permute.xlu1 %1101  ;;  %v1100_v46 = vpop.permute.xlu0 %1099  ;;  %1350 = vrot.lane.b32.xlu2 %v1346_v42, %s2395_s9  ;;  %v1192_v51 = vstv %s2190_s16  ;;  %s2206_s9 = sld [smem:[#allocation9 + $0x50]]  ;;  %s2408_s16 = smov 93  }
 0x20a   :  { %v1088_v33 = vsel %vm831_vm0, %v1086_v44, 0.0  ;;  %v3142_v58 = vadd.f32 %v1087_v38, %v830_v62  ;;  %v1104_v0 = vsel %vm1103_vm3, %v1100_v46, %v1102_v24  ;;  %v1105_v4 = vsel %vm1103_vm3, %v1102_v24, %v1100_v46 }
 0x20b   :  { %v3148_v31 = vadd.f32 %v1088_v33, %v829_v48  ;;  %v1118_v36 = vmul.f32 %v1117_v49, %v1105_v4  ;;  %v1119_v53 = vmul.f32 %v1117_v49, %v1104_v0  ;;  %v1189_v38 = vstv %s2189_s15  ;;  %s2211_s15 = sld [smem:[#allocation9 + $0x22]] }
 0x20c   :  { %vm1227_vm0 = vcmp.lt.s32.totalorder %v2591_v43, 127 }
 0x210   :  { %v1369_v50 = vld.sshfl [vmem:[#allocation1] sm:$0xff pattern:$0x75316420]  ;;  %v1370_v1 = vld.sshfl [vmem:[#allocation1 + $0x8] sm:$0xff pattern:$0x75316420] }
 0x211   :  { %1373 = vrot.lane.b32.xlu1 %v1369_v50, %s2396_s11  ;;  %1380 = vst [vmem:[#allocation1] ss:$2 sm:$0xff] %v2482_v40  ;;  %v1114_v56 = vpop.permute.xlu0 %1113  ;;  %1375 = vrot.lane.b32.xlu2 %v1370_v1, %s2396_s11  ;;  %v1172_v22 = vpop.permute.xlu2 %1171 }
 0x212   :  { %v1115_v47 = vsel %vm1103_vm3, %v1112_v7, %v1114_v56  ;;  %v1116_v28 = vsel %vm1103_vm3, %v1114_v56, %v1112_v7  ;;  %vm1264_vm3 = vcmp.lt.s32.totalorder %v2591_v43, 126 }
 0x213   :  { %v1121_v23 = vmul.f32 %v1120_v35, %v1116_v28  ;;  %v1122_v21 = vmul.f32 %v1120_v35, %v1115_v47 }
 0x215   :  { %v1123_v63 = vadd.f32 %v1121_v23, %v1118_v36  ;;  %v1124_v52 = vadd.f32 %v1122_v21, %v1119_v53 }
 0x217   :  { %v1125_v29 = vsel %vm293_vm10, %v1123_v63, 0.0  ;;  %v1126_v3 = vsel %vm294_vm11, %v1124_v52, 0.0 }
 0x218   :  { %v1381_v18 = vld.sshfl [vmem:[#allocation1] sm:$0xff pattern:$0x75316420]  ;;  %v1382_v25 = vld.sshfl [vmem:[#allocation1 + $0x8] sm:$0xff pattern:$0x75316420] }
 0x219   :  { %1385 = vrot.lane.b32.xlu0 %v1381_v18, %s2396_s11  ;;  %1387 = vrot.lane.b32.xlu1 %v1382_v25, %s2396_s11  ;;  %1405 = vst [vmem:[#allocation1] ss:$2 sm:$0xff] %v2468_v54  ;;  %v1135_v37 = vpop.permute.xlu1 %1134  ;;  %v1186_v24 = vpop.permute.xlu2 %1185  ;;  %s2208_s11 = sld [smem:[#allocation9 + $0x51]] }
 0x21a   :  { %v1139_v14 = vsel %vm1138_vm6, %v1135_v37, %v1137_v39  ;;  %v1140_v5 = vsel %vm1138_vm6, %v1137_v39, %v1135_v37  ;;  %v1241_v39 = vstv %s2193_s18  ;;  %s2213_s18 = sld [smem:[#allocation9 + $0x23]] }
 0x21b   :  { %v1153_v10 = vmul.f32 %v1152_v32, %v1140_v5  ;;  %v1154_v15 = vmul.f32 %v1152_v32, %v1139_v14  ;;  %v1244_v5 = vstv %s2194_s20  ;;  %s2214_s20 = sld [smem:[#allocation9 + $0x54]] }
 0x220   :  { %v1407_v19 = vld.sshfl [vmem:[#allocation1 + $0x8] sm:$0xff pattern:$0x75316420]  ;;  %v1406_v30 = vld.sshfl [vmem:[#allocation1] sm:$0xff pattern:$0x75316420] }
 0x221   :  { %1412 = vrot.lane.b32.xlu0 %v1407_v19, %s2397_s14  ;;  %1417 = vst [vmem:[#allocation1] ss:$2 sm:$0xff] %v2482_v40  ;;  %1410 = vrot.lane.b32.xlu2 %v1406_v30, %s2397_s14  ;;  %v1149_v34 = vpop.permute.xlu1 %1148  ;;  %v1147_v9 = vpop.permute.xlu0 %1146 }
 0x222   :  { %v1150_v8 = vsel %vm1138_vm6, %v1147_v9, %v1149_v34  ;;  %v1151_v17 = vsel %vm1138_vm6, %v1149_v34, %v1147_v9  ;;  %v3600_v9 = vld [vmem:[#allocation17_spill] sm:$0xff]  ;;  %vm1301_vm6 = vcmp.lt.s32.totalorder %v2591_v43, 125 }
 0x223   :  { %v1156_v55 = vmul.f32 %v1155_v6, %v1151_v17  ;;  %v1157_v59 = vmul.f32 %v1155_v6, %v1150_v8  ;;  %v3601_v17 = vld [vmem:[#allocation16_spill] sm:$0xff] }
 0x225   :  { %v1158_v60 = vadd.f32 %v1156_v55, %v1153_v10  ;;  %v1159_v61 = vadd.f32 %v1157_v59, %v1154_v15 }
 0x227   :  { %v1160_v20 = vsel %vm295_vm12, %v1158_v60, 0.0  ;;  %v1161_v11 = vsel %vm296_vm13, %v1159_v61, 0.0 }
 0x228   :  { %v1418_v57 = vld.sshfl [vmem:[#allocation1] sm:$0xff pattern:$0x75316420]  ;;  %v1419_v26 = vld.sshfl [vmem:[#allocation1 + $0x8] sm:$0xff pattern:$0x75316420]  ;;  %v1162_v27 = vadd.f32 %v1160_v20, %v1125_v29  ;;  %v1163_v41 = vadd.f32 %v1161_v11, %v1126_v3 }
 0x229   :  { %1422 = vrot.lane.b32.xlu1 %v1418_v57, %s2397_s14  ;;  %1442 = vst [vmem:[#allocation1] ss:$2 sm:$0xff] %v2468_v54  ;;  %1424 = vrot.lane.b32.xlu2 %v1419_v26, %s2397_s14  ;;  %v1174_v45 = vpop.permute.xlu0 %1173  ;;  %s2210_s14 = sld [smem:[#allocation9 + $0x52]] }
 0x22a   :  { %v1176_v2 = vsel %vm1175_vm15, %v1172_v22, %v1174_v45  ;;  %v1177_v13 = vsel %vm1175_vm15, %v1174_v45, %v1172_v22  ;;  %v1278_v45 = vstv %s2195_s21  ;;  %s2215_s21 = sld [smem:[#allocation9 + $0x24]] }
 0x22b   :  { %v1190_v42 = vmul.f32 %v1189_v38, %v1177_v13  ;;  %v1191_v48 = vmul.f32 %v1189_v38, %v1176_v2 }
 0x230   :  { %v1443_v62 = vld.sshfl [vmem:[#allocation1] sm:$0xff pattern:$0x75316420]  ;;  %v1444_v44 = vld.sshfl [vmem:[#allocation1 + $0x8] sm:$0xff pattern:$0x75316420] }
 0x231   :  { %1447 = vrot.lane.b32.xlu0 %v1443_v62, %s2398_s17  ;;  %1449 = vrot.lane.b32.xlu1 %v1444_v44, %s2398_s17  ;;  %1454 = vst [vmem:[#allocation1] ss:$2 sm:$0xff] %v2482_v40  ;;  %v1184_v46 = vpop.permute.xlu1 %1183  ;;  %v1281_v62 = vstv %s2196_s0  ;;  %s2216_s0 = sld [smem:[#allocation9 + $0x55]] }
 0x232   :  { %v1187_v33 = vsel %vm1175_vm15, %v1184_v46, %v1186_v24  ;;  %v1188_v0 = vsel %vm1175_vm15, %v1186_v24, %v1184_v46  ;;  %vm1342_vm15 = vcmp.lt.s32.totalorder %v2591_v43, 115 }
 0x233   :  { %v1193_v4 = vmul.f32 %v1192_v51, %v1188_v0  ;;  %v1194_v49 = vmul.f32 %v1192_v51, %v1187_v33  ;;  %v1236_v14 = vpop.permute.xlu2 %1235 }
 0x235   :  { %v1195_v50 = vadd.f32 %v1193_v4, %v1190_v42  ;;  %v1196_v1 = vadd.f32 %v1194_v49, %v1191_v48 }
 0x237   :  { %v1197_v36 = vsel %vm297_vm1, %v1195_v50, 0.0  ;;  %v1198_v53 = vsel %vm298_vm2, %v1196_v1, 0.0 }
 0x238   :  { %v1456_v7 = vld.sshfl [vmem:[#allocation1 + $0x8] sm:$0xff pattern:$0x75316420]  ;;  %v1455_v35 = vld.sshfl [vmem:[#allocation1] sm:$0xff pattern:$0x75316420]  ;;  %v1199_v56 = vadd.f32 %v1197_v36, %v1162_v27  ;;  %v1200_v47 = vadd.f32 %v1198_v53, %v1163_v41 }
 0x239   :  { %1461 = vrot.lane.b32.xlu0 %v1456_v7, %s2398_s17  ;;  %1477 = vst [vmem:[#allocation1] ss:$2 sm:$0xff] %v2468_v54  ;;  %1459 = vrot.lane.b32.xlu2 %v1455_v35, %s2398_s17  ;;  %s2212_s17 = sld [smem:[#allocation9 + $0x53]] }
 0x23a   :  { %v1215_v8 = vadd.f32 %v3600_v9, %v1200_v47  ;;  %v1214_v55 = vadd.f32 %v3601_v17, %v1199_v56 }
 0x23b   :  { %v1263_v11 = vpop.permute.xlu2 %1262 }
 0x240   :  { %v1478_v28 = vld.sshfl [vmem:[#allocation1] sm:$0xff pattern:$0x75316420]  ;;  %v1479_v23 = vld.sshfl [vmem:[#allocation1 + $0x8] sm:$0xff pattern:$0x75316420] }
 0x241   :  { %1482 = vrot.lane.b32.xlu1 %v1478_v28, %s2399_s19  ;;  %1489 = vst [vmem:[#allocation1] ss:$2 sm:$0xff] %v2482_v40  ;;  %1484 = vrot.lane.b32.xlu2 %v1479_v23, %s2399_s19 }
 0x243   :  { %v1226_v21 = vpop.permute.xlu1 %1225  ;;  %v1224_v63 = vpop.permute.xlu0 %1223 }
 0x244   :  { %v1228_v52 = vsel %vm1227_vm0, %v1224_v63, %v1226_v21  ;;  %v1229_v18 = vsel %vm1227_vm0, %v1226_v21, %v1224_v63  ;;  %v1315_v21 = vstv %s2197_s1  ;;  %s2217_s1 = sld [smem:[#allocation9 + $0x25]] }
 0x245   :  { %v1242_v19 = vmul.f32 %v1241_v39, %v1228_v52  ;;  %v1243_v30 = vmul.f32 %v1241_v39, %v1229_v18  ;;  %v1318_v18 = vstv %s2198_s24  ;;  %s2218_s24 = sld [smem:[#allocation9 + $0x56]] }
 0x248   :  { %v1490_v25 = vld.sshfl [vmem:[#allocation1] sm:$0xff pattern:$0x75316420]  ;;  %v1491_v37 = vld.sshfl [vmem:[#allocation1 + $0x8] sm:$0xff pattern:$0x75316420] }
 0x249   :  { %1494 = vrot.lane.b32.xlu0 %v1490_v25, %s2399_s19  ;;  %1496 = vrot.lane.b32.xlu1 %v1491_v37, %s2399_s19  ;;  %1514 = vst [vmem:[#allocation1] ss:$2 sm:$0xff] %v2468_v54  ;;  %s2409_s19 = smov 83  }
 0x24b   :  { %v1238_v32 = vpop.permute.xlu0 %1237  ;;  %v1298_v49 = vpop.permute.xlu2 %1297 }
 0x24c   :  { %v1239_v6 = vsel %vm1227_vm0, %v1236_v14, %v1238_v32  ;;  %v1240_v10 = vsel %vm1227_vm0, %v1238_v32, %v1236_v14  ;;  %vm1377_vm0 = vcmp.lt.s32.totalorder %v2591_v43, 114 }
 0x24d   :  { %v1245_v15 = vmul.f32 %v1244_v5, %v1239_v6  ;;  %v1246_v34 = vmul.f32 %v1244_v5, %v1240_v10 }
 0x24f   :  { %v1247_v59 = vadd.f32 %v1245_v15, %v1242_v19  ;;  %v1248_v29 = vadd.f32 %v1246_v34, %v1243_v30 }
 0x250   :  { %v1516_v3 = vld.sshfl [vmem:[#allocation1 + $0x8] sm:$0xff pattern:$0x75316420]  ;;  %v1515_v60 = vld.sshfl [vmem:[#allocation1] sm:$0xff pattern:$0x75316420] }
 0x251   :  { %1521 = vrot.lane.b32.xlu0 %v1516_v3, %s2400_s22  ;;  %1526 = vst [vmem:[#allocation1] ss:$2 sm:$0xff] %v2482_v40  ;;  %v1249_v61 = vsel %vm299_vm4, %v1247_v59, 0.0  ;;  %v1250_v57 = vsel %vm300_vm5, %v1248_v29, 0.0  ;;  %1519 = vrot.lane.b32.xlu2 %v1515_v60, %s2400_s22 }
 0x252   :  { %v1251_v26 = vadd.f32 %v1249_v61, %v1214_v55  ;;  %v1252_v20 = vadd.f32 %v1250_v57, %v1215_v8 }
 0x253   :  { %v1261_v22 = vpop.permute.xlu1 %1260  ;;  %v1312_v52 = vpop.permute.xlu2 %1311 }
 0x254   :  { %v1265_v27 = vsel %vm1264_vm3, %v1261_v22, %v1263_v11  ;;  %v1266_v41 = vsel %vm1264_vm3, %v1263_v11, %v1261_v22  ;;  %v1359_v22 = vstv %s2200_s27  ;;  %s2220_s27 = sld [smem:[#allocation9 + $0x57]] }
 0x255   :  { %v1279_v44 = vmul.f32 %v1278_v45, %v1265_v27  ;;  %v1280_v38 = vmul.f32 %v1278_v45, %v1266_v41 }
 0x258   :  { %v1527_v2 = vld.sshfl [vmem:[#allocation1] sm:$0xff pattern:$0x75316420]  ;;  %v1528_v13 = vld.sshfl [vmem:[#allocation1 + $0x8] sm:$0xff pattern:$0x75316420] }
 0x259   :  { %1531 = vrot.lane.b32.xlu1 %v1527_v2, %s2400_s22  ;;  %1551 = vst [vmem:[#allocation1] ss:$2 sm:$0xff] %v2468_v54  ;;  %1533 = vrot.lane.b32.xlu2 %v1528_v13, %s2400_s22  ;;  %s2410_s22 = smov 82  }
 0x25b   :  { %v1275_v51 = vpop.permute.xlu1 %1274  ;;  %v1273_v42 = vpop.permute.xlu0 %1272 }
 0x25c   :  { %v1276_v48 = vsel %vm1264_vm3, %v1273_v42, %v1275_v51  ;;  %v1277_v24 = vsel %vm1264_vm3, %v1275_v51, %v1273_v42  ;;  %vm1414_vm3 = vcmp.lt.s32.totalorder %v2591_v43, 113 }
 0x25d   :  { %v1282_v46 = vmul.f32 %v1281_v62, %v1276_v48  ;;  %v1283_v33 = vmul.f32 %v1281_v62, %v1277_v24 }
 0x25f   :  { %v1284_v0 = vadd.f32 %v1282_v46, %v1279_v44  ;;  %v1285_v4 = vadd.f32 %v1283_v33, %v1280_v38 }
 0x260   :  { %v1552_v50 = vld.sshfl [vmem:[#allocation1] sm:$0xff pattern:$0x75316420]  ;;  %v1553_v1 = vld.sshfl [vmem:[#allocation1 + $0x8] sm:$0xff pattern:$0x75316420] }
 0x261   :  { %1556 = vrot.lane.b32.xlu0 %v1552_v50, %s2401_s23  ;;  %v1286_v7 = vsel %vm301_vm7, %v1284_v0, 0.0  ;;  %v1287_v35 = vsel %vm302_vm8, %v1285_v4, 0.0  ;;  %1558 = vrot.lane.b32.xlu1 %v1553_v1, %s2401_s23  ;;  %1563 = vst [vmem:[#allocation1] ss:$2 sm:$0xff] %v2482_v40  ;;  %v1391_v4 = vstv %s2201_s28  ;;  %s2221_s28 = sld [smem:[#allocation9 + $0x27]] }
 0x262   :  { %v1288_v36 = vadd.f32 %v1286_v7, %v1251_v26  ;;  %v1289_v53 = vadd.f32 %v1287_v35, %v1252_v20  ;;  %v1356_v20 = vstv %s2199_s25  ;;  %s2219_s25 = sld [smem:[#allocation9 + $0x26]] }
 0x263   :  { %v1300_v56 = vpop.permute.xlu0 %1299  ;;  %v1351_v11 = vpop.permute.xlu2 %1350 }
 0x264   :  { %v1302_v47 = vsel %vm1301_vm6, %v1298_v49, %v1300_v56  ;;  %v1303_v28 = vsel %vm1301_vm6, %v1300_v56, %v1298_v49  ;;  %v1394_v49 = vstv %s2202_s30  ;;  %s2222_s30 = sld [smem:[#allocation9 + $0x58]] }
 0x265   :  { %v1316_v25 = vmul.f32 %v1315_v21, %v1302_v47  ;;  %v1317_v39 = vmul.f32 %v1315_v21, %v1303_v28 }
 0x268   :  { %v1565_v23 = vld.sshfl [vmem:[#allocation1 + $0x8] sm:$0xff pattern:$0x75316420]  ;;  %v1564_v63 = vld.sshfl [vmem:[#allocation1] sm:$0xff pattern:$0x75316420] }
 0x269   :  { %1570 = vrot.lane.b32.xlu0 %v1565_v23, %s2401_s23  ;;  %1568 = vrot.lane.b32.xlu2 %v1564_v63, %s2401_s23  ;;  %1594 = vst [vmem:[#allocation1] ss:$2 sm:$0xff] %v2468_v54  ;;  %s2411_s23 = smov 81  }
 0x26b   :  { %v1310_v37 = vpop.permute.xlu1 %1309  ;;  %v1376_v42 = vpop.permute.xlu2 %1375 }
 0x26c   :  { %v1313_v14 = vsel %vm1301_vm6, %v1310_v37, %v1312_v52  ;;  %v1314_v5 = vsel %vm1301_vm6, %v1312_v52, %v1310_v37  ;;  %vm1451_vm6 = vcmp.lt.s32.totalorder %v2591_v43, 112 }
 0x26d   :  { %v1319_v19 = vmul.f32 %v1318_v18, %v1313_v14  ;;  %v1320_v30 = vmul.f32 %v1318_v18, %v1314_v5 }
 0x26f   :  { %v1321_v32 = vadd.f32 %v1319_v19, %v1316_v25  ;;  %v1322_v6 = vadd.f32 %v1320_v30, %v1317_v39 }
 0x270   :  { %v1595_v10 = vld.sshfl [vmem:[#allocation1] sm:$0xff pattern:$0x75316420]  ;;  %v1596_v15 = vld.sshfl [vmem:[#allocation1 + $0x8] sm:$0xff pattern:$0x75316420] }
 0x271   :  { %v1323_v34 = vsel %vm303_vm9, %v1321_v32, 0.0  ;;  %v1324_v9 = vsel %vm304_vm14, %v1322_v6, 0.0  ;;  %1599 = vrot.lane.b32.xlu1 %v1595_v10, %s2402_s26  ;;  %1606 = vst [vmem:[#allocation1] ss:$2 sm:$0xff] %v2482_v40  ;;  %1601 = vrot.lane.b32.xlu2 %v1596_v15, %s2402_s26  ;;  %v1428_v15 = vstv %s2203_s4  ;;  %s2223_s4 = sld [smem:[#allocation9 + $0x28]] }
 0x272   :  { %v1325_v8 = vadd.f32 %v1323_v34, %v1288_v36  ;;  %v1326_v17 = vadd.f32 %v1324_v9, %v1289_v53  ;;  %v1431_v34 = vstv %s2204_s6  ;;  %s2224_s6 = sld [smem:[#allocation9 + $0x59]] }
 0x273   :  { %v1339_v55 = vpop.permute.xlu0 %1338  ;;  %v1341_v59 = vpop.permute.xlu1 %1340 }
 0x274   :  { %v3242_v29 = vadd.f32 %v1325_v8, %v3148_v31  ;;  %v3245_v3 = vadd.f32 %v1326_v17, %v3142_v58  ;;  %v1343_v60 = vsel %vm1342_vm15, %v1339_v55, %v1341_v59  ;;  %v1344_v61 = vsel %vm1342_vm15, %v1341_v59, %v1339_v55 }
 0x275   :  { %v1357_v31 = vmul.f32 %v1356_v20, %v1343_v60  ;;  %v1358_v27 = vmul.f32 %v1356_v20, %v1344_v61 }
 0x278   :  { %v1607_v57 = vld.sshfl [vmem:[#allocation1] sm:$0xff pattern:$0x75316420]  ;;  %v1608_v26 = vld.sshfl [vmem:[#allocation1 + $0x8] sm:$0xff pattern:$0x75316420] }
 0x279   :  { %1611 = vrot.lane.b32.xlu0 %v1607_v57, %s2402_s26  ;;  %1613 = vrot.lane.b32.xlu1 %v1608_v26, %s2402_s26  ;;  %1629 = vst [vmem:[#allocation1] ss:$2 sm:$0xff] %v2468_v54  ;;  %s2412_s26 = smov 80  }
 0x27b   :  { %v1353_v41 = vpop.permute.xlu0 %1352  ;;  %v1411_v37 = vpop.permute.xlu2 %1410 }
 0x27c   :  { %v1354_v58 = vsel %vm1342_vm15, %v1351_v11, %v1353_v41  ;;  %v1355_v45 = vsel %vm1342_vm15, %v1353_v41, %v1351_v11  ;;  %vm1486_vm15 = vcmp.lt.s32.totalorder %v2591_v43, 111 }
 0x27d   :  { %v1360_v2 = vmul.f32 %v1359_v22, %v1354_v58  ;;  %v1361_v13 = vmul.f32 %v1359_v22, %v1355_v45 }
 0x27f   :  { %v1362_v62 = vadd.f32 %v1360_v2, %v1357_v31  ;;  %v1363_v44 = vadd.f32 %v1361_v13, %v1358_v27 }
 0x280   :  { %v1631_v38 = vld.sshfl [vmem:[#allocation1 + $0x8] sm:$0xff pattern:$0x75316420]  ;;  %v1630_v51 = vld.sshfl [vmem:[#allocation1] sm:$0xff pattern:$0x75316420] }
 0x281   :  { %1636 = vrot.lane.b32.xlu0 %v1631_v38, %s2403_s29  ;;  %1641 = vst [vmem:[#allocation1] ss:$2 sm:$0xff] %v2482_v40  ;;  %1634 = vrot.lane.b32.xlu2 %v1630_v51, %s2403_s29  ;;  %v1364_v28 = vsel %vm293_vm10, %v1362_v62, 0.0  ;;  %v1365_v23 = vsel %vm294_vm11, %v1363_v44, 0.0  ;;  %v1465_v51 = vstv %s2205_s7  ;;  %s2225_s7 = sld [smem:[#allocation9 + $0x29]] }
 0x283   :  { %v1374_v48 = vpop.permute.xlu1 %1373  ;;  %v1425_v17 = vpop.permute.xlu2 %1424 }
 0x284   :  { %v1378_v24 = vsel %vm1377_vm0, %v1374_v48, %v1376_v42  ;;  %v1379_v46 = vsel %vm1377_vm0, %v1376_v42, %v1374_v48  ;;  %v1468_v48 = vstv %s2206_s9  ;;  %s2226_s9 = sld [smem:[#allocation9 + $0x5a]] }
 0x285   :  { %v1392_v50 = vmul.f32 %v1391_v4, %v1378_v24  ;;  %v1393_v1 = vmul.f32 %v1391_v4, %v1379_v46 }
 0x288   :  { %v1642_v33 = vld.sshfl [vmem:[#allocation1] sm:$0xff pattern:$0x75316420]  ;;  %v1643_v0 = vld.sshfl [vmem:[#allocation1 + $0x8] sm:$0xff pattern:$0x75316420] }
 0x289   :  { %1646 = vrot.lane.b32.xlu1 %v1642_v33, %s2403_s29  ;;  %1666 = vst [vmem:[#allocation1] ss:$2 sm:$0xff] %v2468_v54  ;;  %1648 = vrot.lane.b32.xlu2 %v1643_v0, %s2403_s29  ;;  %s2413_s29 = smov 79  }
 0x28b   :  { %v1386_v7 = vpop.permute.xlu0 %1385  ;;  %v1388_v35 = vpop.permute.xlu1 %1387 }
 0x28c   :  { %v1389_v36 = vsel %vm1377_vm0, %v1386_v7, %v1388_v35  ;;  %v1390_v53 = vsel %vm1377_vm0, %v1388_v35, %v1386_v7  ;;  %vm1523_vm0 = vcmp.lt.s32.totalorder %v2591_v43, 110 }
 0x28d   :  { %v1395_v56 = vmul.f32 %v1394_v49, %v1389_v36  ;;  %v1396_v47 = vmul.f32 %v1394_v49, %v1390_v53 }
 0x28f   :  { %v1397_v21 = vadd.f32 %v1395_v56, %v1392_v50  ;;  %v1398_v63 = vadd.f32 %v1396_v47, %v1393_v1 }
 0x290   :  { %v1667_v52 = vld.sshfl [vmem:[#allocation1] sm:$0xff pattern:$0x75316420]  ;;  %v1668_v18 = vld.sshfl [vmem:[#allocation1 + $0x8] sm:$0xff pattern:$0x75316420] }
 0x291   :  { %1671 = vrot.lane.b32.xlu0 %v1667_v52, %s2404_s5  ;;  %1673 = vrot.lane.b32.xlu1 %v1668_v18, %s2404_s5  ;;  %1678 = vst [vmem:[#allocation1] ss:$2 sm:$0xff] %v2482_v40  ;;  %v1399_v25 = vsel %vm295_vm12, %v1397_v21, 0.0  ;;  %v1400_v39 = vsel %vm296_vm13, %v1398_v63, 0.0  ;;  %v1500_v18 = vstv %s2207_s2  ;;  %s2227_s2 = sld [smem:[#allocation9 + $0x2a]] }
 0x292   :  { %v1401_v14 = vadd.f32 %v1399_v25, %v1364_v28  ;;  %v1402_v5 = vadd.f32 %v1400_v39, %v1365_v23  ;;  %v1503_v25 = vstv %s2208_s11  ;;  %s2229_s11 = sld [smem:[#allocation9 + $0x2b]] }
 0x293   :  { %v1413_v19 = vpop.permute.xlu0 %1412  ;;  %v1460_v42 = vpop.permute.xlu2 %1459 }
 0x294   :  { %v1415_v30 = vsel %vm1414_vm3, %v1411_v37, %v1413_v19  ;;  %v1416_v32 = vsel %vm1414_vm3, %v1413_v19, %v1411_v37 }
 0x295   :  { %v1429_v9 = vmul.f32 %v1428_v15, %v1415_v30  ;;  %v1430_v8 = vmul.f32 %v1428_v15, %v1416_v32 }
 0x298   :  { %v1680_v6 = vld.sshfl [vmem:[#allocation1 + $0x8] sm:$0xff pattern:$0x75316420]  ;;  %v1679_v10 = vld.sshfl [vmem:[#allocation1] sm:$0xff pattern:$0x75316420] }
 0x299   :  { %1685 = vrot.lane.b32.xlu0 %v1680_v6, %s2404_s5  ;;  %1703 = vst [vmem:[#allocation1] ss:$2 sm:$0xff] %v2468_v54  ;;  %1683 = vrot.lane.b32.xlu2 %v1679_v10, %s2404_s5  ;;  %s2414_s5 = smov 78  }
 0x29b   :  { %v1423_v55 = vpop.permute.xlu1 %1422  ;;  %v1485_v47 = vpop.permute.xlu2 %1484 }
 0x29c   :  { %v1426_v59 = vsel %vm1414_vm3, %v1423_v55, %v1425_v17  ;;  %v1427_v60 = vsel %vm1414_vm3, %v1425_v17, %v1423_v55  ;;  %vm1560_vm3 = vcmp.lt.s32.totalorder %v2591_v43, 109 }
 0x29d   :  { %v1432_v61 = vmul.f32 %v1431_v34, %v1426_v59  ;;  %v1433_v57 = vmul.f32 %v1431_v34, %v1427_v60 }
 0x29f   :  { %v1434_v26 = vadd.f32 %v1432_v61, %v1429_v9  ;;  %v1435_v20 = vadd.f32 %v1433_v57, %v1430_v8 }
 0x2a0   :  { %v1704_v11 = vld.sshfl [vmem:[#allocation1] sm:$0xff pattern:$0x75316420]  ;;  %v1705_v22 = vld.sshfl [vmem:[#allocation1 + $0x8] sm:$0xff pattern:$0x75316420] }
 0x2a1   :  { %1708 = vrot.lane.b32.xlu1 %v1704_v11, %s2405_s8  ;;  %1715 = vst [vmem:[#allocation1] ss:$2 sm:$0xff] %v2482_v40  ;;  %v1436_v31 = vsel %vm297_vm1, %v1434_v26, 0.0  ;;  %v1437_v27 = vsel %vm298_vm2, %v1435_v20, 0.0  ;;  %1710 = vrot.lane.b32.xlu2 %v1705_v22, %s2405_s8  ;;  %v1537_v22 = vstv %s2209_s12  ;;  %s2230_s12 = sld [smem:[#allocation9 + $0x5c]] }
 0x2a2   :  { %v1438_v41 = vadd.f32 %v1436_v31, %v1401_v14  ;;  %v1439_v58 = vadd.f32 %v1437_v27, %v1402_v5  ;;  %v1540_v31 = vstv %s2210_s14  ;;  %s3478_s14 = sld [smem:[#allocation9 + $0x5d]] }
 0x2a3   :  { %v1448_v45 = vpop.permute.xlu0 %1447  ;;  %v1450_v2 = vpop.permute.xlu1 %1449 }
 0x2a4   :  { %v1452_v13 = vsel %vm1451_vm6, %v1448_v45, %v1450_v2  ;;  %v1453_v62 = vsel %vm1451_vm6, %v1450_v2, %v1448_v45 }
 0x2a5   :  { %v1466_v24 = vmul.f32 %v1465_v51, %v1452_v13  ;;  %v1467_v46 = vmul.f32 %v1465_v51, %v1453_v62 }
 0x2a8   :  { %v1716_v44 = vld.sshfl [vmem:[#allocation1] sm:$0xff pattern:$0x75316420]  ;;  %v1717_v38 = vld.sshfl [vmem:[#allocation1 + $0x8] sm:$0xff pattern:$0x75316420] }
 0x2a9   :  { %1720 = vrot.lane.b32.xlu0 %v1716_v44, %s2405_s8  ;;  %1722 = vrot.lane.b32.xlu1 %v1717_v38, %s2405_s8  ;;  %1738 = vst [vmem:[#allocation1] ss:$2 sm:$0xff] %v2468_v54  ;;  %s2415_s8 = smov 77  }
 0x2ab   :  { %v1462_v33 = vpop.permute.xlu0 %1461  ;;  %v1520_v55 = vpop.permute.xlu2 %1519 }
 0x2ac   :  { %v1463_v0 = vsel %vm1451_vm6, %v1460_v42, %v1462_v33  ;;  %v1464_v4 = vsel %vm1451_vm6, %v1462_v33, %v1460_v42 }
 0x2ad   :  { %v1469_v49 = vmul.f32 %v1468_v48, %v1463_v0  ;;  %v1470_v50 = vmul.f32 %v1468_v48, %v1464_v4 }
 0x2af   :  { %v1471_v1 = vadd.f32 %v1469_v49, %v1466_v24  ;;  %v1472_v7 = vadd.f32 %v1470_v50, %v1467_v46 }
 0x2b0   :  { %v1740_v35 = vld.sshfl [vmem:[#allocation1 + $0x8] sm:$0xff pattern:$0x75316420]  ;;  %v1739_v36 = vld.sshfl [vmem:[#allocation1] sm:$0xff pattern:$0x75316420] }
 0x2b1   :  { %1745 = vrot.lane.b32.xlu0 %v1740_v35, %s2406_s10  ;;  %1750 = vst [vmem:[#allocation1] ss:$2 sm:$0xff] %v2482_v40  ;;  %v1473_v53 = vadd.f32 %v1471_v1, %v1438_v41  ;;  %v1474_v56 = vadd.f32 %v1472_v7, %v1439_v58  ;;  %1743 = vrot.lane.b32.xlu2 %v1739_v36, %s2406_s10  ;;  %v1574_v36 = vstv %s2211_s15  ;;  %s3481_s15 = sld [smem:[#allocation9 + $0x2d]] }
 0x2b3   :  { %v1483_v28 = vpop.permute.xlu1 %1482  ;;  %v1534_v58 = vpop.permute.xlu2 %1533 }
 0x2b4   :  { %v1487_v23 = vsel %vm1486_vm15, %v1483_v28, %v1485_v47  ;;  %v1488_v21 = vsel %vm1486_vm15, %v1485_v47, %v1483_v28 }
 0x2b5   :  { %v1501_v39 = vmul.f32 %v1500_v18, %v1487_v23  ;;  %v1502_v37 = vmul.f32 %v1500_v18, %v1488_v21 }
 0x2b8   :  { %v1751_v63 = vld.sshfl [vmem:[#allocation1] sm:$0xff pattern:$0x75316420]  ;;  %v1752_v52 = vld.sshfl [vmem:[#allocation1 + $0x8] sm:$0xff pattern:$0x75316420] }
 0x2b9   :  { %1755 = vrot.lane.b32.xlu1 %v1751_v63, %s2406_s10  ;;  %1775 = vst [vmem:[#allocation1] ss:$2 sm:$0xff] %v2468_v54  ;;  %1757 = vrot.lane.b32.xlu2 %v1752_v52, %s2406_s10  ;;  %s2228_s10 = sld [smem:[#allocation9 + $0x5b]] }
 0x2bb   :  { %v1495_v14 = vpop.permute.xlu0 %1494  ;;  %v1497_v5 = vpop.permute.xlu1 %1496 }
 0x2bc   :  { %v1498_v19 = vsel %vm1486_vm15, %v1495_v14, %v1497_v5  ;;  %v1499_v30 = vsel %vm1486_vm15, %v1497_v5, %v1495_v14  ;;  %v3602_v5 = vld [vmem:[#allocation14_spill] sm:$0xff]  ;;  %vm1603_vm15 = vcmp.lt.s32.totalorder %v2591_v43, 99 }
 0x2bd   :  { %v1504_v32 = vmul.f32 %v1503_v25, %v1498_v19  ;;  %v1505_v6 = vmul.f32 %v1503_v25, %v1499_v30  ;;  %vm1330_vm6 = vcmp.lt.s32.totalorder %v3602_v5, 240 }
 0x2bf   :  { %v1506_v10 = vadd.f32 %v1504_v32, %v1501_v39  ;;  %v1507_v15 = vadd.f32 %v1505_v6, %v1502_v37 }
 0x2c0   :  { %v1776_v34 = vld.sshfl [vmem:[#allocation1] sm:$0xff pattern:$0x75316420]  ;;  %v1777_v9 = vld.sshfl [vmem:[#allocation1 + $0x8] sm:$0xff pattern:$0x75316420] }
 0x2c1   :  { %1780 = vrot.lane.b32.xlu0 %v1776_v34, %s2407_s13  ;;  %1782 = vrot.lane.b32.xlu1 %v1777_v9, %s2407_s13  ;;  %1787 = vst [vmem:[#allocation1] ss:$2 sm:$0xff] %v2482_v40  ;;  %v1508_v8 = vsel %vm299_vm4, %v1506_v10, 0.0  ;;  %v1509_v17 = vsel %vm300_vm5, %v1507_v15, 0.0 }
 0x2c2   :  { %v1510_v59 = vadd.f32 %v1508_v8, %v1473_v53  ;;  %v1511_v60 = vadd.f32 %v1509_v17, %v1474_v56  ;;  %v1577_v56 = vstv %s2212_s17  ;;  %s3485_s17 = sld [smem:[#allocation9 + $0x2e]] }
 0x2c3   :  { %v1522_v61 = vpop.permute.xlu0 %1521  ;;  %v1569_v53 = vpop.permute.xlu2 %1568 }
 0x2c4   :  { %v1524_v57 = vsel %vm1523_vm0, %v1520_v55, %v1522_v61  ;;  %v1525_v26 = vsel %vm1523_vm0, %v1522_v61, %v1520_v55  ;;  %v1617_v61 = vstv %s2213_s18  ;;  %s3487_s18 = sld [smem:[#allocation9 + $0x5f]] }
 0x2c5   :  { %v1538_v27 = vmul.f32 %v1537_v22, %v1524_v57  ;;  %v1539_v41 = vmul.f32 %v1537_v22, %v1525_v26  ;;  %v1620_v57 = vstv %s2214_s20  ;;  %s3501_s20 = sld [smem:[#allocation9 + $0x60]] }
 0x2c8   :  { %v1789_v20 = vld.sshfl [vmem:[#allocation1 + $0x8] sm:$0xff pattern:$0x75316420]  ;;  %v1788_v11 = vld.sshfl [vmem:[#allocation1] sm:$0xff pattern:$0x75316420] }
 0x2c9   :  { %1794 = vrot.lane.b32.xlu0 %v1789_v20, %s2407_s13  ;;  %1812 = vst [vmem:[#allocation1] ss:$2 sm:$0xff] %v2468_v54  ;;  %1792 = vrot.lane.b32.xlu2 %v1788_v11, %s2407_s13  ;;  %s3473_s13 = sld [smem:[#allocation9 + $0x2c]] }
 0x2cb   :  { %v1532_v45 = vpop.permute.xlu1 %1531  ;;  %v1602_v10 = vpop.permute.xlu2 %1601 }
 0x2cc   :  { %v1535_v2 = vsel %vm1523_vm0, %v1532_v45, %v1534_v58  ;;  %v1536_v13 = vsel %vm1523_vm0, %v1534_v58, %v1532_v45  ;;  %vm1638_vm0 = vcmp.lt.s32.totalorder %v2591_v43, 98 }
 0x2cd   :  { %v1541_v62 = vmul.f32 %v1540_v31, %v1535_v2  ;;  %v1542_v44 = vmul.f32 %v1540_v31, %v1536_v13 }
 0x2cf   :  { %v1543_v38 = vadd.f32 %v1541_v62, %v1538_v27  ;;  %v1544_v51 = vadd.f32 %v1542_v44, %v1539_v41 }
 0x2d0   :  { %v1813_v42 = vld.sshfl [vmem:[#allocation1] sm:$0xff pattern:$0x75316420]  ;;  %v1814_v48 = vld.sshfl [vmem:[#allocation1 + $0x8] sm:$0xff pattern:$0x75316420] }
 0x2d1   :  { %1817 = vrot.lane.b32.xlu1 %v1813_v42, %s2408_s16  ;;  %1824 = vst [vmem:[#allocation1] ss:$2 sm:$0xff] %v2482_v40  ;;  %v1545_v24 = vsel %vm301_vm7, %v1543_v38, 0.0  ;;  %v1546_v46 = vsel %vm302_vm8, %v1544_v51, 0.0  ;;  %1819 = vrot.lane.b32.xlu2 %v1814_v48, %s2408_s16  ;;  %v1652_v48 = vstv %s2215_s21  ;;  %s3550_s21 = sld [smem:[#allocation9 + $0x30]] }
 0x2d2   :  { %v1547_v33 = vadd.f32 %v1545_v24, %v1510_v59  ;;  %v1548_v0 = vadd.f32 %v1546_v46, %v1511_v60  ;;  %v1655_v24 = vstv %s2216_s0  ;;  %s2416_s0 = smov [#allocation10]  }
 0x2d3   :  { %v1557_v4 = vpop.permute.xlu0 %1556  ;;  %v1559_v49 = vpop.permute.xlu1 %1558 }
 0x2d4   :  { %v1561_v50 = vsel %vm1560_vm3, %v1557_v4, %v1559_v49  ;;  %v1562_v1 = vsel %vm1560_vm3, %v1559_v49, %v1557_v4 }
 0x2d5   :  { %v1575_v47 = vmul.f32 %v1574_v36, %v1561_v50  ;;  %v1576_v28 = vmul.f32 %v1574_v36, %v1562_v1 }
 0x2d8   :  { %v1826_v7 = vld.sshfl [vmem:[#allocation1 + $0x8] sm:$0xff pattern:$0x75316420]  ;;  %v1825_v35 = vld.sshfl [vmem:[#allocation1] sm:$0xff pattern:$0x75316420] }
 0x2d9   :  { %1831 = vrot.lane.b32.xlu1 %v1826_v7, %s2408_s16  ;;  %1829 = vrot.lane.b32.xlu0 %v1825_v35, %s2408_s16  ;;  %1855 = vst [vmem:[#allocation1] ss:$2 sm:$0xff] %v2468_v54  ;;  %s3483_s16 = sld [smem:[#allocation9 + $0x5e]] }
 0x2db   :  { %v1571_v23 = vpop.permute.xlu0 %1570  ;;  %v1635_v13 = vpop.permute.xlu2 %1634 }
 0x2dc   :  { %v1572_v21 = vsel %vm1560_vm3, %v1569_v53, %v1571_v23  ;;  %v1573_v63 = vsel %vm1560_vm3, %v1571_v23, %v1569_v53  ;;  %vm1675_vm3 = vcmp.lt.s32.totalorder %v2591_v43, 97 }
 0x2dd   :  { %v1578_v52 = vmul.f32 %v1577_v56, %v1572_v21  ;;  %v1579_v18 = vmul.f32 %v1577_v56, %v1573_v63 }
 0x2df   :  { %v1580_v25 = vadd.f32 %v1578_v52, %v1575_v47  ;;  %v1581_v39 = vadd.f32 %v1579_v18, %v1576_v28 }
 0x2e0   :  { %v1857_v37 = vld.sshfl [vmem:[#allocation1 + $0x8] sm:$0xff pattern:$0x75316420]  ;;  %v1856_v14 = vld.sshfl [vmem:[#allocation1] sm:$0xff pattern:$0x75316420] }
 0x2e1   :  { %v1582_v19 = vsel %vm303_vm9, %v1580_v25, 0.0  ;;  %v1583_v30 = vsel %vm304_vm14, %v1581_v39, 0.0  ;;  %1862 = vrot.lane.b32.xlu0 %v1857_v37, %s2409_s19  ;;  %1867 = vst [vmem:[#allocation1] ss:$2 sm:$0xff] %v2482_v40  ;;  %1860 = vrot.lane.b32.xlu2 %v1856_v14, %s2409_s19 }
 0x2e2   :  { %v1584_v32 = vadd.f32 %v1582_v19, %v1547_v33  ;;  %v1585_v6 = vadd.f32 %v1583_v30, %v1548_v0  ;;  %v1689_v30 = vstv %s2217_s1  ;;  %s2131_s1 = sshll.u32 %s2416_s0, 4  ;;  %s2132_s1 = int_to_ptr.vmem [resolvable:$true] %s2131_s1 }
 0x2e3   :  { %v1600_v15 = vpop.permute.xlu1 %1599  ;;  %v1649_v0 = vpop.permute.xlu2 %1648 }
 0x2e4   :  { %v1587_v34 = vsel %vm1330_vm6, %v1585_v6, 0.0  ;;  %v3350_v9 = vadd.f32 %v1584_v32, %v3242_v29  ;;  %v1604_v8 = vsel %vm1603_vm15, %v1600_v15, %v1602_v10  ;;  %v1605_v17 = vsel %vm1603_vm15, %v1602_v10, %v1600_v15 }
 0x2e5   :  { %v3357_v55 = vadd.f32 %v1587_v34, %v3245_v3  ;;  %v1618_v26 = vmul.f32 %v1617_v61, %v1604_v8  ;;  %v1619_v29 = vmul.f32 %v1617_v61, %v1605_v17  ;;  %v1692_v6 = vstv %s2218_s24 }
 0x2e6   :  { %vm1712_vm6 = vcmp.lt.s32.totalorder %v2591_v43, 96 }
 0x2e8   :  { %v1868_v59 = vld.sshfl [vmem:[#allocation1] sm:$0xff pattern:$0x75316420]  ;;  %v1869_v60 = vld.sshfl [vmem:[#allocation1 + $0x8] sm:$0xff pattern:$0x75316420] }
 0x2e9   :  { %1872 = vrot.lane.b32.xlu1 %v1868_v59, %s2409_s19  ;;  %1890 = vst [vmem:[#allocation1] ss:$2 sm:$0xff] %v2468_v54  ;;  %1874 = vrot.lane.b32.xlu2 %v1869_v60, %s2409_s19  ;;  %s3495_s19 = sld [smem:[#allocation9 + $0x2f]] }
 0x2eb   :  { %v1612_v20 = vpop.permute.xlu0 %1611  ;;  %v1614_v11 = vpop.permute.xlu1 %1613 }
 0x2ec   :  { %v1615_v22 = vsel %vm1603_vm15, %v1612_v20, %v1614_v11  ;;  %v1616_v31 = vsel %vm1603_vm15, %v1614_v11, %v1612_v20  ;;  %vm1747_vm15 = vcmp.lt.s32.totalorder %v2591_v43, 95 }
 0x2ed   :  { %v1621_v3 = vmul.f32 %v1620_v57, %v1615_v22  ;;  %v1622_v27 = vmul.f32 %v1620_v57, %v1616_v31 }
 0x2ef   :  { %v1623_v41 = vadd.f32 %v1621_v3, %v1618_v26  ;;  %v1624_v58 = vadd.f32 %v1622_v27, %v1619_v29 }
 0x2f0   :  { %v1892_v45 = vld.sshfl [vmem:[#allocation1 + $0x8] sm:$0xff pattern:$0x75316420]  ;;  %v1891_v2 = vld.sshfl [vmem:[#allocation1] sm:$0xff pattern:$0x75316420] }
 0x2f1   :  { %1897 = vrot.lane.b32.xlu1 %v1892_v45, %s2410_s22  ;;  %1895 = vrot.lane.b32.xlu0 %v1891_v2, %s2410_s22  ;;  %1902 = vst [vmem:[#allocation1] ss:$2 sm:$0xff] %v2482_v40  ;;  %v1625_v35 = vsel %vm293_vm10, %v1623_v41, 0.0  ;;  %v1626_v36 = vsel %vm294_vm11, %v1624_v58, 0.0 }
 0x2f3   :  { %v1637_v62 = vpop.permute.xlu0 %1636  ;;  %v1684_v32 = vpop.permute.xlu2 %1683 }
 0x2f4   :  { %v1639_v44 = vsel %vm1638_vm0, %v1635_v13, %v1637_v62  ;;  %v1640_v38 = vsel %vm1638_vm0, %v1637_v62, %v1635_v13  ;;  %v1726_v13 = vstv %s2219_s25  ;;  %v1729_v62 = vstv %s2220_s27  ;;  %s2133_s25 = sshll.u32 %s3591_s3, 4  ;;  %s2134_s25 = int_to_ptr.hbm [resolvable:$true] %s2133_s25 }
 0x2f5   :  { %v1653_v46 = vmul.f32 %v1652_v48, %v1639_v44  ;;  %v1654_v33 = vmul.f32 %v1652_v48, %v1640_v38 }
 0x2f8   :  { %v1904_v51 = vld.sshfl [vmem:[#allocation1 + $0x8] sm:$0xff pattern:$0x75316420]  ;;  %v1903_v42 = vld.sshfl [vmem:[#allocation1] sm:$0xff pattern:$0x75316420] }
 0x2f9   :  { %1909 = vrot.lane.b32.xlu0 %v1904_v51, %s2410_s22  ;;  %1927 = vst [vmem:[#allocation1] ss:$2 sm:$0xff] %v2468_v54  ;;  %1907 = vrot.lane.b32.xlu2 %v1903_v42, %s2410_s22  ;;  %s3552_s22 = sld [smem:[#allocation9 + $0x61]] }
 0x2fb   :  { %v1647_v4 = vpop.permute.xlu1 %1646  ;;  %v1711_v3 = vpop.permute.xlu2 %1710 }
 0x2fc   :  { %v1650_v49 = vsel %vm1638_vm0, %v1647_v4, %v1649_v0  ;;  %v1651_v50 = vsel %vm1638_vm0, %v1649_v0, %v1647_v4  ;;  %vm1784_vm0 = vcmp.lt.s32.totalorder %v2591_v43, 94 }
 0x2fd   :  { %v1656_v1 = vmul.f32 %v1655_v24, %v1650_v49  ;;  %v1657_v7 = vmul.f32 %v1655_v24, %v1651_v50 }
 0x2ff   :  { %v1658_v53 = vadd.f32 %v1656_v1, %v1653_v46  ;;  %v1659_v56 = vadd.f32 %v1657_v7, %v1654_v33 }
 0x300   :  { %v1928_v47 = vld.sshfl [vmem:[#allocation1] sm:$0xff pattern:$0x75316420]  ;;  %v1929_v28 = vld.sshfl [vmem:[#allocation1 + $0x8] sm:$0xff pattern:$0x75316420] }
 0x301   :  { %1932 = vrot.lane.b32.xlu1 %v1928_v47, %s2411_s23  ;;  %1939 = vst [vmem:[#allocation1] ss:$2 sm:$0xff] %v2482_v40  ;;  %v1660_v23 = vsel %vm295_vm12, %v1658_v53, 0.0  ;;  %v1661_v21 = vsel %vm296_vm13, %v1659_v56, 0.0  ;;  %1934 = vrot.lane.b32.xlu2 %v1929_v28, %s2411_s23 }
 0x302   :  { %v1662_v63 = vadd.f32 %v1660_v23, %v1625_v35  ;;  %v1663_v52 = vadd.f32 %v1661_v21, %v1626_v36  ;;  %v1761_v23 = vstv %s2221_s28 }
 0x303   :  { %v1672_v18 = vpop.permute.xlu0 %1671  ;;  %v1674_v25 = vpop.permute.xlu1 %1673 }
 0x304   :  { %v1676_v39 = vsel %vm1675_vm3, %v1672_v18, %v1674_v25  ;;  %v1677_v37 = vsel %vm1675_vm3, %v1674_v25, %v1672_v18 }
 0x305   :  { %v1690_v10 = vmul.f32 %v1689_v30, %v1676_v39  ;;  %v1691_v15 = vmul.f32 %v1689_v30, %v1677_v37 }
 0x308   :  { %v1941_v14 = vld.sshfl [vmem:[#allocation1 + $0x8] sm:$0xff pattern:$0x75316420]  ;;  %v1940_v19 = vld.sshfl [vmem:[#allocation1] sm:$0xff pattern:$0x75316420] }
 0x309   :  { %1946 = vrot.lane.b32.xlu1 %v1941_v14, %s2411_s23  ;;  %1944 = vrot.lane.b32.xlu0 %v1940_v19, %s2411_s23  ;;  %1964 = vst [vmem:[#allocation1] ss:$2 sm:$0xff] %v2468_v54 }
 0x30b   :  { %v1686_v34 = vpop.permute.xlu0 %1685  ;;  %v1744_v49 = vpop.permute.xlu2 %1743 }
 0x30c   :  { %v1687_v8 = vsel %vm1675_vm3, %v1684_v32, %v1686_v34  ;;  %v1688_v17 = vsel %vm1675_vm3, %v1686_v34, %v1684_v32  ;;  %vm1821_vm3 = vcmp.lt.s32.totalorder %v2591_v43, 93 }
 0x30d   :  { %v1693_v59 = vmul.f32 %v1692_v6, %v1687_v8  ;;  %v1694_v60 = vmul.f32 %v1692_v6, %v1688_v17 }
 0x30f   :  { %v1695_v61 = vadd.f32 %v1693_v59, %v1690_v10  ;;  %v1696_v57 = vadd.f32 %v1694_v60, %v1691_v15 }
 0x310   :  { %v1966_v26 = vld.sshfl [vmem:[#allocation1 + $0x8] sm:$0xff pattern:$0x75316420]  ;;  %v1965_v29 = vld.sshfl [vmem:[#allocation1] sm:$0xff pattern:$0x75316420] }
 0x311   :  { %1971 = vrot.lane.b32.xlu0 %v1966_v26, %s2412_s26  ;;  %1976 = vst [vmem:[#allocation1] ss:$2 sm:$0xff] %v2482_v40  ;;  %v1697_v20 = vsel %vm297_vm1, %v1695_v61, 0.0  ;;  %v1698_v11 = vsel %vm298_vm2, %v1696_v57, 0.0  ;;  %1969 = vrot.lane.b32.xlu2 %v1965_v29, %s2412_s26 }
 0x312   :  { %v1699_v22 = vadd.f32 %v1697_v20, %v1662_v63  ;;  %v1700_v31 = vadd.f32 %v1698_v11, %v1663_v52  ;;  %v1764_v63 = vstv %s2222_s30  ;;  %v1798_v20 = vstv %s2223_s4 }
 0x313   :  { %v1709_v27 = vpop.permute.xlu1 %1708  ;;  %v1758_v21 = vpop.permute.xlu2 %1757 }
 0x314   :  { %v1713_v41 = vsel %vm1712_vm6, %v1709_v27, %v1711_v3  ;;  %v1714_v58 = vsel %vm1712_vm6, %v1711_v3, %v1709_v27 }
 0x315   :  { %v1727_v44 = vmul.f32 %v1726_v13, %v1713_v41  ;;  %v1728_v38 = vmul.f32 %v1726_v13, %v1714_v58 }
 0x318   :  { %v1977_v45 = vld.sshfl [vmem:[#allocation1] sm:$0xff pattern:$0x75316420]  ;;  %v1978_v2 = vld.sshfl [vmem:[#allocation1 + $0x8] sm:$0xff pattern:$0x75316420] }
 0x319   :  { %1981 = vrot.lane.b32.xlu1 %v1977_v45, %s2412_s26  ;;  %1999 = vst [vmem:[#allocation1] ss:$2 sm:$0xff] %v2468_v54  ;;  %1983 = vrot.lane.b32.xlu2 %v1978_v2, %s2412_s26 }
 0x31b   :  { %v1721_v51 = vpop.permute.xlu0 %1720  ;;  %v1723_v42 = vpop.permute.xlu1 %1722 }
 0x31c   :  { %v1724_v48 = vsel %vm1712_vm6, %v1721_v51, %v1723_v42  ;;  %v1725_v24 = vsel %vm1712_vm6, %v1723_v42, %v1721_v51  ;;  %vm1591_vm6 = vcmp.lt.s32.totalorder %v3602_v5, 224 }
 0x31d   :  { %v1730_v46 = vmul.f32 %v1729_v62, %v1724_v48  ;;  %v1731_v33 = vmul.f32 %v1729_v62, %v1725_v24 }
 0x31f   :  { %v1732_v0 = vadd.f32 %v1730_v46, %v1727_v44  ;;  %v1733_v4 = vadd.f32 %v1731_v33, %v1728_v38 }
 0x320   :  { %v2000_v50 = vld.sshfl [vmem:[#allocation1] sm:$0xff pattern:$0x75316420]  ;;  %v2001_v1 = vld.sshfl [vmem:[#allocation1 + $0x8] sm:$0xff pattern:$0x75316420] }
 0x321   :  { %2004 = vrot.lane.b32.xlu0 %v2000_v50, %s2413_s29  ;;  %v1734_v7 = vadd.f32 %v1732_v0, %v1699_v22  ;;  %v1735_v35 = vadd.f32 %v1733_v4, %v1700_v31  ;;  %2006 = vrot.lane.b32.xlu1 %v2001_v1, %s2413_s29  ;;  %2011 = vst [vmem:[#allocation1] ss:$2 sm:$0xff] %v2482_v40  ;;  %v1801_v22 = vstv %s2224_s6 }
 0x323   :  { %v1746_v36 = vpop.permute.xlu0 %1745  ;;  %v1793_v11 = vpop.permute.xlu2 %1792 }
 0x324   :  { %v1748_v53 = vsel %vm1747_vm15, %v1744_v49, %v1746_v36  ;;  %v1749_v56 = vsel %vm1747_vm15, %v1746_v36, %v1744_v49  ;;  %v1835_v49 = vstv %s2225_s7 }
 0x325   :  { %v1762_v52 = vmul.f32 %v1761_v23, %v1748_v53  ;;  %v1763_v18 = vmul.f32 %v1761_v23, %v1749_v56 }
 0x328   :  { %v2013_v47 = vld.sshfl [vmem:[#allocation1 + $0x8] sm:$0xff pattern:$0x75316420]  ;;  %v2012_v28 = vld.sshfl [vmem:[#allocation1] sm:$0xff pattern:$0x75316420] }
 0x329   :  { %2018 = vrot.lane.b32.xlu0 %v2013_v47, %s2413_s29  ;;  %2036 = vst [vmem:[#allocation1] ss:$2 sm:$0xff] %v2468_v54  ;;  %2016 = vrot.lane.b32.xlu2 %v2012_v28, %s2413_s29 }
 0x32b   :  { %v1756_v25 = vpop.permute.xlu1 %1755  ;;  %v1820_v42 = vpop.permute.xlu2 %1819 }
 0x32c   :  { %v1759_v39 = vsel %vm1747_vm15, %v1756_v25, %v1758_v21  ;;  %v1760_v37 = vsel %vm1747_vm15, %v1758_v21, %v1756_v25  ;;  %vm1864_vm15 = vcmp.lt.s32.totalorder %v2591_v43, 83 }
 0x32d   :  { %v1765_v14 = vmul.f32 %v1764_v63, %v1759_v39  ;;  %v1766_v19 = vmul.f32 %v1764_v63, %v1760_v37 }
 0x32f   :  { %v1767_v30 = vadd.f32 %v1765_v14, %v1762_v52  ;;  %v1768_v32 = vadd.f32 %v1766_v19, %v1763_v18 }
 0x330   :  { %v2037_v6 = vld.sshfl [vmem:[#allocation1] sm:$0xff pattern:$0x75316420]  ;;  %v2038_v10 = vld.sshfl [vmem:[#allocation1 + $0x8] sm:$0xff pattern:$0x75316420] }
 0x331   :  { %v1769_v15 = vsel %vm299_vm4, %v1767_v30, 0.0  ;;  %v1770_v34 = vsel %vm300_vm5, %v1768_v32, 0.0  ;;  %2041 = vrot.lane.b32.xlu1 %v2037_v6, %s2414_s5  ;;  %2048 = vst [vmem:[#allocation1] ss:$2 sm:$0xff] %v2482_v40  ;;  %2043 = vrot.lane.b32.xlu2 %v2038_v10, %s2414_s5 }
 0x332   :  { %v1771_v8 = vadd.f32 %v1769_v15, %v1734_v7  ;;  %v1772_v17 = vadd.f32 %v1770_v34, %v1735_v35 }
 0x333   :  { %v1781_v59 = vpop.permute.xlu0 %1780  ;;  %v1783_v60 = vpop.permute.xlu1 %1782 }
 0x334   :  { %v1785_v61 = vsel %vm1784_vm0, %v1781_v59, %v1783_v60  ;;  %v1786_v57 = vsel %vm1784_vm0, %v1783_v60, %v1781_v59 }
 0x335   :  { %v1799_v31 = vmul.f32 %v1798_v20, %v1785_v61  ;;  %v1800_v3 = vmul.f32 %v1798_v20, %v1786_v57 }
 0x338   :  { %v2050_v26 = vld.sshfl [vmem:[#allocation1 + $0x8] sm:$0xff pattern:$0x75316420]  ;;  %v2049_v29 = vld.sshfl [vmem:[#allocation1] sm:$0xff pattern:$0x75316420] }
 0x339   :  { %2055 = vrot.lane.b32.xlu1 %v2050_v26, %s2414_s5  ;;  %2053 = vrot.lane.b32.xlu0 %v2049_v29, %s2414_s5  ;;  %2073 = vst [vmem:[#allocation1] ss:$2 sm:$0xff] %v2468_v54 }
 0x33b   :  { %v1795_v27 = vpop.permute.xlu0 %1794  ;;  %v1861_v19 = vpop.permute.xlu2 %1860 }
 0x33c   :  { %v1796_v41 = vsel %vm1784_vm0, %v1793_v11, %v1795_v27  ;;  %v1797_v58 = vsel %vm1784_vm0, %v1795_v27, %v1793_v11  ;;  %vm1899_vm0 = vcmp.lt.s32.totalorder %v2591_v43, 82  ;;  %v1916_v27 = vstv %s2230_s12 }
 0x33d   :  { %v1802_v45 = vmul.f32 %v1801_v22, %v1796_v41  ;;  %v1803_v2 = vmul.f32 %v1801_v22, %v1797_v58  ;;  %v1878_v22 = vstv %s2227_s2 }
 0x33f   :  { %v1804_v13 = vadd.f32 %v1802_v45, %v1799_v31  ;;  %v1805_v62 = vadd.f32 %v1803_v2, %v1800_v3  ;;  %v1881_v31 = vstv %s2228_s10  ;;  %v1913_v3 = vstv %s2229_s11 }
 0x340   :  { %v2075_v44 = vld.sshfl [vmem:[#allocation1 + $0x8] sm:$0xff pattern:$0x75316420]  ;;  %v2074_v38 = vld.sshfl [vmem:[#allocation1] sm:$0xff pattern:$0x75316420] }
 0x341   :  { %v1806_v54 = vsel %vm301_vm7, %v1804_v13, 0.0  ;;  %v1807_v51 = vsel %vm302_vm8, %v1805_v62, 0.0  ;;  %2080 = vrot.lane.b32.xlu0 %v2075_v44, %s2415_s8  ;;  %2085 = vst [vmem:[#allocation1] ss:$2 sm:$0xff] %v2482_v40  ;;  %2078 = vrot.lane.b32.xlu2 %v2074_v38, %s2415_s8  ;;  %v1838_v40 = vstv %s2226_s9 }
 0x342   :  { %v1808_v48 = vadd.f32 %v1806_v54, %v1771_v8  ;;  %v1809_v24 = vadd.f32 %v1807_v51, %v1772_v17 }
 0x343   :  { %v1818_v46 = vpop.permute.xlu1 %1817  ;;  %v1875_v6 = vpop.permute.xlu2 %1874 }
 0x344   :  { %v1822_v33 = vsel %vm1821_vm3, %v1818_v46, %v1820_v42  ;;  %v1823_v0 = vsel %vm1821_vm3, %v1820_v42, %v1818_v46 }
 0x345   :  { %v1836_v1 = vmul.f32 %v1835_v49, %v1822_v33  ;;  %v1837_v7 = vmul.f32 %v1835_v49, %v1823_v0 }
 0x348   :  { %v2086_v4 = vld.sshfl [vmem:[#allocation1] sm:$0xff pattern:$0x75316420]  ;;  %v2087_v50 = vld.sshfl [vmem:[#allocation1 + $0x8] sm:$0xff pattern:$0x75316420] }
 0x349   :  { %2090 = vrot.lane.b32.xlu1 %v2086_v4, %s2415_s8  ;;  %2092 = vrot.lane.b32.xlu2 %v2087_v50, %s2415_s8 }
 0x34b   :  { %v1832_v35 = vpop.permute.xlu1 %1831  ;;  %v1830_v36 = vpop.permute.xlu0 %1829 }
 0x34c   :  { %v1833_v53 = vsel %vm1821_vm3, %v1830_v36, %v1832_v35  ;;  %v1834_v56 = vsel %vm1821_vm3, %v1832_v35, %v1830_v36  ;;  %vm1936_vm3 = vcmp.lt.s32.totalorder %v2591_v43, 81 }
 0x34d   :  { %v1839_v47 = vmul.f32 %v1838_v40, %v1833_v53  ;;  %v1840_v28 = vmul.f32 %v1838_v40, %v1834_v56  ;;  %v1950_v40 = vstv %s3473_s13 }
 0x34f   :  { %v1841_v23 = vadd.f32 %v1839_v47, %v1836_v1  ;;  %v1842_v21 = vadd.f32 %v1840_v28, %v1837_v7  ;;  %v1953_v7 = vstv %s3478_s14 }
 0x351   :  { %v1843_v63 = vsel %vm303_vm9, %v1841_v23, 0.0  ;;  %v1844_v52 = vsel %vm304_vm14, %v1842_v21, 0.0 }
 0x352   :  { %v1845_v18 = vadd.f32 %v1843_v63, %v1808_v48  ;;  %v1846_v25 = vadd.f32 %v1844_v52, %v1809_v24 }
 0x353   :  { %v1863_v30 = vpop.permute.xlu0 %1862  ;;  %v1908_v34 = vpop.permute.xlu2 %1907 }
 0x354   :  { %v1848_v39 = vsel %vm1591_vm6, %v1846_v25, 0.0  ;;  %v3455_v37 = vadd.f32 %v1845_v18, %v3350_v9  ;;  %v1865_v41 = vsel %vm1864_vm15, %v1861_v19, %v1863_v30  ;;  %v1866_v58 = vsel %vm1864_vm15, %v1863_v30, %v1861_v19 }
 0x355   :  { %v3458_v14 = vadd.f32 %v1848_v39, %v3357_v55  ;;  %v1879_v54 = vmul.f32 %v1878_v22, %v1865_v41  ;;  %v1880_v51 = vmul.f32 %v1878_v22, %v1866_v58  ;;  %vm1973_vm6 = vcmp.lt.s32.totalorder %v2591_v43, 80 }
 0x35b   :  { %v1873_v32 = vpop.permute.xlu1 %1872  ;;  %v1935_v59 = vpop.permute.xlu2 %1934 }
 0x35c   :  { %v1876_v45 = vsel %vm1864_vm15, %v1873_v32, %v1875_v6  ;;  %v1877_v2 = vsel %vm1864_vm15, %v1875_v6, %v1873_v32  ;;  %v1987_v32 = vstv %s3481_s15  ;;  %v1990_v6 = vstv %s3483_s16 }
 0x35d   :  { %v1882_v42 = vmul.f32 %v1881_v31, %v1876_v45  ;;  %v1883_v48 = vmul.f32 %v1881_v31, %v1877_v2  ;;  %vm2008_vm15 = vcmp.lt.s32.totalorder %v2591_v43, 79 }
 0x35f   :  { %v1884_v36 = vadd.f32 %v1882_v42, %v1879_v54  ;;  %v1885_v53 = vadd.f32 %v1883_v48, %v1880_v51 }
 0x361   :  { %v1886_v25 = vsel %vm293_vm10, %v1884_v36, 0.0  ;;  %v1887_v39 = vsel %vm294_vm11, %v1885_v53, 0.0  ;;  %vm2045_vm10 = vcmp.lt.s32.totalorder %v2591_v43, 78  ;;  %vm2082_vm11 = vcmp.lt.s32.totalorder %v2591_v43, 77 }
 0x363   :  { %v1896_v10 = vpop.permute.xlu0 %1895  ;;  %v1898_v15 = vpop.permute.xlu1 %1897 }
 0x364   :  { %v1900_v13 = vsel %vm1899_vm0, %v1896_v10, %v1898_v15  ;;  %v1901_v62 = vsel %vm1899_vm0, %v1898_v15, %v1896_v10  ;;  %v2022_v15 = vstv %s3485_s17 }
 0x365   :  { %v1914_v24 = vmul.f32 %v1913_v3, %v1900_v13  ;;  %v1915_v46 = vmul.f32 %v1913_v3, %v1901_v62 }
 0x36b   :  { %v1910_v8 = vpop.permute.xlu0 %1909  ;;  %v3460_v57 = vpop.permute.xlu2 %1969 }
 0x36c   :  { %v1911_v44 = vsel %vm1899_vm0, %v1908_v34, %v1910_v8  ;;  %v1912_v38 = vsel %vm1899_vm0, %v1910_v8, %v1908_v34  ;;  %v2025_v34 = vstv %s3487_s18 }
 0x36d   :  { %v1917_v33 = vmul.f32 %v1916_v27, %v1911_v44  ;;  %v1918_v0 = vmul.f32 %v1916_v27, %v1912_v38  ;;  %v2062_v27 = vstv %s3501_s20 }
 0x36f   :  { %v1919_v28 = vadd.f32 %v1917_v33, %v1914_v24  ;;  %v1920_v23 = vadd.f32 %v1918_v0, %v1915_v46 }
 0x371   :  { %v1921_v19 = vsel %vm295_vm12, %v1919_v28, 0.0  ;;  %v1922_v30 = vsel %vm296_vm13, %v1920_v23, 0.0  ;;  %v2096_v23 = vstv %s3550_s21  ;;  %vm1852_vm12 = vcmp.lt.s32.totalorder %v3602_v5, 208 }
 0x372   :  { %v1923_v33 = vadd.f32 %v1921_v19, %v1886_v25  ;;  %v1924_v0 = vadd.f32 %v1922_v30, %v1887_v39  ;;  %vm3603_vm13 = vcmask 1043456  }
 0x373   :  { %v1933_v17 = vpop.permute.xlu1 %1932  ;;  %v3466_v55 = vpop.permute.xlu2 %1983 }
 0x374   :  { %v1937_v1 = vsel %vm1936_vm3, %v1933_v17, %v1935_v59  ;;  %v1938_v56 = vsel %vm1936_vm3, %v1935_v59, %v1933_v17 }
 0x375   :  { %v1951_v21 = vmul.f32 %v1950_v40, %v1937_v1  ;;  %v1952_v52 = vmul.f32 %v1950_v40, %v1938_v56 }
 0x37b   :  { %v1945_v60 = vpop.permute.xlu0 %1944  ;;  %v1947_v61 = vpop.permute.xlu1 %1946 }
 0x37c   :  { %v1948_v35 = vsel %vm1936_vm3, %v1945_v60, %v1947_v61  ;;  %v1949_v47 = vsel %vm1936_vm3, %v1947_v61, %v1945_v60  ;;  %v2059_v60 = vstv %s3495_s19 }
 0x37d   :  { %v1954_v63 = vmul.f32 %v1953_v7, %v1948_v35  ;;  %v1955_v18 = vmul.f32 %v1953_v7, %v1949_v47 }
 0x37f   :  { %v1956_v10 = vadd.f32 %v1954_v63, %v1951_v21  ;;  %v1957_v17 = vadd.f32 %v1955_v18, %v1952_v52  ;;  %v2099_v52 = vstv %s3552_s22 }
 0x383   :  { %v3462_v26 = vpop.permute.xlu0 %1971  ;;  %v3475_v11 = vpop.permute.xlu2 %2016 }
 0x384   :  { %v1974_v59 = vsel %vm1973_vm6, %v3460_v57, %v3462_v26  ;;  %v1975_v22 = vsel %vm1973_vm6, %v3462_v26, %v3460_v57 }
 0x385   :  { %v1988_v62 = vmul.f32 %v1987_v32, %v1974_v59  ;;  %v1989_v44 = vmul.f32 %v1987_v32, %v1975_v22 }
 0x38b   :  { %v3464_v9 = vpop.permute.xlu1 %1981  ;;  %v2044_v50 = vpop.permute.xlu2 %2043 }
 0x38c   :  { %v1985_v31 = vsel %vm1973_vm6, %v3464_v9, %v3466_v55  ;;  %v1986_v3 = vsel %vm1973_vm6, %v3466_v55, %v3464_v9 }
 0x38d   :  { %v1991_v38 = vmul.f32 %v1990_v6, %v1985_v31  ;;  %v1992_v54 = vmul.f32 %v1990_v6, %v1986_v3 }
 0x38f   :  { %v1994_v40 = vadd.f32 %v1992_v54, %v1989_v44 }
 0x393   :  { %v3468_v29 = vpop.permute.xlu1 %2006  ;;  %v3470_v20 = vpop.permute.xlu0 %2004 }
 0x394   :  { %v2009_v58 = vsel %vm2008_vm15, %v3470_v20, %v3468_v29  ;;  %v2010_v57 = vsel %vm2008_vm15, %v3468_v29, %v3470_v20 }
 0x395   :  { %v2023_v29 = vmul.f32 %v2022_v15, %v2009_v58  ;;  %v2024_v20 = vmul.f32 %v2022_v15, %v2010_v57 }
 0x39b   :  { %v2019_v49 = vpop.permute.xlu0 %2018  ;;  %v2079_v41 = vpop.permute.xlu2 %2078 }
 0x39c   :  { %v2020_v26 = vsel %vm2008_vm15, %v3475_v11, %v2019_v49  ;;  %v2021_v9 = vsel %vm2008_vm15, %v2019_v49, %v3475_v11  ;;  %v1959_v49 = vsel %vm298_vm2, %v1957_v17, 0.0 }
 0x39d   :  { %v2026_v51 = vmul.f32 %v2025_v34, %v2020_v26  ;;  %v2027_v42 = vmul.f32 %v2025_v34, %v2021_v9  ;;  %v1961_v47 = vadd.f32 %v1959_v49, %v1924_v0 }
 0x39f   :  { %v2028_v1 = vadd.f32 %v2026_v51, %v2023_v29  ;;  %v2029_v7 = vadd.f32 %v2027_v42, %v2024_v20  ;;  %v1996_v25 = vadd.f32 %v1994_v40, %v1961_v47 }
 0x3a1   :  { %v2030_v39 = vsel %vm299_vm4, %v2028_v1, 0.0  ;;  %v2031_v19 = vsel %vm300_vm5, %v2029_v7, 0.0 }
 0x3a3   :  { %v2042_v4 = vpop.permute.xlu1 %2041  ;;  %v2093_v28 = vpop.permute.xlu2 %2092 }
 0x3a4   :  { %v2046_v55 = vsel %vm2045_vm10, %v2042_v4, %v2044_v50  ;;  %v2047_v45 = vsel %vm2045_vm10, %v2044_v50, %v2042_v4  ;;  %v1958_v4 = vsel %vm297_vm1, %v1956_v10, 0.0  ;;  %v1993_v50 = vadd.f32 %v1991_v38, %v1988_v62 }
 0x3a5   :  { %v2060_v48 = vmul.f32 %v2059_v60, %v2046_v55  ;;  %v2061_v24 = vmul.f32 %v2059_v60, %v2047_v45  ;;  %v1960_v56 = vadd.f32 %v1958_v4, %v1923_v33 }
 0x3a7   :  { %v1995_v18 = vadd.f32 %v1993_v50, %v1960_v56 }
 0x3a9   :  { %v2032_v60 = vadd.f32 %v2030_v39, %v1995_v18 }
 0x3ab   :  { %v2054_v8 = vpop.permute.xlu0 %2053  ;;  %v2056_v61 = vpop.permute.xlu1 %2055 }
 0x3ac   :  { %v2057_v2 = vsel %vm2045_vm10, %v2054_v8, %v2056_v61  ;;  %v2058_v13 = vsel %vm2045_vm10, %v2056_v61, %v2054_v8  ;;  %v2033_v61 = vadd.f32 %v2031_v19, %v1996_v25 }
 0x3ad   :  { %v2063_v46 = vmul.f32 %v2062_v27, %v2057_v2  ;;  %v2064_v11 = vmul.f32 %v2062_v27, %v2058_v13 }
 0x3af   :  { %v2065_v36 = vadd.f32 %v2063_v46, %v2060_v48  ;;  %v2066_v53 = vadd.f32 %v2064_v11, %v2061_v24 }
 0x3b1   :  { %v2067_v32 = vsel %vm301_vm7, %v2065_v36, 0.0  ;;  %v2068_v6 = vsel %vm302_vm8, %v2066_v53, 0.0 }
 0x3b2   :  { %v2069_v3 = vadd.f32 %v2067_v32, %v2032_v60  ;;  %v2070_v27 = vadd.f32 %v2068_v6, %v2033_v61 }
 0x3b3   :  { %v2081_v35 = vpop.permute.xlu0 %2080 }
 0x3b4   :  { %v2083_v21 = vsel %vm2082_vm11, %v2079_v41, %v2081_v35  ;;  %v2084_v63 = vsel %vm2082_vm11, %v2081_v35, %v2079_v41 }
 0x3b5   :  { %v2097_v34 = vmul.f32 %v2096_v23, %v2083_v21  ;;  %v2098_v8 = vmul.f32 %v2096_v23, %v2084_v63 }
 0x3bb   :  { %v2091_v30 = vpop.permute.xlu1 %2090 }
 0x3bc   :  { %v2094_v10 = vsel %vm2082_vm11, %v2091_v30, %v2093_v28  ;;  %v2095_v15 = vsel %vm2082_vm11, %v2093_v28, %v2091_v30 }
 0x3bd   :  { %v2100_v17 = vmul.f32 %v2099_v52, %v2094_v10  ;;  %v2101_v59 = vmul.f32 %v2099_v52, %v2095_v15 }
 0x3bf   :  { %v2102_v22 = vadd.f32 %v2100_v17, %v2097_v34  ;;  %v2103_v31 = vadd.f32 %v2101_v59, %v2098_v8 }
 0x3c1   :  { %v2104_v41 = vsel %vm303_vm9, %v2102_v22, 0.0  ;;  %v2105_v58 = vsel %vm304_vm14, %v2103_v31, 0.0 }
 0x3c2   :  { %v2106_v43 = vadd.f32 %v2104_v41, %v2069_v3  ;;  %v2107_v57 = vadd.f32 %v2105_v58, %v2070_v27 }
 0x3c4   :  { %v2109_v26 = vsel %vm1852_vm12, %v2107_v57, 0.0  ;;  %v2110_v9 = vadd.f32 %v2106_v43, %v3455_v37 }
 0x3c5   :  { %v2111_v55 = vadd.f32 %v2109_v26, %v3458_v14 }
 0x3c6   :  { %v2112_v45 = vmul.f32 0.5, %v2110_v9 }
 0x3c7   :  { %v2113_v2 = vmul.f32 0.5, %v2111_v55 }
 0x3c8   :  { %2294 = vtanh.f32 %v2112_v45 }
 0x3c9   :  { %2296 = vtanh.f32 %v2113_v2 }
 0x3ce   :  { %v2295_v13 = vpop.eup %2294 }
 0x3cf   :  { %v2297_v62 = vpop.eup %2296  ;;  %v2116_v5 = vadd.f32 1.0, %v2295_v13 }
 0x3d0   :  { %v2117_v44 = vadd.f32 1.0, %v2297_v62 }
 0x3d1   :  { %v2118_v12 = vmul.f32 0.5, %v2116_v5 }
 0x3d2   :  { %v2119_v16 = vmul.f32 0.5, %v2117_v44 }
 0x3d4   :  { %v2122_v38 = vrot.slane %v2119_v16, 4 }
 0x3d6   :  { %v2123_v37 = vsel %vm3603_vm13, %v2118_v12, %v2122_v38 }
 0x3d7   :  { %2125 = vst [vmem:[#allocation10] sm:$0xff] %v2123_v37 }
 0x3d8   :  { %2136 = dma.vmem_to_hbm [thread:$0]  %s2132_s1, 128, %s2134_s25, [#allocation7]  }
 0x3d9   :  { %2362 = dma.done.wait [#allocation7], 128  }
 0x3da   :  { %2363 = vsyncadd [#allocation7], 4294967168 }
 0x3db   :  { %2141 = vsyncpa [#allocation6], 1 }
 0x3dc   :  { %2142 = vsyncpa [#allocation7], 1 }
 0x3dd   :  { %2143 = vsyncpa [#allocation8], 1 }

</bundles_post_ra>
